<compile_context>
chip_gen: v6e
topology: v6e:2x2x1
jax: 0.10.0
libtpu: 0.0.40
codegen_flags: <defaults>
</compile_context>

<pallas_src>
import functools

import jax
import jax.numpy as jnp
from jax.experimental import pallas as pl
from jax.experimental.pallas import tpu as pltpu

TM_MAX = 512                      # max row tile (M = B*Ho*Wo) for the fused GEMMs
_VMEM_LIMIT = 32 * 1024 * 1024    # explicit scoped-VMEM budget (safe on v5e/v6e/v7x)


# ----------------------------- Pallas kernels -----------------------------

def _gemm_bias_kernel(x_ref, w_ref, b_ref, o_ref, *, relu):
    # out = relu?( x @ w + bias )   (BN scale pre-folded into w; bias = folded BN bias)
    acc = jnp.dot(x_ref[...], w_ref[...], preferred_element_type=jnp.float32)
    out = acc + b_ref[...]
    if relu:
        out = jnp.maximum(out, 0.0)
    o_ref[...] = out


def _gemm_bias_res_kernel(x_ref, w_ref, b_ref, res_ref, o_ref, *, relu):
    # out = relu?( x @ w + bias + residual )
    acc = jnp.dot(x_ref[...], w_ref[...], preferred_element_type=jnp.float32)
    out = acc + b_ref[...] + res_ref[...]
    if relu:
        out = jnp.maximum(out, 0.0)
    o_ref[...] = out


def _stem_branch_kernel(x_ref, w_ref, b_ref, o_ref, *, pool):
    # Fused conv(+folded BN)+ReLU+MaxPool(k=pool) for one stem branch.
    # x_ref: [pool, Mo, K] bf16 patches, pool-window-major; o_ref: [Mo, N] f32.
    acc = None
    for t in range(pool):
        v = jnp.dot(x_ref[t], w_ref[...], preferred_element_type=jnp.float32) + b_ref[...]
        v = jnp.maximum(v, 0.0)
        acc = v if acc is None else jnp.maximum(acc, v)
    o_ref[...] = acc


def _avgpool_fc_kernel(x_ref, w_ref, b_ref, o_ref):
    # x: [B, H*W, C] -> adaptive avg-pool (1,1) + Linear, fused.
    pooled = jnp.mean(x_ref[...], axis=1)                          # [B, C]
    o_ref[...] = jnp.dot(pooled, w_ref[...],
                         preferred_element_type=jnp.float32) + b_ref[...]


# ----------------------------- kernel wrappers -----------------------------

def _fused_gemm(x, wmat, bias, residual=None, relu=True):
    """relu?( x[M,K] @ w[K,N] + bias[1,N] (+ residual[M,N]) ), tiled over M.

    For every layer of this network M <= TM_MAX, so the whole GEMM is a single
    grid step (no padding, no masked stores); larger M falls back to 512-row
    tiles with a masked partial last block.
    """
    M, K = x.shape
    N = wmat.shape[1]
    tm = M if M <= TM_MAX else TM_MAX
    grid = (pl.cdiv(M, tm),)

    args = [x, wmat, bias]
    in_specs = [
        pl.BlockSpec((tm, K), lambda i: (i, 0)),
        pl.BlockSpec((K, N), lambda i: (0, 0)),
        pl.BlockSpec((1, N), lambda i: (0, 0)),
    ]
    if residual is None:
        kernel = functools.partial(_gemm_bias_kernel, relu=relu)
    else:
        args.append(residual)
        in_specs.append(pl.BlockSpec((tm, N), lambda i: (i, 0)))
        kernel = functools.partial(_gemm_bias_res_kernel, relu=relu)

    return pl.pallas_call(
        kernel,
        out_shape=jax.ShapeDtypeStruct((M, N), jnp.float32),
        grid=grid,
        in_specs=in_specs,
        out_specs=pl.BlockSpec((tm, N), lambda i: (i, 0)),
        compiler_params=pltpu.CompilerParams(
            dimension_semantics=("parallel",),
            vmem_limit_bytes=_VMEM_LIMIT),
    )(*args)


def _im2col(x, kh, kw, stride, padding):
    """x: [B,H,W,C] -> [B,Ho,Wo, kh*kw*C] with (i,j,c) flat ordering."""
    B, H, W, C = x.shape
    sh, sw = stride
    ph, pw = padding
    Ho = (H + 2 * ph - kh) // sh + 1
    Wo = (W + 2 * pw - kw) // sw + 1
    xp = jnp.pad(x, ((0, 0), (ph, ph), (pw, pw), (0, 0)))
    cols = []
    for i in range(kh):
        for j in range(kw):
            cols.append(xp[:, i:i + sh * Ho:sh, j:j + sw * Wo:sw, :])
    patches = jnp.stack(cols, axis=3)                               # [B,Ho,Wo,kh*kw,C]
    return patches.reshape(B, Ho, Wo, kh * kw * C), Ho, Wo


def conv_bn_act(x, p, kh, kw, stride, padding, relu=True, residual=None):
    """Conv2d(bias=False)+folded BN (+residual) (+ReLU) via the fused GEMM kernel."""
    B, _, _, C = x.shape
    patches, Ho, Wo = _im2col(x, kh, kw, stride, padding)
    M = B * Ho * Wo
    K = kh * kw * C
    res2 = None if residual is None else residual.reshape(M, -1)
    out = _fused_gemm(patches.reshape(M, K).astype(jnp.bfloat16), p['w'], p['b'],
                      residual=res2, relu=relu)
    return out.reshape(B, Ho, Wo, -1)


def stem_branch(x, p, kh, kw, stride, padding, pool_axis, pool=5):
    """One stem branch: conv + folded BN + ReLU + non-overlapping MaxPool(k=pool),
    all fused into a single Pallas kernel (pool window = leading patch axis)."""
    B, _, _, C = x.shape
    patches, Ho, Wo = _im2col(x, kh, kw, stride, padding)
    K = kh * kw * C
    N = p['w'].shape[1]
    if pool_axis == 'w':                                   # MaxPool2d((1,pool),(1,pool))
        Ha, Wa = Ho, Wo // pool
        pt = patches.reshape(B, Ha, Wa, pool, K).transpose(3, 0, 1, 2, 4)
    else:                                                  # MaxPool2d((pool,1),(pool,1))
        Ha, Wa = Ho // pool, Wo
        pt = patches.reshape(B, Ha, pool, Wa, K).transpose(2, 0, 1, 3, 4)
    Mo = B * Ha * Wa
    pt = pt.reshape(pool, Mo, K).astype(jnp.bfloat16)
    out = pl.pallas_call(
        functools.partial(_stem_branch_kernel, pool=pool),
        out_shape=jax.ShapeDtypeStruct((Mo, N), jnp.float32),
        compiler_params=pltpu.CompilerParams(vmem_limit_bytes=_VMEM_LIMIT),
    )(pt, p['w'], p['b'])
    return out.reshape(B, Ha, Wa, N)


def avgpool_fc(x, w, b):
    """AdaptiveAvgPool2d((1,1)) + flatten + Linear, fused into one kernel."""
    B, H, W, C = x.shape
    n = w.shape[1]
    return pl.pallas_call(
        _avgpool_fc_kernel,
        out_shape=jax.ShapeDtypeStruct((B, n), jnp.float32),
        compiler_params=pltpu.CompilerParams(vmem_limit_bytes=_VMEM_LIMIT),
    )(x.reshape(B, H * W, C), w, b.reshape(1, n))


# ----------------------------- model definition -----------------------------

def fold_bn(gamma, beta, mean, var, eps=1e-5):
    scale = gamma / jnp.sqrt(var + eps)
    bias = beta - mean * scale
    return scale, bias


def kaiming_normal(key, shape):
    # nn.init.kaiming_normal_(mode='fan_out', nonlinearity='relu') for conv weights
    co, ci, kh, kw = shape
    fan_out = co * kh * kw
    std = (2.0 / fan_out) ** 0.5
    return jax.random.normal(key, shape, dtype=jnp.float32) * std


def make_conv_bn(key, co, ci, kh, kw, zero_gamma=False):
    """Conv2d(bias=False)+BatchNorm2d (eval mode).  The BN scale is folded into a
    pre-transposed [kh*kw*ci, co] bf16 GEMM weight; the BN bias stays f32."""
    w = kaiming_normal(key, (co, ci, kh, kw))
    gamma = jnp.zeros((co,), jnp.float32) if zero_gamma else jnp.ones((co,), jnp.float32)
    beta = jnp.zeros((co,), jnp.float32)
    mean = jnp.zeros((co,), jnp.float32)
    var = jnp.ones((co,), jnp.float32)
    scale, bias = fold_bn(gamma, beta, mean, var)
    wmat = jnp.transpose(w, (2, 3, 1, 0)).reshape(kh * kw * ci, co) * scale[None, :]
    return {'w': wmat.astype(jnp.bfloat16),
            'b': bias.reshape(1, co).astype(jnp.float32)}


def init_params(key, layers=(1, 1, 1), num_classes=6):
    features = [16, 32, 64, 64]
    keys = iter(jax.random.split(key, 64))
    p = {}
    inplanes = features[0]

    # stem
    p['stem_h'] = make_conv_bn(next(keys), inplanes // 2, 3, 11, 1)   # Conv(11x1)
    p['stem_w'] = make_conv_bn(next(keys), inplanes // 2, 3, 1, 11)   # Conv(1x11)

    def make_layer(inplanes, planes, nblocks):
        layer = []
        for b in range(nblocks):
            blk = {
                'conv1': make_conv_bn(next(keys), planes, inplanes, 3, 3),
                'conv2': make_conv_bn(next(keys), planes, planes, 3, 3,
                                      zero_gamma=True),   # zero-init residual BN
            }
            # In the reference, `stride != 1` is True even for stride=(1,1)
            # (tuple != int), so the FIRST block of every layer gets a
            # 1x1-conv+BN downsample on the identity path.
            if b == 0:
                blk['ds'] = make_conv_bn(next(keys), planes, inplanes, 1, 1)
            layer.append(blk)
            inplanes = planes                     # BasicBlock.expansion == 1
        return layer, inplanes

    l1, inplanes = make_layer(inplanes, features[0], layers[0])
    l2, inplanes = make_layer(inplanes, features[1], layers[1])
    l3, inplanes = make_layer(inplanes, features[2], layers[2])
    p['layers'] = [l1, l2, l3]

    fc_in = features[3]
    k = 1.0 / (fc_in ** 0.5)
    p['fc_w'] = jax.random.uniform(next(keys), (fc_in, num_classes), jnp.float32, -k, k)
    p['fc_b'] = jax.random.uniform(next(keys), (num_classes,), jnp.float32, -k, k)
    return p


def basic_block(x, p, stride):
    out = conv_bn_act(x, p['conv1'], 3, 3, stride, (1, 1), relu=True)
    if 'ds' in p:
        identity = conv_bn_act(x, p['ds'], 1, 1, stride, (0, 0), relu=False)
    else:
        identity = x
    # conv2 + bn2 + residual add + relu, fused in one GEMM kernel
    return conv_bn_act(out, p['conv2'], 3, 3, (1, 1), (1, 1), relu=True,
                       residual=identity)


def stem(x, p):
    # hw branch: Conv(11x1, s=(5,1), p=(3,0)) + BN + ReLU + MaxPool(1x5)  (fused)
    hw = stem_branch(x, p['stem_h'], 11, 1, (5, 1), (3, 0), pool_axis='w')
    # wh branch: Conv(1x11, s=(1,5), p=(0,3)) + BN + ReLU + MaxPool(5x1)  (fused)
    wh = stem_branch(x, p['stem_w'], 1, 11, (1, 5), (0, 3), pool_axis='h')
    return jnp.concatenate([hw, wh], axis=-1)     # channel concat (NHWC last axis)


_LAYER_STRIDES = ((1, 1), (2, 2), (2, 2))


@jax.jit
def resnet_forward(x_nchw, p):
    x = jnp.transpose(x_nchw, (0, 2, 3, 1)).astype(jnp.float32)   # NCHW -> NHWC
    x = stem(x, p)
    for layer, lstride in zip(p['layers'], _LAYER_STRIDES):
        for bi, blk in enumerate(layer):
            x = basic_block(x, blk, lstride if bi == 0 else (1, 1))
    return avgpool_fc(x, p['fc_w'], p['fc_b'])


# ----------------------------- driver -----------------------------

if __name__ == "__main__":
    key = jax.random.PRNGKey(0)
    pkey, xkey = jax.random.split(key)
    params = init_params(pkey, layers=(1, 1, 1), num_classes=6)
    # PyTorch-style NCHW input; H,W=50 so the stem (stride-5 conv + pool-5) is clean.
    x = jax.random.normal(xkey, (2, 3, 50, 50), dtype=jnp.float32)
    out = resnet_forward(x, params)
    jax.block_until_ready(out)
    assert out.shape == (2, 6) and out.dtype == jnp.float32
    print("KERNEL_OK")
</pallas_src>

<mosaic_0001>
module attributes {stable_mosaic.version = 11 : i64} {
  func.func @_stem_branch_kernel(%arg0: memref<5x200x33xbf16, #tpu.memory_space<vmem>>, %arg1: memref<33x8xbf16, #tpu.memory_space<vmem>>, %arg2: memref<1x8xf32, #tpu.memory_space<vmem>>, %arg3: memref<200x8xf32, #tpu.memory_space<vmem>>) attributes {dimension_semantics = [], scalar_prefetch = 0 : i64, scratch_operands = 0 : i64, tpu.core_type = #tpu.core_type<tc>} {
    %c0 = arith.constant 0 : index
    %c0_0 = arith.constant 0 : index
    %c0_1 = arith.constant 0 : index
    %0 = vector.load %arg0[%c0, %c0_0, %c0_1] : memref<5x200x33xbf16, #tpu.memory_space<vmem>>, vector<1x200x33xbf16>
    %1 = vector.shape_cast %0 : vector<1x200x33xbf16> to vector<200x33xbf16>
    %c0_2 = arith.constant 0 : index
    %c0_3 = arith.constant 0 : index
    %2 = vector.load %arg1[%c0_2, %c0_3] : memref<33x8xbf16, #tpu.memory_space<vmem>>, vector<33x8xbf16>
    %cst = arith.constant dense<0.000000e+00> : vector<200x8xf32>
    %3 = tpu.matmul %1, %2, %cst {dimension_numbers = #tpu.dot_dimension_numbers<[1], [0], [0], [1], [0, 0, 1, 1], [], []>} : vector<200x33xbf16>, vector<33x8xbf16>, vector<200x8xf32> -> vector<200x8xf32>
    %c0_4 = arith.constant 0 : index
    %c0_5 = arith.constant 0 : index
    %4 = vector.load %arg2[%c0_4, %c0_5] : memref<1x8xf32, #tpu.memory_space<vmem>>, vector<1x8xf32>
    %5 = vector.broadcast %4 : vector<1x8xf32> to vector<200x8xf32>
    %6 = arith.addf %3, %5 : vector<200x8xf32>
    %cst_6 = arith.constant 0.000000e+00 : f32
    %7 = vector.broadcast %cst_6 : f32 to vector<200x8xf32>
    %8 = arith.maximumf %6, %7 : vector<200x8xf32>
    %c1 = arith.constant 1 : index
    %c0_7 = arith.constant 0 : index
    %c0_8 = arith.constant 0 : index
    %9 = vector.load %arg0[%c1, %c0_7, %c0_8] : memref<5x200x33xbf16, #tpu.memory_space<vmem>>, vector<1x200x33xbf16>
    %10 = vector.shape_cast %9 : vector<1x200x33xbf16> to vector<200x33xbf16>
    %c0_9 = arith.constant 0 : index
    %c0_10 = arith.constant 0 : index
    %11 = vector.load %arg1[%c0_9, %c0_10] : memref<33x8xbf16, #tpu.memory_space<vmem>>, vector<33x8xbf16>
    %cst_11 = arith.constant dense<0.000000e+00> : vector<200x8xf32>
    %12 = tpu.matmul %10, %11, %cst_11 {dimension_numbers = #tpu.dot_dimension_numbers<[1], [0], [0], [1], [0, 0, 1, 1], [], []>} : vector<200x33xbf16>, vector<33x8xbf16>, vector<200x8xf32> -> vector<200x8xf32>
    %c0_12 = arith.constant 0 : index
    %c0_13 = arith.constant 0 : index
    %13 = vector.load %arg2[%c0_12, %c0_13] : memref<1x8xf32, #tpu.memory_space<vmem>>, vector<1x8xf32>
    %14 = vector.broadcast %13 : vector<1x8xf32> to vector<200x8xf32>
    %15 = arith.addf %12, %14 : vector<200x8xf32>
    %cst_14 = arith.constant 0.000000e+00 : f32
    %16 = vector.broadcast %cst_14 : f32 to vector<200x8xf32>
    %17 = arith.maximumf %15, %16 : vector<200x8xf32>
    %18 = arith.maximumf %8, %17 : vector<200x8xf32>
    %c2 = arith.constant 2 : index
    %c0_15 = arith.constant 0 : index
    %c0_16 = arith.constant 0 : index
    %19 = vector.load %arg0[%c2, %c0_15, %c0_16] : memref<5x200x33xbf16, #tpu.memory_space<vmem>>, vector<1x200x33xbf16>
    %20 = vector.shape_cast %19 : vector<1x200x33xbf16> to vector<200x33xbf16>
    %c0_17 = arith.constant 0 : index
    %c0_18 = arith.constant 0 : index
    %21 = vector.load %arg1[%c0_17, %c0_18] : memref<33x8xbf16, #tpu.memory_space<vmem>>, vector<33x8xbf16>
    %cst_19 = arith.constant dense<0.000000e+00> : vector<200x8xf32>
    %22 = tpu.matmul %20, %21, %cst_19 {dimension_numbers = #tpu.dot_dimension_numbers<[1], [0], [0], [1], [0, 0, 1, 1], [], []>} : vector<200x33xbf16>, vector<33x8xbf16>, vector<200x8xf32> -> vector<200x8xf32>
    %c0_20 = arith.constant 0 : index
    %c0_21 = arith.constant 0 : index
    %23 = vector.load %arg2[%c0_20, %c0_21] : memref<1x8xf32, #tpu.memory_space<vmem>>, vector<1x8xf32>
    %24 = vector.broadcast %23 : vector<1x8xf32> to vector<200x8xf32>
    %25 = arith.addf %22, %24 : vector<200x8xf32>
    %cst_22 = arith.constant 0.000000e+00 : f32
    %26 = vector.broadcast %cst_22 : f32 to vector<200x8xf32>
    %27 = arith.maximumf %25, %26 : vector<200x8xf32>
    %28 = arith.maximumf %18, %27 : vector<200x8xf32>
    %c3 = arith.constant 3 : index
    %c0_23 = arith.constant 0 : index
    %c0_24 = arith.constant 0 : index
    %29 = vector.load %arg0[%c3, %c0_23, %c0_24] : memref<5x200x33xbf16, #tpu.memory_space<vmem>>, vector<1x200x33xbf16>
    %30 = vector.shape_cast %29 : vector<1x200x33xbf16> to vector<200x33xbf16>
    %c0_25 = arith.constant 0 : index
    %c0_26 = arith.constant 0 : index
    %31 = vector.load %arg1[%c0_25, %c0_26] : memref<33x8xbf16, #tpu.memory_space<vmem>>, vector<33x8xbf16>
    %cst_27 = arith.constant dense<0.000000e+00> : vector<200x8xf32>
    %32 = tpu.matmul %30, %31, %cst_27 {dimension_numbers = #tpu.dot_dimension_numbers<[1], [0], [0], [1], [0, 0, 1, 1], [], []>} : vector<200x33xbf16>, vector<33x8xbf16>, vector<200x8xf32> -> vector<200x8xf32>
    %c0_28 = arith.constant 0 : index
    %c0_29 = arith.constant 0 : index
    %33 = vector.load %arg2[%c0_28, %c0_29] : memref<1x8xf32, #tpu.memory_space<vmem>>, vector<1x8xf32>
    %34 = vector.broadcast %33 : vector<1x8xf32> to vector<200x8xf32>
    %35 = arith.addf %32, %34 : vector<200x8xf32>
    %cst_30 = arith.constant 0.000000e+00 : f32
    %36 = vector.broadcast %cst_30 : f32 to vector<200x8xf32>
    %37 = arith.maximumf %35, %36 : vector<200x8xf32>
    %38 = arith.maximumf %28, %37 : vector<200x8xf32>
    %c4 = arith.constant 4 : index
    %c0_31 = arith.constant 0 : index
    %c0_32 = arith.constant 0 : index
    %39 = vector.load %arg0[%c4, %c0_31, %c0_32] : memref<5x200x33xbf16, #tpu.memory_space<vmem>>, vector<1x200x33xbf16>
    %40 = vector.shape_cast %39 : vector<1x200x33xbf16> to vector<200x33xbf16>
    %c0_33 = arith.constant 0 : index
    %c0_34 = arith.constant 0 : index
    %41 = vector.load %arg1[%c0_33, %c0_34] : memref<33x8xbf16, #tpu.memory_space<vmem>>, vector<33x8xbf16>
    %cst_35 = arith.constant dense<0.000000e+00> : vector<200x8xf32>
    %42 = tpu.matmul %40, %41, %cst_35 {dimension_numbers = #tpu.dot_dimension_numbers<[1], [0], [0], [1], [0, 0, 1, 1], [], []>} : vector<200x33xbf16>, vector<33x8xbf16>, vector<200x8xf32> -> vector<200x8xf32>
    %c0_36 = arith.constant 0 : index
    %c0_37 = arith.constant 0 : index
    %43 = vector.load %arg2[%c0_36, %c0_37] : memref<1x8xf32, #tpu.memory_space<vmem>>, vector<1x8xf32>
    %44 = vector.broadcast %43 : vector<1x8xf32> to vector<200x8xf32>
    %45 = arith.addf %42, %44 : vector<200x8xf32>
    %cst_38 = arith.constant 0.000000e+00 : f32
    %46 = vector.broadcast %cst_38 : f32 to vector<200x8xf32>
    %47 = arith.maximumf %45, %46 : vector<200x8xf32>
    %48 = arith.maximumf %38, %47 : vector<200x8xf32>
    %c0_39 = arith.constant 0 : index
    %c0_40 = arith.constant 0 : index
    %49 = vector.load %arg3[%c0_39, %c0_40] : memref<200x8xf32, #tpu.memory_space<vmem>>, vector<200x8xf32>
    tpu.vector_store %arg3[%c0_39, %c0_40], %48 {strides = array<i32>} : memref<200x8xf32, #tpu.memory_space<vmem>>, vector<200x8xf32>,
    return
  }
}

module attributes {stable_mosaic.version = 11 : i64} {
  func.func @_gemm_bias_kernel(%arg0: i32, %arg1: memref<200x144xbf16, #tpu.memory_space<vmem>>, %arg2: memref<144x16xbf16, #tpu.memory_space<vmem>>, %arg3: memref<1x16xf32, #tpu.memory_space<vmem>>, %arg4: memref<200x16xf32, #tpu.memory_space<vmem>>) attributes {dimension_semantics = [#tpu.dimension_semantics<parallel>], iteration_bounds = array<i64: 1>, scalar_prefetch = 0 : i64, scratch_operands = 0 : i64, tpu.core_type = #tpu.core_type<tc>, window_params = [{transform_indices = @transform_0, window_bounds = array<i64: 200, 144>}, {pipeline_mode = #tpu.pipeline_mode<synchronous>, transform_indices = @transform_1, window_bounds = array<i64: 144, 16>}, {pipeline_mode = #tpu.pipeline_mode<synchronous>, transform_indices = @transform_2, window_bounds = array<i64: 1, 16>}, {transform_indices = @transform_3, window_bounds = array<i64: 200, 16>}]} {
    %c0 = arith.constant 0 : index
    %c0_0 = arith.constant 0 : index
    %0 = vector.load %arg1[%c0, %c0_0] : memref<200x144xbf16, #tpu.memory_space<vmem>>, vector<200x144xbf16>
    %c0_1 = arith.constant 0 : index
    %c0_2 = arith.constant 0 : index
    %1 = vector.load %arg2[%c0_1, %c0_2] : memref<144x16xbf16, #tpu.memory_space<vmem>>, vector<144x16xbf16>
    %cst = arith.constant dense<0.000000e+00> : vector<200x16xf32>
    %2 = tpu.matmul %0, %1, %cst {dimension_numbers = #tpu.dot_dimension_numbers<[1], [0], [0], [1], [0, 0, 1, 1], [], []>} : vector<200x144xbf16>, vector<144x16xbf16>, vector<200x16xf32> -> vector<200x16xf32>
    %c0_3 = arith.constant 0 : index
    %c0_4 = arith.constant 0 : index
    %3 = vector.load %arg3[%c0_3, %c0_4] : memref<1x16xf32, #tpu.memory_space<vmem>>, vector<1x16xf32>
    %4 = vector.broadcast %3 : vector<1x16xf32> to vector<200x16xf32>
    %5 = arith.addf %2, %4 : vector<200x16xf32>
    %cst_5 = arith.constant 0.000000e+00 : f32
    %6 = vector.broadcast %cst_5 : f32 to vector<200x16xf32>
    %7 = arith.maximumf %5, %6 : vector<200x16xf32>
    %c0_6 = arith.constant 0 : index
    %c0_7 = arith.constant 0 : index
    %8 = vector.load %arg4[%c0_6, %c0_7] : memref<200x16xf32, #tpu.memory_space<vmem>>, vector<200x16xf32>
    tpu.vector_store %arg4[%c0_6, %c0_7], %7 {strides = array<i32>} : memref<200x16xf32, #tpu.memory_space<vmem>>, vector<200x16xf32>,
    return
  }
  func.func @transform_0(%arg0: i32) -> (i32, i32) {
    %c0_i32 = arith.constant 0 : i32
    %c0_i32_0 = arith.constant 0 : i32
    return %arg0, %c0_i32 : i32, i32
  }
  func.func @transform_1(%arg0: i32) -> (i32, i32) {
    %c0_i32 = arith.constant 0 : i32
    %c0_i32_0 = arith.constant 0 : i32
    %c0_i32_1 = arith.constant 0 : i32
    return %c0_i32, %c0_i32_0 : i32, i32
  }
  func.func @transform_2(%arg0: i32) -> (i32, i32) {
    %c0_i32 = arith.constant 0 : i32
    %c0_i32_0 = arith.constant 0 : i32
    %c0_i32_1 = arith.constant 0 : i32
    return %c0_i32, %c0_i32_0 : i32, i32
  }
  func.func @transform_3(%arg0: i32) -> (i32, i32) {
    %c0_i32 = arith.constant 0 : i32
    %c0_i32_0 = arith.constant 0 : i32
    return %arg0, %c0_i32 : i32, i32
  }
}

module attributes {stable_mosaic.version = 11 : i64} {
  func.func @_gemm_bias_kernel(%arg0: i32, %arg1: memref<200x16xbf16, #tpu.memory_space<vmem>>, %arg2: memref<16x16xbf16, #tpu.memory_space<vmem>>, %arg3: memref<1x16xf32, #tpu.memory_space<vmem>>, %arg4: memref<200x16xf32, #tpu.memory_space<vmem>>) attributes {dimension_semantics = [#tpu.dimension_semantics<parallel>], iteration_bounds = array<i64: 1>, scalar_prefetch = 0 : i64, scratch_operands = 0 : i64, tpu.core_type = #tpu.core_type<tc>, window_params = [{transform_indices = @transform_0, window_bounds = array<i64: 200, 16>}, {pipeline_mode = #tpu.pipeline_mode<synchronous>, transform_indices = @transform_1, window_bounds = array<i64: 16, 16>}, {pipeline_mode = #tpu.pipeline_mode<synchronous>, transform_indices = @transform_2, window_bounds = array<i64: 1, 16>}, {transform_indices = @transform_3, window_bounds = array<i64: 200, 16>}]} {
    %c0 = arith.constant 0 : index
    %c0_0 = arith.constant 0 : index
    %0 = vector.load %arg1[%c0, %c0_0] : memref<200x16xbf16, #tpu.memory_space<vmem>>, vector<200x16xbf16>
    %c0_1 = arith.constant 0 : index
    %c0_2 = arith.constant 0 : index
    %1 = vector.load %arg2[%c0_1, %c0_2] : memref<16x16xbf16, #tpu.memory_space<vmem>>, vector<16x16xbf16>
    %cst = arith.constant dense<0.000000e+00> : vector<200x16xf32>
    %2 = tpu.matmul %0, %1, %cst {dimension_numbers = #tpu.dot_dimension_numbers<[1], [0], [0], [1], [0, 0, 1, 1], [], []>} : vector<200x16xbf16>, vector<16x16xbf16>, vector<200x16xf32> -> vector<200x16xf32>
    %c0_3 = arith.constant 0 : index
    %c0_4 = arith.constant 0 : index
    %3 = vector.load %arg3[%c0_3, %c0_4] : memref<1x16xf32, #tpu.memory_space<vmem>>, vector<1x16xf32>
    %4 = vector.broadcast %3 : vector<1x16xf32> to vector<200x16xf32>
    %5 = arith.addf %2, %4 : vector<200x16xf32>
    %c0_5 = arith.constant 0 : index
    %c0_6 = arith.constant 0 : index
    %6 = vector.load %arg4[%c0_5, %c0_6] : memref<200x16xf32, #tpu.memory_space<vmem>>, vector<200x16xf32>
    tpu.vector_store %arg4[%c0_5, %c0_6], %5 {strides = array<i32>} : memref<200x16xf32, #tpu.memory_space<vmem>>, vector<200x16xf32>,
    return
  }
  func.func @transform_0(%arg0: i32) -> (i32, i32) {
    %c0_i32 = arith.constant 0 : i32
    %c0_i32_0 = arith.constant 0 : i32
    return %arg0, %c0_i32 : i32, i32
  }
  func.func @transform_1(%arg0: i32) -> (i32, i32) {
    %c0_i32 = arith.constant 0 : i32
    %c0_i32_0 = arith.constant 0 : i32
    %c0_i32_1 = arith.constant 0 : i32
    return %c0_i32, %c0_i32_0 : i32, i32
  }
  func.func @transform_2(%arg0: i32) -> (i32, i32) {
    %c0_i32 = arith.constant 0 : i32
    %c0_i32_0 = arith.constant 0 : i32
    %c0_i32_1 = arith.constant 0 : i32
    return %c0_i32, %c0_i32_0 : i32, i32
  }
  func.func @transform_3(%arg0: i32) -> (i32, i32) {
    %c0_i32 = arith.constant 0 : i32
    %c0_i32_0 = arith.constant 0 : i32
    return %arg0, %c0_i32 : i32, i32
  }
}

module attributes {stable_mosaic.version = 11 : i64} {
  func.func @_gemm_bias_res_kernel(%arg0: i32, %arg1: memref<200x144xbf16, #tpu.memory_space<vmem>>, %arg2: memref<144x16xbf16, #tpu.memory_space<vmem>>, %arg3: memref<1x16xf32, #tpu.memory_space<vmem>>, %arg4: memref<200x16xf32, #tpu.memory_space<vmem>>, %arg5: memref<200x16xf32, #tpu.memory_space<vmem>>) attributes {dimension_semantics = [#tpu.dimension_semantics<parallel>], iteration_bounds = array<i64: 1>, scalar_prefetch = 0 : i64, scratch_operands = 0 : i64, tpu.core_type = #tpu.core_type<tc>, window_params = [{transform_indices = @transform_0, window_bounds = array<i64: 200, 144>}, {pipeline_mode = #tpu.pipeline_mode<synchronous>, transform_indices = @transform_1, window_bounds = array<i64: 144, 16>}, {pipeline_mode = #tpu.pipeline_mode<synchronous>, transform_indices = @transform_2, window_bounds = array<i64: 1, 16>}, {transform_indices = @transform_3, window_bounds = array<i64: 200, 16>}, {transform_indices = @transform_4, window_bounds = array<i64: 200, 16>}]} {
    %c0 = arith.constant 0 : index
    %c0_0 = arith.constant 0 : index
    %0 = vector.load %arg1[%c0, %c0_0] : memref<200x144xbf16, #tpu.memory_space<vmem>>, vector<200x144xbf16>
    %c0_1 = arith.constant 0 : index
    %c0_2 = arith.constant 0 : index
    %1 = vector.load %arg2[%c0_1, %c0_2] : memref<144x16xbf16, #tpu.memory_space<vmem>>, vector<144x16xbf16>
    %cst = arith.constant dense<0.000000e+00> : vector<200x16xf32>
    %2 = tpu.matmul %0, %1, %cst {dimension_numbers = #tpu.dot_dimension_numbers<[1], [0], [0], [1], [0, 0, 1, 1], [], []>} : vector<200x144xbf16>, vector<144x16xbf16>, vector<200x16xf32> -> vector<200x16xf32>
    %c0_3 = arith.constant 0 : index
    %c0_4 = arith.constant 0 : index
    %3 = vector.load %arg3[%c0_3, %c0_4] : memref<1x16xf32, #tpu.memory_space<vmem>>, vector<1x16xf32>
    %4 = vector.broadcast %3 : vector<1x16xf32> to vector<200x16xf32>
    %5 = arith.addf %2, %4 : vector<200x16xf32>
    %c0_5 = arith.constant 0 : index
    %c0_6 = arith.constant 0 : index
    %6 = vector.load %arg4[%c0_5, %c0_6] : memref<200x16xf32, #tpu.memory_space<vmem>>, vector<200x16xf32>
    %7 = arith.addf %5, %6 : vector<200x16xf32>
    %cst_7 = arith.constant 0.000000e+00 : f32
    %8 = vector.broadcast %cst_7 : f32 to vector<200x16xf32>
    %9 = arith.maximumf %7, %8 : vector<200x16xf32>
    %c0_8 = arith.constant 0 : index
    %c0_9 = arith.constant 0 : index
    %10 = vector.load %arg5[%c0_8, %c0_9] : memref<200x16xf32, #tpu.memory_space<vmem>>, vector<200x16xf32>
    tpu.vector_store %arg5[%c0_8, %c0_9], %9 {strides = array<i32>} : memref<200x16xf32, #tpu.memory_space<vmem>>, vector<200x16xf32>,
    return
  }
  func.func @transform_0(%arg0: i32) -> (i32, i32) {
    %c0_i32 = arith.constant 0 : i32
    %c0_i32_0 = arith.constant 0 : i32
    return %arg0, %c0_i32 : i32, i32
  }
  func.func @transform_1(%arg0: i32) -> (i32, i32) {
    %c0_i32 = arith.constant 0 : i32
    %c0_i32_0 = arith.constant 0 : i32
    %c0_i32_1 = arith.constant 0 : i32
    return %c0_i32, %c0_i32_0 : i32, i32
  }
  func.func @transform_2(%arg0: i32) -> (i32, i32) {
    %c0_i32 = arith.constant 0 : i32
    %c0_i32_0 = arith.constant 0 : i32
    %c0_i32_1 = arith.constant 0 : i32
    return %c0_i32, %c0_i32_0 : i32, i32
  }
  func.func @transform_3(%arg0: i32) -> (i32, i32) {
    %c0_i32 = arith.constant 0 : i32
    %c0_i32_0 = arith.constant 0 : i32
    return %arg0, %c0_i32 : i32, i32
  }
  func.func @transform_4(%arg0: i32) -> (i32, i32) {
    %c0_i32 = arith.constant 0 : i32
    %c0_i32_0 = arith.constant 0 : i32
    return %arg0, %c0_i32 : i32, i32
  }
}

module attributes {stable_mosaic.version = 11 : i64} {
  func.func @_gemm_bias_kernel(%arg0: i32, %arg1: memref<50x144xbf16, #tpu.memory_space<vmem>>, %arg2: memref<144x32xbf16, #tpu.memory_space<vmem>>, %arg3: memref<1x32xf32, #tpu.memory_space<vmem>>, %arg4: memref<50x32xf32, #tpu.memory_space<vmem>>) attributes {dimension_semantics = [#tpu.dimension_semantics<parallel>], iteration_bounds = array<i64: 1>, scalar_prefetch = 0 : i64, scratch_operands = 0 : i64, tpu.core_type = #tpu.core_type<tc>, window_params = [{transform_indices = @transform_0, window_bounds = array<i64: 50, 144>}, {pipeline_mode = #tpu.pipeline_mode<synchronous>, transform_indices = @transform_1, window_bounds = array<i64: 144, 32>}, {pipeline_mode = #tpu.pipeline_mode<synchronous>, transform_indices = @transform_2, window_bounds = array<i64: 1, 32>}, {transform_indices = @transform_3, window_bounds = array<i64: 50, 32>}]} {
    %c0 = arith.constant 0 : index
    %c0_0 = arith.constant 0 : index
    %0 = vector.load %arg1[%c0, %c0_0] : memref<50x144xbf16, #tpu.memory_space<vmem>>, vector<50x144xbf16>
    %c0_1 = arith.constant 0 : index
    %c0_2 = arith.constant 0 : index
    %1 = vector.load %arg2[%c0_1, %c0_2] : memref<144x32xbf16, #tpu.memory_space<vmem>>, vector<144x32xbf16>
    %cst = arith.constant dense<0.000000e+00> : vector<50x32xf32>
    %2 = tpu.matmul %0, %1, %cst {dimension_numbers = #tpu.dot_dimension_numbers<[1], [0], [0], [1], [0, 0, 1, 1], [], []>} : vector<50x144xbf16>, vector<144x32xbf16>, vector<50x32xf32> -> vector<50x32xf32>
    %c0_3 = arith.constant 0 : index
    %c0_4 = arith.constant 0 : index
    %3 = vector.load %arg3[%c0_3, %c0_4] : memref<1x32xf32, #tpu.memory_space<vmem>>, vector<1x32xf32>
    %4 = vector.broadcast %3 : vector<1x32xf32> to vector<50x32xf32>
    %5 = arith.addf %2, %4 : vector<50x32xf32>
    %cst_5 = arith.constant 0.000000e+00 : f32
    %6 = vector.broadcast %cst_5 : f32 to vector<50x32xf32>
    %7 = arith.maximumf %5, %6 : vector<50x32xf32>
    %c0_6 = arith.constant 0 : index
    %c0_7 = arith.constant 0 : index
    %8 = vector.load %arg4[%c0_6, %c0_7] : memref<50x32xf32, #tpu.memory_space<vmem>>, vector<50x32xf32>
    tpu.vector_store %arg4[%c0_6, %c0_7], %7 {strides = array<i32>} : memref<50x32xf32, #tpu.memory_space<vmem>>, vector<50x32xf32>,
    return
  }
  func.func @transform_0(%arg0: i32) -> (i32, i32) {
    %c0_i32 = arith.constant 0 : i32
    %c0_i32_0 = arith.constant 0 : i32
    return %arg0, %c0_i32 : i32, i32
  }
  func.func @transform_1(%arg0: i32) -> (i32, i32) {
    %c0_i32 = arith.constant 0 : i32
    %c0_i32_0 = arith.constant 0 : i32
    %c0_i32_1 = arith.constant 0 : i32
    return %c0_i32, %c0_i32_0 : i32, i32
  }
  func.func @transform_2(%arg0: i32) -> (i32, i32) {
    %c0_i32 = arith.constant 0 : i32
    %c0_i32_0 = arith.constant 0 : i32
    %c0_i32_1 = arith.constant 0 : i32
    return %c0_i32, %c0_i32_0 : i32, i32
  }
  func.func @transform_3(%arg0: i32) -> (i32, i32) {
    %c0_i32 = arith.constant 0 : i32
    %c0_i32_0 = arith.constant 0 : i32
    return %arg0, %c0_i32 : i32, i32
  }
}

module attributes {stable_mosaic.version = 11 : i64} {
  func.func @_gemm_bias_kernel(%arg0: i32, %arg1: memref<50x16xbf16, #tpu.memory_space<vmem>>, %arg2: memref<16x32xbf16, #tpu.memory_space<vmem>>, %arg3: memref<1x32xf32, #tpu.memory_space<vmem>>, %arg4: memref<50x32xf32, #tpu.memory_space<vmem>>) attributes {dimension_semantics = [#tpu.dimension_semantics<parallel>], iteration_bounds = array<i64: 1>, scalar_prefetch = 0 : i64, scratch_operands = 0 : i64, tpu.core_type = #tpu.core_type<tc>, window_params = [{transform_indices = @transform_0, window_bounds = array<i64: 50, 16>}, {pipeline_mode = #tpu.pipeline_mode<synchronous>, transform_indices = @transform_1, window_bounds = array<i64: 16, 32>}, {pipeline_mode = #tpu.pipeline_mode<synchronous>, transform_indices = @transform_2, window_bounds = array<i64: 1, 32>}, {transform_indices = @transform_3, window_bounds = array<i64: 50, 32>}]} {
    %c0 = arith.constant 0 : index
    %c0_0 = arith.constant 0 : index
    %0 = vector.load %arg1[%c0, %c0_0] : memref<50x16xbf16, #tpu.memory_space<vmem>>, vector<50x16xbf16>
    %c0_1 = arith.constant 0 : index
    %c0_2 = arith.constant 0 : index
    %1 = vector.load %arg2[%c0_1, %c0_2] : memref<16x32xbf16, #tpu.memory_space<vmem>>, vector<16x32xbf16>
    %cst = arith.constant dense<0.000000e+00> : vector<50x32xf32>
    %2 = tpu.matmul %0, %1, %cst {dimension_numbers = #tpu.dot_dimension_numbers<[1], [0], [0], [1], [0, 0, 1, 1], [], []>} : vector<50x16xbf16>, vector<16x32xbf16>, vector<50x32xf32> -> vector<50x32xf32>
    %c0_3 = arith.constant 0 : index
    %c0_4 = arith.constant 0 : index
    %3 = vector.load %arg3[%c0_3, %c0_4] : memref<1x32xf32, #tpu.memory_space<vmem>>, vector<1x32xf32>
    %4 = vector.broadcast %3 : vector<1x32xf32> to vector<50x32xf32>
    %5 = arith.addf %2, %4 : vector<50x32xf32>
    %c0_5 = arith.constant 0 : index
    %c0_6 = arith.constant 0 : index
    %6 = vector.load %arg4[%c0_5, %c0_6] : memref<50x32xf32, #tpu.memory_space<vmem>>, vector<50x32xf32>
    tpu.vector_store %arg4[%c0_5, %c0_6], %5 {strides = array<i32>} : memref<50x32xf32, #tpu.memory_space<vmem>>, vector<50x32xf32>,
    return
  }
  func.func @transform_0(%arg0: i32) -> (i32, i32) {
    %c0_i32 = arith.constant 0 : i32
    %c0_i32_0 = arith.constant 0 : i32
    return %arg0, %c0_i32 : i32, i32
  }
  func.func @transform_1(%arg0: i32) -> (i32, i32) {
    %c0_i32 = arith.constant 0 : i32
    %c0_i32_0 = arith.constant 0 : i32
    %c0_i32_1 = arith.constant 0 : i32
    return %c0_i32, %c0_i32_0 : i32, i32
  }
  func.func @transform_2(%arg0: i32) -> (i32, i32) {
    %c0_i32 = arith.constant 0 : i32
    %c0_i32_0 = arith.constant 0 : i32
    %c0_i32_1 = arith.constant 0 : i32
    return %c0_i32, %c0_i32_0 : i32, i32
  }
  func.func @transform_3(%arg0: i32) -> (i32, i32) {
    %c0_i32 = arith.constant 0 : i32
    %c0_i32_0 = arith.constant 0 : i32
    return %arg0, %c0_i32 : i32, i32
  }
}

module attributes {stable_mosaic.version = 11 : i64} {
  func.func @_gemm_bias_res_kernel(%arg0: i32, %arg1: memref<50x288xbf16, #tpu.memory_space<vmem>>, %arg2: memref<288x32xbf16, #tpu.memory_space<vmem>>, %arg3: memref<1x32xf32, #tpu.memory_space<vmem>>, %arg4: memref<50x32xf32, #tpu.memory_space<vmem>>, %arg5: memref<50x32xf32, #tpu.memory_space<vmem>>) attributes {dimension_semantics = [#tpu.dimension_semantics<parallel>], iteration_bounds = array<i64: 1>, scalar_prefetch = 0 : i64, scratch_operands = 0 : i64, tpu.core_type = #tpu.core_type<tc>, window_params = [{transform_indices = @transform_0, window_bounds = array<i64: 50, 288>}, {pipeline_mode = #tpu.pipeline_mode<synchronous>, transform_indices = @transform_1, window_bounds = array<i64: 288, 32>}, {pipeline_mode = #tpu.pipeline_mode<synchronous>, transform_indices = @transform_2, window_bounds = array<i64: 1, 32>}, {transform_indices = @transform_3, window_bounds = array<i64: 50, 32>}, {transform_indices = @transform_4, window_bounds = array<i64: 50, 32>}]} {
    %c0 = arith.constant 0 : index
    %c0_0 = arith.constant 0 : index
    %0 = vector.load %arg1[%c0, %c0_0] : memref<50x288xbf16, #tpu.memory_space<vmem>>, vector<50x288xbf16>
    %c0_1 = arith.constant 0 : index
    %c0_2 = arith.constant 0 : index
    %1 = vector.load %arg2[%c0_1, %c0_2] : memref<288x32xbf16, #tpu.memory_space<vmem>>, vector<288x32xbf16>
    %cst = arith.constant dense<0.000000e+00> : vector<50x32xf32>
    %2 = tpu.matmul %0, %1, %cst {dimension_numbers = #tpu.dot_dimension_numbers<[1], [0], [0], [1], [0, 0, 1, 1], [], []>} : vector<50x288xbf16>, vector<288x32xbf16>, vector<50x32xf32> -> vector<50x32xf32>
    %c0_3 = arith.constant 0 : index
    %c0_4 = arith.constant 0 : index
    %3 = vector.load %arg3[%c0_3, %c0_4] : memref<1x32xf32, #tpu.memory_space<vmem>>, vector<1x32xf32>
    %4 = vector.broadcast %3 : vector<1x32xf32> to vector<50x32xf32>
    %5 = arith.addf %2, %4 : vector<50x32xf32>
    %c0_5 = arith.constant 0 : index
    %c0_6 = arith.constant 0 : index
    %6 = vector.load %arg4[%c0_5, %c0_6] : memref<50x32xf32, #tpu.memory_space<vmem>>, vector<50x32xf32>
    %7 = arith.addf %5, %6 : vector<50x32xf32>
    %cst_7 = arith.constant 0.000000e+00 : f32
    %8 = vector.broadcast %cst_7 : f32 to vector<50x32xf32>
    %9 = arith.maximumf %7, %8 : vector<50x32xf32>
    %c0_8 = arith.constant 0 : index
    %c0_9 = arith.constant 0 : index
    %10 = vector.load %arg5[%c0_8, %c0_9] : memref<50x32xf32, #tpu.memory_space<vmem>>, vector<50x32xf32>
    tpu.vector_store %arg5[%c0_8, %c0_9], %9 {strides = array<i32>} : memref<50x32xf32, #tpu.memory_space<vmem>>, vector<50x32xf32>,
    return
  }
  func.func @transform_0(%arg0: i32) -> (i32, i32) {
    %c0_i32 = arith.constant 0 : i32
    %c0_i32_0 = arith.constant 0 : i32
    return %arg0, %c0_i32 : i32, i32
  }
  func.func @transform_1(%arg0: i32) -> (i32, i32) {
    %c0_i32 = arith.constant 0 : i32
    %c0_i32_0 = arith.constant 0 : i32
    %c0_i32_1 = arith.constant 0 : i32
    return %c0_i32, %c0_i32_0 : i32, i32
  }
  func.func @transform_2(%arg0: i32) -> (i32, i32) {
    %c0_i32 = arith.constant 0 : i32
    %c0_i32_0 = arith.constant 0 : i32
    %c0_i32_1 = arith.constant 0 : i32
    return %c0_i32, %c0_i32_0 : i32, i32
  }
  func.func @transform_3(%arg0: i32) -> (i32, i32) {
    %c0_i32 = arith.constant 0 : i32
    %c0_i32_0 = arith.constant 0 : i32
    return %arg0, %c0_i32 : i32, i32
  }
  func.func @transform_4(%arg0: i32) -> (i32, i32) {
    %c0_i32 = arith.constant 0 : i32
    %c0_i32_0 = arith.constant 0 : i32
    return %arg0, %c0_i32 : i32, i32
  }
}

module attributes {stable_mosaic.version = 11 : i64} {
  func.func @_gemm_bias_kernel(%arg0: i32, %arg1: memref<18x288xbf16, #tpu.memory_space<vmem>>, %arg2: memref<288x64xbf16, #tpu.memory_space<vmem>>, %arg3: memref<1x64xf32, #tpu.memory_space<vmem>>, %arg4: memref<18x64xf32, #tpu.memory_space<vmem>>) attributes {dimension_semantics = [#tpu.dimension_semantics<parallel>], iteration_bounds = array<i64: 1>, scalar_prefetch = 0 : i64, scratch_operands = 0 : i64, tpu.core_type = #tpu.core_type<tc>, window_params = [{transform_indices = @transform_0, window_bounds = array<i64: 18, 288>}, {pipeline_mode = #tpu.pipeline_mode<synchronous>, transform_indices = @transform_1, window_bounds = array<i64: 288, 64>}, {pipeline_mode = #tpu.pipeline_mode<synchronous>, transform_indices = @transform_2, window_bounds = array<i64: 1, 64>}, {transform_indices = @transform_3, window_bounds = array<i64: 18, 64>}]} {
    %c0 = arith.constant 0 : index
    %c0_0 = arith.constant 0 : index
    %0 = vector.load %arg1[%c0, %c0_0] : memref<18x288xbf16, #tpu.memory_space<vmem>>, vector<18x288xbf16>
    %c0_1 = arith.constant 0 : index
    %c0_2 = arith.constant 0 : index
    %1 = vector.load %arg2[%c0_1, %c0_2] : memref<288x64xbf16, #tpu.memory_space<vmem>>, vector<288x64xbf16>
    %cst = arith.constant dense<0.000000e+00> : vector<18x64xf32>
    %2 = tpu.matmul %0, %1, %cst {dimension_numbers = #tpu.dot_dimension_numbers<[1], [0], [0], [1], [0, 0, 1, 1], [], []>} : vector<18x288xbf16>, vector<288x64xbf16>, vector<18x64xf32> -> vector<18x64xf32>
    %c0_3 = arith.constant 0 : index
    %c0_4 = arith.constant 0 : index
    %3 = vector.load %arg3[%c0_3, %c0_4] : memref<1x64xf32, #tpu.memory_space<vmem>>, vector<1x64xf32>
    %4 = vector.broadcast %3 : vector<1x64xf32> to vector<18x64xf32>
    %5 = arith.addf %2, %4 : vector<18x64xf32>
    %cst_5 = arith.constant 0.000000e+00 : f32
    %6 = vector.broadcast %cst_5 : f32 to vector<18x64xf32>
    %7 = arith.maximumf %5, %6 : vector<18x64xf32>
    %c0_6 = arith.constant 0 : index
    %c0_7 = arith.constant 0 : index
    %8 = vector.load %arg4[%c0_6, %c0_7] : memref<18x64xf32, #tpu.memory_space<vmem>>, vector<18x64xf32>
    tpu.vector_store %arg4[%c0_6, %c0_7], %7 {strides = array<i32>} : memref<18x64xf32, #tpu.memory_space<vmem>>, vector<18x64xf32>,
    return
  }
  func.func @transform_0(%arg0: i32) -> (i32, i32) {
    %c0_i32 = arith.constant 0 : i32
    %c0_i32_0 = arith.constant 0 : i32
    return %arg0, %c0_i32 : i32, i32
  }
  func.func @transform_1(%arg0: i32) -> (i32, i32) {
    %c0_i32 = arith.constant 0 : i32
    %c0_i32_0 = arith.constant 0 : i32
    %c0_i32_1 = arith.constant 0 : i32
    return %c0_i32, %c0_i32_0 : i32, i32
  }
  func.func @transform_2(%arg0: i32) -> (i32, i32) {
    %c0_i32 = arith.constant 0 : i32
    %c0_i32_0 = arith.constant 0 : i32
    %c0_i32_1 = arith.constant 0 : i32
    return %c0_i32, %c0_i32_0 : i32, i32
  }
  func.func @transform_3(%arg0: i32) -> (i32, i32) {
    %c0_i32 = arith.constant 0 : i32
    %c0_i32_0 = arith.constant 0 : i32
    return %arg0, %c0_i32 : i32, i32
  }
}

module attributes {stable_mosaic.version = 11 : i64} {
  func.func @_avgpool_fc_kernel(%arg0: memref<2x9x64xf32, #tpu.memory_space<vmem>>, %arg1: memref<64x6xf32, #tpu.memory_space<vmem>>, %arg2: memref<1x6xf32, #tpu.memory_space<vmem>>, %arg3: memref<2x6xf32, #tpu.memory_space<vmem>>) attributes {dimension_semantics = [], scalar_prefetch = 0 : i64, scratch_operands = 0 : i64, tpu.core_type = #tpu.core_type<tc>} {
    %c0 = arith.constant 0 : index
    %c0_0 = arith.constant 0 : index
    %c0_1 = arith.constant 0 : index
    %0 = vector.load %arg0[%c0, %c0_0, %c0_1] : memref<2x9x64xf32, #tpu.memory_space<vmem>>, vector<2x9x64xf32>
    %cst = arith.constant dense<0.000000e+00> : vector<2x64xf32>
    %1 = vector.multi_reduction <add>, %0, %cst [1] : vector<2x9x64xf32> to vector<2x64xf32>
    %cst_2 = arith.constant 9.000000e+00 : f32
    %2 = vector.broadcast %cst_2 : f32 to vector<2x64xf32>
    %3 = arith.divf %1, %2 : vector<2x64xf32>
    %c0_3 = arith.constant 0 : index
    %c0_4 = arith.constant 0 : index
    %4 = vector.load %arg1[%c0_3, %c0_4] : memref<64x6xf32, #tpu.memory_space<vmem>>, vector<64x6xf32>
    %cst_5 = arith.constant dense<0.000000e+00> : vector<2x6xf32>
    %5 = tpu.matmul %3, %4, %cst_5 {dimension_numbers = #tpu.dot_dimension_numbers<[1], [0], [0], [1], [0, 0, 1, 1], [], []>} : vector<2x64xf32>, vector<64x6xf32>, vector<2x6xf32> -> vector<2x6xf32>
    %c0_6 = arith.constant 0 : index
    %c0_7 = arith.constant 0 : index
    %6 = vector.load %arg2[%c0_6, %c0_7] : memref<1x6xf32, #tpu.memory_space<vmem>>, vector<1x6xf32>
    %7 = vector.broadcast %6 : vector<1x6xf32> to vector<2x6xf32>
    %8 = arith.addf %5, %7 : vector<2x6xf32>
    %c0_8 = arith.constant 0 : index
    %c0_9 = arith.constant 0 : index
    %9 = vector.load %arg3[%c0_8, %c0_9] : memref<2x6xf32, #tpu.memory_space<vmem>>, vector<2x6xf32>
    tpu.vector_store %arg3[%c0_8, %c0_9], %8 {strides = array<i32>} : memref<2x6xf32, #tpu.memory_space<vmem>>, vector<2x6xf32>,
    return
  }
}

module attributes {stable_mosaic.version = 11 : i64} {
  func.func @_gemm_bias_kernel(%arg0: i32, %arg1: memref<18x32xbf16, #tpu.memory_space<vmem>>, %arg2: memref<32x64xbf16, #tpu.memory_space<vmem>>, %arg3: memref<1x64xf32, #tpu.memory_space<vmem>>, %arg4: memref<18x64xf32, #tpu.memory_space<vmem>>) attributes {dimension_semantics = [#tpu.dimension_semantics<parallel>], iteration_bounds = array<i64: 1>, scalar_prefetch = 0 : i64, scratch_operands = 0 : i64, tpu.core_type = #tpu.core_type<tc>, window_params = [{transform_indices = @transform_0, window_bounds = array<i64: 18, 32>}, {pipeline_mode = #tpu.pipeline_mode<synchronous>, transform_indices = @transform_1, window_bounds = array<i64: 32, 64>}, {pipeline_mode = #tpu.pipeline_mode<synchronous>, transform_indices = @transform_2, window_bounds = array<i64: 1, 64>}, {transform_indices = @transform_3, window_bounds = array<i64: 18, 64>}]} {
    %c0 = arith.constant 0 : index
    %c0_0 = arith.constant 0 : index
    %0 = vector.load %arg1[%c0, %c0_0] : memref<18x32xbf16, #tpu.memory_space<vmem>>, vector<18x32xbf16>
    %c0_1 = arith.constant 0 : index
    %c0_2 = arith.constant 0 : index
    %1 = vector.load %arg2[%c0_1, %c0_2] : memref<32x64xbf16, #tpu.memory_space<vmem>>, vector<32x64xbf16>
    %cst = arith.constant dense<0.000000e+00> : vector<18x64xf32>
    %2 = tpu.matmul %0, %1, %cst {dimension_numbers = #tpu.dot_dimension_numbers<[1], [0], [0], [1], [0, 0, 1, 1], [], []>} : vector<18x32xbf16>, vector<32x64xbf16>, vector<18x64xf32> -> vector<18x64xf32>
    %c0_3 = arith.constant 0 : index
    %c0_4 = arith.constant 0 : index
    %3 = vector.load %arg3[%c0_3, %c0_4] : memref<1x64xf32, #tpu.memory_space<vmem>>, vector<1x64xf32>
    %4 = vector.broadcast %3 : vector<1x64xf32> to vector<18x64xf32>
    %5 = arith.addf %2, %4 : vector<18x64xf32>
    %c0_5 = arith.constant 0 : index
    %c0_6 = arith.constant 0 : index
    %6 = vector.load %arg4[%c0_5, %c0_6] : memref<18x64xf32, #tpu.memory_space<vmem>>, vector<18x64xf32>
    tpu.vector_store %arg4[%c0_5, %c0_6], %5 {strides = array<i32>} : memref<18x64xf32, #tpu.memory_space<vmem>>, vector<18x64xf32>,
    return
  }
  func.func @transform_0(%arg0: i32) -> (i32, i32) {
    %c0_i32 = arith.constant 0 : i32
    %c0_i32_0 = arith.constant 0 : i32
    return %arg0, %c0_i32 : i32, i32
  }
  func.func @transform_1(%arg0: i32) -> (i32, i32) {
    %c0_i32 = arith.constant 0 : i32
    %c0_i32_0 = arith.constant 0 : i32
    %c0_i32_1 = arith.constant 0 : i32
    return %c0_i32, %c0_i32_0 : i32, i32
  }
  func.func @transform_2(%arg0: i32) -> (i32, i32) {
    %c0_i32 = arith.constant 0 : i32
    %c0_i32_0 = arith.constant 0 : i32
    %c0_i32_1 = arith.constant 0 : i32
    return %c0_i32, %c0_i32_0 : i32, i32
  }
  func.func @transform_3(%arg0: i32) -> (i32, i32) {
    %c0_i32 = arith.constant 0 : i32
    %c0_i32_0 = arith.constant 0 : i32
    return %arg0, %c0_i32 : i32, i32
  }
}

module attributes {stable_mosaic.version = 11 : i64} {
  func.func @_gemm_bias_res_kernel(%arg0: i32, %arg1: memref<18x576xbf16, #tpu.memory_space<vmem>>, %arg2: memref<576x64xbf16, #tpu.memory_space<vmem>>, %arg3: memref<1x64xf32, #tpu.memory_space<vmem>>, %arg4: memref<18x64xf32, #tpu.memory_space<vmem>>, %arg5: memref<18x64xf32, #tpu.memory_space<vmem>>) attributes {dimension_semantics = [#tpu.dimension_semantics<parallel>], iteration_bounds = array<i64: 1>, scalar_prefetch = 0 : i64, scratch_operands = 0 : i64, tpu.core_type = #tpu.core_type<tc>, window_params = [{transform_indices = @transform_0, window_bounds = array<i64: 18, 576>}, {pipeline_mode = #tpu.pipeline_mode<synchronous>, transform_indices = @transform_1, window_bounds = array<i64: 576, 64>}, {pipeline_mode = #tpu.pipeline_mode<synchronous>, transform_indices = @transform_2, window_bounds = array<i64: 1, 64>}, {transform_indices = @transform_3, window_bounds = array<i64: 18, 64>}, {transform_indices = @transform_4, window_bounds = array<i64: 18, 64>}]} {
    %c0 = arith.constant 0 : index
    %c0_0 = arith.constant 0 : index
    %0 = vector.load %arg1[%c0, %c0_0] : memref<18x576xbf16, #tpu.memory_space<vmem>>, vector<18x576xbf16>
    %c0_1 = arith.constant 0 : index
    %c0_2 = arith.constant 0 : index
    %1 = vector.load %arg2[%c0_1, %c0_2] : memref<576x64xbf16, #tpu.memory_space<vmem>>, vector<576x64xbf16>
    %cst = arith.constant dense<0.000000e+00> : vector<18x64xf32>
    %2 = tpu.matmul %0, %1, %cst {dimension_numbers = #tpu.dot_dimension_numbers<[1], [0], [0], [1], [0, 0, 1, 1], [], []>} : vector<18x576xbf16>, vector<576x64xbf16>, vector<18x64xf32> -> vector<18x64xf32>
    %c0_3 = arith.constant 0 : index
    %c0_4 = arith.constant 0 : index
    %3 = vector.load %arg3[%c0_3, %c0_4] : memref<1x64xf32, #tpu.memory_space<vmem>>, vector<1x64xf32>
    %4 = vector.broadcast %3 : vector<1x64xf32> to vector<18x64xf32>
    %5 = arith.addf %2, %4 : vector<18x64xf32>
    %c0_5 = arith.constant 0 : index
    %c0_6 = arith.constant 0 : index
    %6 = vector.load %arg4[%c0_5, %c0_6] : memref<18x64xf32, #tpu.memory_space<vmem>>, vector<18x64xf32>
    %7 = arith.addf %5, %6 : vector<18x64xf32>
    %cst_7 = arith.constant 0.000000e+00 : f32
    %8 = vector.broadcast %cst_7 : f32 to vector<18x64xf32>
    %9 = arith.maximumf %7, %8 : vector<18x64xf32>
    %c0_8 = arith.constant 0 : index
    %c0_9 = arith.constant 0 : index
    %10 = vector.load %arg5[%c0_8, %c0_9] : memref<18x64xf32, #tpu.memory_space<vmem>>, vector<18x64xf32>
    tpu.vector_store %arg5[%c0_8, %c0_9], %9 {strides = array<i32>} : memref<18x64xf32, #tpu.memory_space<vmem>>, vector<18x64xf32>,
    return
  }
  func.func @transform_0(%arg0: i32) -> (i32, i32) {
    %c0_i32 = arith.constant 0 : i32
    %c0_i32_0 = arith.constant 0 : i32
    return %arg0, %c0_i32 : i32, i32
  }
  func.func @transform_1(%arg0: i32) -> (i32, i32) {
    %c0_i32 = arith.constant 0 : i32
    %c0_i32_0 = arith.constant 0 : i32
    %c0_i32_1 = arith.constant 0 : i32
    return %c0_i32, %c0_i32_0 : i32, i32
  }
  func.func @transform_2(%arg0: i32) -> (i32, i32) {
    %c0_i32 = arith.constant 0 : i32
    %c0_i32_0 = arith.constant 0 : i32
    %c0_i32_1 = arith.constant 0 : i32
    return %c0_i32, %c0_i32_0 : i32, i32
  }
  func.func @transform_3(%arg0: i32) -> (i32, i32) {
    %c0_i32 = arith.constant 0 : i32
    %c0_i32_0 = arith.constant 0 : i32
    return %arg0, %c0_i32 : i32, i32
  }
  func.func @transform_4(%arg0: i32) -> (i32, i32) {
    %c0_i32 = arith.constant 0 : i32
    %c0_i32_0 = arith.constant 0 : i32
    return %arg0, %c0_i32 : i32, i32
  }
}

</mosaic_0001>

<bundles_post_ra>
// kernel: resnet_forward.13
= control target key start
LH: loop header
LB: loop body
LE: loop exit
PB: predicated region body
PF: predicated region fallthrough
CT: control target
= control target key end

     0   :  { %vm170_vm0 = vcmask 1040384   ;;  %v2305_v0 = vmov 0.0   ;;  %v2306_v2 = vmov 0   ;;  %vm2307_vm1 = vmmov 0   ;;  %s3154_s1 = inlined_call_operand.vmem [shape: bf16[33,8], index: 1, kind: input, shape index: {}]   ;;  %s3155_s0 = inlined_call_operand.vmem [shape: bf16[5,200,33], index: 0, kind: input, shape index: {}]   ;;  %s3156_s2 = inlined_call_operand.vmem [shape: f32[1,8], index: 2, kind: input, shape index: {}]   ;;  %s3157_s3 = inlined_call_operand.vmem [shape: f32[200,8], index: 3, kind: output, shape index: {}]  }
   0x1   :  { %1937 = vmatprep.subr.bf16.mxu0 %v2305_v0  ;;  %2227 = vmatprep.subr.bf16.mxu1 %v2305_v0  ;;  %v2236_v1 = vld [vmem:[%s3154_s1 + $0x10] ss:$0 sps:$4 sm:$0x11]   ;;  %v172_v3 = vsel %vm170_vm0, 65535, %v2306_v2  ;;  %v2344_v5 = vld [vmem:[%s3154_s1 + $0x8] sm:$0xff]   ;;  %v2353_v6 = vld [vmem:[%s3154_s1] sm:$0xff]  }
   0x2   :  { %1943 = vmatprep.mubr.msk.bf16.mxu0 %vm2307_vm1, %v2305_v0  ;;  %1971 = vmatprep.mubr.msk.bf16.mxu1 %vm2307_vm1, %v2305_v0  ;;  %v2337_v4 = vand.u32 %v2236_v1, %v172_v3  ;;  %v2239_v7 = vld [vmem:[%s3155_s0] sm:$0xff]   ;;  %v2240_v8 = vld [vmem:[%s3155_s0 + $0x38] sm:$0xff]   ;;  %vm130_vm2 = vcmask 269312   ;;  %v2241_v9 = vld [vmem:[%s3155_s0 + $0x8] sm:$0xff]   ;;  %vm1593_vm3 = vcmask 64512  }
   0x3   :  { %v2242_v10 = vld [vmem:[%s3155_s0 + $0x40] sm:$0xff]   ;;  %v2243_v11 = vld [vmem:[%s3155_s0 + $0x10] sm:$0xff]   ;;  %v2244_v12 = vld [vmem:[%s3155_s0 + $0x48] sm:$0xff]  }
   0x4   :  { %1938 = vmatpush3.bf16.msra.mxu0 %v2337_v4  ;;  %2230 = vmatpush3.bf16.msra.mxu1 %v2337_v4  ;;  %v2245_v13 = vld [vmem:[%s3155_s0 + $0x18] sm:$0xff]   ;;  %v2246_v14 = vld [vmem:[%s3155_s0 + $0x50] sm:$0xff]   ;;  %v2247_v15 = vld [vmem:[%s3155_s0 + $0x20] sm:$0xff]  }
   0x5   :  { %1939 = vmatprep.subr.bf16.mxu0 %v2305_v0  ;;  %2228 = vmatprep.subr.bf16.mxu1 %v2305_v0  ;;  %v2248_v16 = vld [vmem:[%s3155_s0 + $0x58] sm:$0xff]   ;;  %v2249_v17 = vld [vmem:[%s3155_s0 + $0x28] sm:$0xff]   ;;  %v2250_v18 = vld [vmem:[%s3155_s0 + $0x60] ss:$0 sps:$4 sm:$0xff]  }
   0x6   :  { %v2251_v19 = vld [vmem:[%s3155_s0 + $0x30] sm:$0xff]   ;;  %v2252_v20 = vld [vmem:[%s3155_s0 + $0x64] sm:$0xff]   ;;  %v2257_v25 = vld [vmem:[%s3155_s0 + $0x7c] sm:$0xff]  }
   0x7   :  { %v2253_v21 = vld [vmem:[%s3155_s0 + $0x6c] sm:$0xff]   ;;  %v2255_v23 = vld [vmem:[%s3155_s0 + $0x74] sm:$0xff]   ;;  %v2259_v27 = vld [vmem:[%s3155_s0 + $0x84] sm:$0xff]  }
   0x8   :  { %1940 = vmatpush3.bf16.msra.mxu0 %v2344_v5  ;;  %2231 = vmatpush3.bf16.msra.mxu1 %v2344_v5  ;;  %v2254_v22 = vld [vmem:[%s3155_s0 + $0xc8] sm:$0xff]   ;;  %v2256_v24 = vld [vmem:[%s3155_s0 + $0xd0] sm:$0xff]   ;;  %v2258_v26 = vld [vmem:[%s3155_s0 + $0xd8] sm:$0xff]  }
   0x9   :  { %1941 = vmatprep.subr.bf16.mxu0 %v2305_v0  ;;  %2229 = vmatprep.subr.bf16.mxu1 %v2305_v0  ;;  %v2260_v28 = vld [vmem:[%s3155_s0 + $0xe0] sm:$0xff]   ;;  %v2261_v29 = vld [vmem:[%s3155_s0 + $0x8c] sm:$0xff]   ;;  %v2263_v31 = vld [vmem:[%s3155_s0 + $0x94] sm:$0xff]  }
   0xa   :  { %v2262_v30 = vld [vmem:[%s3155_s0 + $0xe8] sm:$0xff]   ;;  %v2264_v32 = vld [vmem:[%s3155_s0 + $0xf0] sm:$0xff]   ;;  %v2265_v33 = vld [vmem:[%s3155_s0 + $0x9c] sm:$0xff]  }
   0xb   :  { %v2266_v34 = vld [vmem:[%s3155_s0 + $0xf8] sm:$0xff]   ;;  %v2267_v35 = vld [vmem:[%s3155_s0 + $0xa4] sm:$0xff]   ;;  %v2269_v37 = vld [vmem:[%s3155_s0 + $0xac] sm:$0xff]  }
   0xc   :  { %1942 = vmatpush3.bf16.msra.mxu0 %v2353_v6  ;;  %2232 = vmatpush3.bf16.msra.mxu1 %v2353_v6  ;;  %v2268_v36 = vld [vmem:[%s3155_s0 + $0x100] sm:$0xff]   ;;  %v2270_v38 = vld [vmem:[%s3155_s0 + $0x108] sm:$0xff]   ;;  %v2271_v39 = vld [vmem:[%s3155_s0 + $0xb4] sm:$0xff]  }
   0xd   :  { %2053 = vmatprep.subr.bf16.mxu0 %v2305_v0  ;;  %1995 = vmatprep.subr.bf16.mxu1 %v2305_v0  ;;  %v2272_v40 = vld [vmem:[%s3155_s0 + $0x110] sm:$0xff]   ;;  %v2273_v41 = vld [vmem:[%s3155_s0 + $0xbc] sm:$0xff]   ;;  %v2275_v43 = vld [vmem:[%s3155_s0 + $0xc4] ss:$0 sps:$4 sm:$0xff]  }
   0xe   :  { %v2274_v42 = vld [vmem:[%s3155_s0 + $0x118] sm:$0xff]   ;;  %v2276_v44 = vld [vmem:[%s3155_s0 + $0x120] sm:$0xff]   ;;  %v2277_v45 = vld [vmem:[%s3155_s0 + $0x128] ss:$0 sps:$4 sm:$0xff]  }
   0xf   :  { %1944 = vmatmul.mubr.msk.bf16.vlgmr.msra.gmra.mxu0 %vm130_vm2, %v2239_v7  ;;  %1972 = vmatmul.mubr.msk.bf16.vlgmr.msra.gmra.mxu1 %vm130_vm2, %v2240_v8  ;;  %v2278_v46 = vld [vmem:[%s3155_s0 + $0x12c] sm:$0xff]   ;;  %v2279_v47 = vld [vmem:[%s3155_s0 + $0x134] sm:$0xff]   ;;  %v2281_v49 = vld [vmem:[%s3155_s0 + $0x13c] sm:$0xff]  }
  0x10   :  { %2054 = vmatpush3.bf16.msra.mxu0 %v2337_v4  ;;  %1947 = vmatprep.mubr.msk.bf16.mxu0 %vm2307_vm1, %v2305_v0  ;;  %v2280_v48 = vld [vmem:[%s3155_s0 + $0x190] sm:$0xff]   ;;  %v2282_v50 = vld [vmem:[%s3155_s0 + $0x198] sm:$0xff]   ;;  %v2283_v51 = vld [vmem:[%s3155_s0 + $0x144] sm:$0xff]  }
  0x11   :  { %1975 = vmatprep.mubr.msk.bf16.mxu1 %vm2307_vm1, %v2305_v0  ;;  %1996 = vmatpush3.bf16.msra.mxu1 %v2337_v4  ;;  %v2284_v52 = vld [vmem:[%s3155_s0 + $0x1a0] sm:$0xff]   ;;  %v2285_v53 = vld [vmem:[%s3155_s0 + $0x14c] sm:$0xff]   ;;  %v2287_v55 = vld [vmem:[%s3155_s0 + $0x154] sm:$0xff]  }
  0x12   :  { %2055 = vmatprep.subr.bf16.mxu0 %v2305_v0  ;;  %1997 = vmatprep.subr.bf16.mxu1 %v2305_v0  ;;  %v2286_v54 = vld [vmem:[%s3155_s0 + $0x1a8] sm:$0xff]   ;;  %v2288_v56 = vld [vmem:[%s3155_s0 + $0x1b0] sm:$0xff]   ;;  %v2289_v63 = vld [vmem:[%s3155_s0 + $0x15c] sm:$0xff]  }
  0x13   :  { %v2290_v1 = vld [vmem:[%s3155_s0 + $0x1b8] sm:$0xff]  }
  0x14   :  { %2056 = vmatpush3.bf16.msra.mxu0 %v2344_v5 }
  0x15   :  { %1998 = vmatpush3.bf16.msra.mxu1 %v2344_v5  ;;  %2057 = vmatprep.subr.bf16.mxu0 %v2305_v0 }
  0x16   :  { %1999 = vmatprep.subr.bf16.mxu1 %v2305_v0 }
  0x17   :  { %1948 = vmatmul.mubr.msk.bf16.gmra.mxu0 %vm130_vm2, %v2241_v9  ;;  %1976 = vmatmul.mubr.msk.bf16.gmra.mxu1 %vm130_vm2, %v2242_v10  ;;  %v2291_v10 = vld [vmem:[%s3155_s0 + $0x164] sm:$0xff]  }
  0x18   :  { %1951 = vmatprep.mubr.msk.bf16.mxu0 %vm2307_vm1, %v2305_v0  ;;  %1979 = vmatprep.mubr.msk.bf16.mxu1 %vm2307_vm1, %v2305_v0 }
  0x19   :  { %2000 = vmatpush3.bf16.msra.mxu1 %v2353_v6  ;;  %2058 = vmatpush3.bf16.msra.mxu0 %v2353_v6 }
  0x1a   :  { %2111 = vmatprep.subr.bf16.mxu1 %v2305_v0  ;;  %2169 = vmatprep.subr.bf16.mxu0 %v2305_v0 }
  0x1f   :  { %1952 = vmatmul.mubr.msk.bf16.gmra.mxu0 %vm130_vm2, %v2243_v11  ;;  %1980 = vmatmul.mubr.msk.bf16.gmra.mxu1 %vm130_vm2, %v2244_v12  ;;  %v2292_v11 = vld [vmem:[%s3155_s0 + $0x1c0] sm:$0xff]  }
  0x20   :  { %1955 = vmatprep.mubr.msk.bf16.mxu0 %vm2307_vm1, %v2305_v0  ;;  %1983 = vmatprep.mubr.msk.bf16.mxu1 %vm2307_vm1, %v2305_v0 }
  0x27   :  { %1956 = vmatmul.mubr.msk.bf16.gmra.mxu0 %vm130_vm2, %v2245_v13  ;;  %1984 = vmatmul.mubr.msk.bf16.gmra.mxu1 %vm130_vm2, %v2246_v14 }
  0x28   :  { %1959 = vmatprep.mubr.msk.bf16.mxu0 %vm2307_vm1, %v2305_v0  ;;  %1987 = vmatprep.mubr.msk.bf16.mxu1 %vm2307_vm1, %v2305_v0 }
  0x2f   :  { %1960 = vmatmul.mubr.msk.bf16.gmra.mxu0 %vm130_vm2, %v2247_v15  ;;  %1988 = vmatmul.mubr.msk.bf16.gmra.mxu1 %vm130_vm2, %v2248_v16 }
  0x30   :  { %1963 = vmatprep.mubr.msk.bf16.mxu0 %vm2307_vm1, %v2305_v0  ;;  %1991 = vmatprep.mubr.msk.bf16.mxu1 %vm2307_vm1, %v2305_v0 }
  0x37   :  { %1964 = vmatmul.mubr.msk.bf16.gmra.mxu0 %vm130_vm2, %v2249_v17  ;;  %1992 = vmatmul.mubr.msk.bf16.gmra.mxu1 %vm130_vm2, %v2250_v18 }
  0x38   :  { %1967 = vmatprep.mubr.msk.bf16.mxu0 %vm2307_vm1, %v2305_v0  ;;  %2001 = vmatprep.mubr.msk.bf16.mxu1 %vm2307_vm1, %v2305_v0 }
  0x3f   :  { %1968 = vmatmul.mubr.msk.bf16.gmra.mxu0 %vm130_vm2, %v2251_v19  ;;  %2002 = vmatmul.mubr.msk.bf16.vlgmr.msra.gmra.mxu1 %vm130_vm2, %v2252_v20  ;;  %v2293_v20 = vld [vmem:[%s3155_s0 + $0x16c] sm:$0xff]  }
  0x40   :  { %2005 = vmatprep.mubr.msk.bf16.mxu1 %vm2307_vm1, %v2305_v0  ;;  %2059 = vmatprep.mubr.msk.bf16.mxu0 %vm2307_vm1, %v2305_v0 }
  0x41   :  { %2112 = vmatpush3.bf16.msra.mxu1 %v2337_v4 }
  0x42   :  { %2113 = vmatprep.subr.bf16.mxu1 %v2305_v0 }
  0x45   :  { %2114 = vmatpush3.bf16.msra.mxu1 %v2344_v5 }
  0x46   :  { %2115 = vmatprep.subr.bf16.mxu1 %v2305_v0 }
  0x47   :  { %2006 = vmatmul.mubr.msk.bf16.gmra.mxu1 %vm130_vm2, %v2253_v21  ;;  %2060 = vmatmul.mubr.msk.bf16.vlgmr.msra.gmra.mxu0 %vm130_vm2, %v2254_v22  ;;  %v2294_v21 = vld [vmem:[%s3155_s0 + $0x1c8] sm:$0xff]  }
  0x48   :  { %2170 = vmatpush3.bf16.msra.mxu0 %v2337_v4  ;;  %2009 = vmatprep.mubr.msk.bf16.mxu1 %vm2307_vm1, %v2305_v0 }
  0x49   :  { %2063 = vmatprep.mubr.msk.bf16.mxu0 %vm2307_vm1, %v2305_v0  ;;  %2171 = vmatprep.subr.bf16.mxu0 %v2305_v0 }
  0x4a   :  { %2116 = vmatpush3.bf16.msra.mxu1 %v2353_v6 }
  0x4c   :  { %2172 = vmatpush3.bf16.msra.mxu0 %v2344_v5 }
  0x4d   :  { %2173 = vmatprep.subr.bf16.mxu0 %v2305_v0 }
  0x4f   :  { %2010 = vmatmul.mubr.msk.bf16.gmra.mxu1 %vm130_vm2, %v2255_v23  ;;  %2064 = vmatmul.mubr.msk.bf16.gmra.mxu0 %vm130_vm2, %v2256_v24 }
  0x50   :  { %2013 = vmatprep.mubr.msk.bf16.mxu1 %vm2307_vm1, %v2305_v0  ;;  %2067 = vmatprep.mubr.msk.bf16.mxu0 %vm2307_vm1, %v2305_v0 }
  0x51   :  { %2174 = vmatpush3.bf16.msra.mxu0 %v2353_v6 }
  0x57   :  { %2014 = vmatmul.mubr.msk.bf16.gmra.mxu1 %vm130_vm2, %v2257_v25  ;;  %2068 = vmatmul.mubr.msk.bf16.gmra.mxu0 %vm130_vm2, %v2258_v26 }
  0x58   :  { %2017 = vmatprep.mubr.msk.bf16.mxu1 %vm2307_vm1, %v2305_v0  ;;  %2071 = vmatprep.mubr.msk.bf16.mxu0 %vm2307_vm1, %v2305_v0 }
  0x5f   :  { %2018 = vmatmul.mubr.msk.bf16.gmra.mxu1 %vm130_vm2, %v2259_v27  ;;  %2072 = vmatmul.mubr.msk.bf16.gmra.mxu0 %vm130_vm2, %v2260_v28 }
  0x60   :  { %2021 = vmatprep.mubr.msk.bf16.mxu1 %vm2307_vm1, %v2305_v0  ;;  %2075 = vmatprep.mubr.msk.bf16.mxu0 %vm2307_vm1, %v2305_v0 }
  0x67   :  { %2022 = vmatmul.mubr.msk.bf16.gmra.mxu1 %vm130_vm2, %v2261_v29  ;;  %2076 = vmatmul.mubr.msk.bf16.gmra.mxu0 %vm130_vm2, %v2262_v30  ;;  %v2295_v30 = vld [vmem:[%s3155_s0 + $0x174] sm:$0xff]  }
  0x68   :  { %2025 = vmatprep.mubr.msk.bf16.mxu1 %vm2307_vm1, %v2305_v0  ;;  %2079 = vmatprep.mubr.msk.bf16.mxu0 %vm2307_vm1, %v2305_v0 }
  0x6f   :  { %2026 = vmatmul.mubr.msk.bf16.gmra.mxu1 %vm130_vm2, %v2263_v31  ;;  %2080 = vmatmul.mubr.msk.bf16.gmra.mxu0 %vm130_vm2, %v2264_v32  ;;  %v2296_v31 = vld [vmem:[%s3155_s0 + $0x1d0] sm:$0xff]  }
  0x70   :  { %2029 = vmatprep.mubr.msk.bf16.mxu1 %vm2307_vm1, %v2305_v0  ;;  %2083 = vmatprep.mubr.msk.bf16.mxu0 %vm2307_vm1, %v2305_v0 }
  0x77   :  { %2030 = vmatmul.mubr.msk.bf16.gmra.mxu1 %vm130_vm2, %v2265_v33  ;;  %2084 = vmatmul.mubr.msk.bf16.gmra.mxu0 %vm130_vm2, %v2266_v34 }
  0x78   :  { %2033 = vmatprep.mubr.msk.bf16.mxu1 %vm2307_vm1, %v2305_v0  ;;  %2087 = vmatprep.mubr.msk.bf16.mxu0 %vm2307_vm1, %v2305_v0 }
  0x7f   :  { %2034 = vmatmul.mubr.msk.bf16.gmra.mxu1 %vm130_vm2, %v2267_v35  ;;  %2088 = vmatmul.mubr.msk.bf16.gmra.mxu0 %vm130_vm2, %v2268_v36 }
  0x80   :  { %2037 = vmatprep.mubr.msk.bf16.mxu1 %vm2307_vm1, %v2305_v0  ;;  %2091 = vmatprep.mubr.msk.bf16.mxu0 %vm2307_vm1, %v2305_v0 }
  0x87   :  { %2038 = vmatmul.mubr.msk.bf16.gmra.mxu1 %vm130_vm2, %v2269_v37  ;;  %2092 = vmatmul.mubr.msk.bf16.gmra.mxu0 %vm130_vm2, %v2270_v38 }
  0x88   :  { %2041 = vmatprep.mubr.msk.bf16.mxu1 %vm2307_vm1, %v2305_v0  ;;  %2095 = vmatprep.mubr.msk.bf16.mxu0 %vm2307_vm1, %v2305_v0 }
  0x8f   :  { %2042 = vmatmul.mubr.msk.bf16.gmra.mxu1 %vm130_vm2, %v2271_v39  ;;  %2096 = vmatmul.mubr.msk.bf16.gmra.mxu0 %vm130_vm2, %v2272_v40  ;;  %v2297_v40 = vld [vmem:[%s3155_s0 + $0x17c] sm:$0xff]  }
  0x90   :  { %2045 = vmatprep.mubr.msk.bf16.mxu1 %vm2307_vm1, %v2305_v0  ;;  %2099 = vmatprep.mubr.msk.bf16.mxu0 %vm2307_vm1, %v2305_v0 }
  0x97   :  { %2046 = vmatmul.mubr.msk.bf16.gmra.mxu1 %vm130_vm2, %v2273_v41  ;;  %2100 = vmatmul.mubr.msk.bf16.gmra.mxu0 %vm130_vm2, %v2274_v42  ;;  %v2298_v41 = vld [vmem:[%s3155_s0 + $0x1d8] sm:$0xff]  }
  0x98   :  { %2049 = vmatprep.mubr.msk.bf16.mxu1 %vm2307_vm1, %v2305_v0  ;;  %2103 = vmatprep.mubr.msk.bf16.mxu0 %vm2307_vm1, %v2305_v0 }
  0x9f   :  { %2050 = vmatmul.mubr.msk.bf16.gmra.mxu1 %vm130_vm2, %v2275_v43  ;;  %2104 = vmatmul.mubr.msk.bf16.gmra.mxu0 %vm130_vm2, %v2276_v44 }
  0xa0   :  { %2107 = vmatprep.mubr.msk.bf16.mxu0 %vm2307_vm1, %v2305_v0  ;;  %2117 = vmatprep.mubr.msk.bf16.mxu1 %vm2307_vm1, %v2305_v0 }
  0xa7   :  { %2108 = vmatmul.mubr.msk.bf16.gmra.mxu0 %vm130_vm2, %v2277_v45  ;;  %2118 = vmatmul.mubr.msk.bf16.vlgmr.msra.gmra.mxu1 %vm130_vm2, %v2278_v46 }
  0xa8   :  { %2121 = vmatprep.mubr.msk.bf16.mxu1 %vm2307_vm1, %v2305_v0  ;;  %2175 = vmatprep.mubr.msk.bf16.mxu0 %vm2307_vm1, %v2305_v0 }
  0xaf   :  { %2122 = vmatmul.mubr.msk.bf16.gmra.mxu1 %vm130_vm2, %v2279_v47  ;;  %2176 = vmatmul.mubr.msk.bf16.vlgmr.msra.gmra.mxu0 %vm130_vm2, %v2280_v48  ;;  %v2790_v48 = vld [vmem:[%s3156_s2] ss:$0 sm:$0xff] }
  0xb0   :  { %2125 = vmatprep.mubr.msk.bf16.mxu1 %vm2307_vm1, %v2305_v0  ;;  %2179 = vmatprep.mubr.msk.bf16.mxu0 %vm2307_vm1, %v2305_v0 }
  0xb7   :  { %2126 = vmatmul.mubr.msk.bf16.gmra.mxu1 %vm130_vm2, %v2281_v49  ;;  %2180 = vmatmul.mubr.msk.bf16.gmra.mxu0 %vm130_vm2, %v2282_v50 }
  0xb8   :  { %2129 = vmatprep.mubr.msk.bf16.mxu1 %vm2307_vm1, %v2305_v0  ;;  %2183 = vmatprep.mubr.msk.bf16.mxu0 %vm2307_vm1, %v2305_v0 }
  0xbf   :  { %2130 = vmatmul.mubr.msk.bf16.gmra.mxu1 %vm130_vm2, %v2283_v51  ;;  %2184 = vmatmul.mubr.msk.bf16.gmra.mxu0 %vm130_vm2, %v2284_v52  ;;  %v2299_v51 = vld [vmem:[%s3155_s0 + $0x184] sm:$0xff]  }
  0xc0   :  { %2133 = vmatprep.mubr.msk.bf16.mxu1 %vm2307_vm1, %v2305_v0  ;;  %2187 = vmatprep.mubr.msk.bf16.mxu0 %vm2307_vm1, %v2305_v0  ;;  %v2300_v52 = vld [vmem:[%s3155_s0 + $0x1e0] sm:$0xff]  }
  0xc7   :  { %2134 = vmatmul.mubr.msk.bf16.gmra.mxu1 %vm130_vm2, %v2285_v53  ;;  %2188 = vmatmul.mubr.msk.bf16.gmra.mxu0 %vm130_vm2, %v2286_v54 }
  0xc8   :  { %2137 = vmatprep.mubr.msk.bf16.mxu1 %vm2307_vm1, %v2305_v0  ;;  %2191 = vmatprep.mubr.msk.bf16.mxu0 %vm2307_vm1, %v2305_v0 }
  0xcf   :  { %v2677_v57 = vpop.f32.mrf.mxu0  ;;  %v2679_v58 = vpop.f32.mrf.mxu1  ;;  %2138 = vmatmul.mubr.msk.bf16.gmra.mxu1 %vm130_vm2, %v2287_v55  ;;  %2192 = vmatmul.mubr.msk.bf16.gmra.mxu0 %vm130_vm2, %v2288_v56 }
  0xd0   :  { %2141 = vmatprep.mubr.msk.bf16.mxu1 %vm2307_vm1, %v2305_v0  ;;  %2195 = vmatprep.mubr.msk.bf16.mxu0 %vm2307_vm1, %v2305_v0  ;;  %v211_v55 = vadd.f32 %v2790_v48, %v2677_v57 }
  0xd1   :  { %v1945_v59 = vpop.f32.mrf.mxu0  ;;  %v1973_v60 = vpop.f32.mrf.mxu1 }
  0xd3   :  { %v2687_v61 = vpop.f32.mrf.mxu0  ;;  %v2689_v62 = vpop.f32.mrf.mxu1 }
  0xd4   :  { %v214_v57 = vadd.f32 %v2790_v48, %v2687_v61 }
  0xd5   :  { %v1946_v2 = vpop.f32.mrf.mxu0  ;;  %v1974_v3 = vpop.f32.mrf.mxu1 }
  0xd6   :  { %v312_v2 = vmax.f32 %v211_v55, 0.0 }
  0xd7   :  { %v2697_v4 = vpop.f32.mrf.mxu0  ;;  %v2699_v5 = vpop.f32.mrf.mxu1  ;;  %2142 = vmatmul.mubr.msk.bf16.gmra.mxu1 %vm130_vm2, %v2289_v63  ;;  %2196 = vmatmul.mubr.msk.bf16.gmra.mxu0 %vm130_vm2, %v2290_v1 }
  0xd8   :  { %2145 = vmatprep.mubr.msk.bf16.mxu1 %vm2307_vm1, %v2305_v0  ;;  %2199 = vmatprep.mubr.msk.bf16.mxu0 %vm2307_vm1, %v2305_v0  ;;  %v219_v61 = vadd.f32 %v2790_v48, %v2697_v4 }
  0xd9   :  { %v1949_v6 = vpop.f32.mrf.mxu0  ;;  %v1977_v7 = vpop.f32.mrf.mxu1 }
  0xdb   :  { %v2707_v8 = vpop.f32.mrf.mxu0  ;;  %v2709_v9 = vpop.f32.mrf.mxu1 }
  0xdc   :  { %v222_v4 = vadd.f32 %v2790_v48, %v2707_v8 }
  0xdd   :  { %v1950_v12 = vpop.f32.mrf.mxu0  ;;  %v1978_v13 = vpop.f32.mrf.mxu1 }
  0xdf   :  { %v2717_v14 = vpop.f32.mrf.mxu0  ;;  %v2719_v15 = vpop.f32.mrf.mxu1  ;;  %2146 = vmatmul.mubr.msk.bf16.gmra.mxu1 %vm130_vm2, %v2291_v10  ;;  %2200 = vmatmul.mubr.msk.bf16.gmra.mxu0 %vm130_vm2, %v2292_v11  ;;  %v2301_v10 = vld [vmem:[%s3155_s0 + $0x18c] ss:$0 sps:$4 sm:$0xff]  }
  0xe0   :  { %2149 = vmatprep.mubr.msk.bf16.mxu1 %vm2307_vm1, %v2305_v0  ;;  %2203 = vmatprep.mubr.msk.bf16.mxu0 %vm2307_vm1, %v2305_v0  ;;  %v2302_v11 = vld [vmem:[%s3155_s0 + $0x1e8] sm:$0xff]   ;;  %v227_v8 = vadd.f32 %v2790_v48, %v2717_v14 }
  0xe1   :  { %v1953_v16 = vpop.f32.mrf.mxu0  ;;  %v1981_v17 = vpop.f32.mrf.mxu1 }
  0xe3   :  { %v2727_v18 = vpop.f32.mrf.mxu0  ;;  %v2729_v19 = vpop.f32.mrf.mxu1 }
  0xe5   :  { %v1954_v22 = vpop.f32.mrf.mxu0  ;;  %v1982_v23 = vpop.f32.mrf.mxu1 }
  0xe7   :  { %v2737_v24 = vpop.f32.mrf.mxu0  ;;  %v2739_v25 = vpop.f32.mrf.mxu1  ;;  %2150 = vmatmul.mubr.msk.bf16.gmra.mxu1 %vm130_vm2, %v2293_v20  ;;  %2204 = vmatmul.mubr.msk.bf16.gmra.mxu0 %vm130_vm2, %v2294_v21  ;;  %v313_v20 = vmax.f32 %v214_v57, 0.0 }
  0xe8   :  { %2153 = vmatprep.mubr.msk.bf16.mxu1 %vm2307_vm1, %v2305_v0  ;;  %2207 = vmatprep.mubr.msk.bf16.mxu0 %vm2307_vm1, %v2305_v0 }
  0xe9   :  { %v1957_v26 = vpop.f32.mrf.mxu0  ;;  %v1985_v27 = vpop.f32.mrf.mxu1 }
  0xeb   :  { %v2747_v28 = vpop.f32.mrf.mxu0  ;;  %v2749_v29 = vpop.f32.mrf.mxu1 }
  0xed   :  { %v1958_v32 = vpop.f32.mrf.mxu0  ;;  %v1986_v33 = vpop.f32.mrf.mxu1 }
  0xee   :  { %v314_v33 = vmax.f32 %v219_v61, 0.0 }
  0xef   :  { %v2757_v34 = vpop.f32.mrf.mxu0  ;;  %v2759_v35 = vpop.f32.mrf.mxu1  ;;  %2154 = vmatmul.mubr.msk.bf16.gmra.mxu1 %vm130_vm2, %v2295_v30  ;;  %2208 = vmatmul.mubr.msk.bf16.gmra.mxu0 %vm130_vm2, %v2296_v31 }
  0xf0   :  { %2157 = vmatprep.mubr.msk.bf16.mxu1 %vm2307_vm1, %v2305_v0  ;;  %2211 = vmatprep.mubr.msk.bf16.mxu0 %vm2307_vm1, %v2305_v0 }
  0xf1   :  { %v1961_v36 = vpop.f32.mrf.mxu0  ;;  %v1989_v37 = vpop.f32.mrf.mxu1 }
  0xf3   :  { %v2767_v38 = vpop.f32.mrf.mxu0  ;;  %v2769_v39 = vpop.f32.mrf.mxu1 }
  0xf5   :  { %v1962_v42 = vpop.f32.mrf.mxu0  ;;  %v1990_v43 = vpop.f32.mrf.mxu1 }
  0xf6   :  { %v2303_v42 = vld [vmem:[%s3155_s0 + $0x1f0] ss:$0 sps:$4 sm:$0xff]  }
  0xf7   :  { %v2777_v44 = vpop.f32.mrf.mxu0  ;;  %v2779_v45 = vpop.f32.mrf.mxu1  ;;  %2158 = vmatmul.mubr.msk.bf16.gmra.mxu1 %vm130_vm2, %v2297_v40  ;;  %2212 = vmatmul.mubr.msk.bf16.gmra.mxu0 %vm130_vm2, %v2298_v41 }
  0xf8   :  { %2161 = vmatprep.mubr.msk.bf16.mxu1 %vm2307_vm1, %v2305_v0  ;;  %2215 = vmatprep.mubr.msk.bf16.mxu0 %vm2307_vm1, %v2305_v0 }
  0xf9   :  { %v1965_v46 = vpop.f32.mrf.mxu0  ;;  %v1993_v47 = vpop.f32.mrf.mxu1 }
  0xfb   :  { %v2792_v49 = vpop.f32.mrf.mxu0  ;;  %v309_v50 = vpop.f32.mrf.mxu1 }
  0xfd   :  { %v1966_v53 = vpop.f32.mrf.mxu0  ;;  %v1994_v54 = vpop.f32.mrf.mxu1 }
  0xff   :  { %v2802_v56 = vpop.f32.mrf.mxu0  ;;  %v499_v59 = vpop.f32.mrf.mxu1  ;;  %2162 = vmatmul.mubr.msk.bf16.gmra.mxu1 %vm130_vm2, %v2299_v51  ;;  %2216 = vmatmul.mubr.msk.bf16.gmra.mxu0 %vm130_vm2, %v2300_v52  ;;  %v315_v52 = vmax.f32 %v222_v4, 0.0 }
 0x100   :  { %v500_v60 = vadd.f32 %v2790_v48, %v499_v59  ;;  %2165 = vmatprep.mubr.msk.bf16.mxu1 %vm2307_vm1, %v2305_v0  ;;  %2219 = vmatprep.mubr.msk.bf16.mxu0 %vm2307_vm1, %v2305_v0 }
 0x101   :  { %v1969_v63 = vpop.f32.mrf.mxu0  ;;  %v2003_v1 = vpop.f32.mrf.mxu1 }
 0x102   :  { %v601_v3 = vmax.f32 %v500_v60, 0.0 }
 0x103   :  { %v2813_v6 = vpop.f32.mrf.mxu0  ;;  %v502_v7 = vpop.f32.mrf.mxu1 }
 0x104   :  { %v626_v12 = vmax.f32 %v312_v2, %v601_v3  ;;  %v503_v13 = vadd.f32 %v2790_v48, %v502_v7  ;;  %v316_v7 = vmax.f32 %v227_v8, 0.0 }
 0x105   :  { %v1970_v16 = vpop.f32.mrf.mxu0  ;;  %v2004_v17 = vpop.f32.mrf.mxu1 }
 0x106   :  { %v602_v21 = vmax.f32 %v503_v13, 0.0 }
 0x107   :  { %v507_v22 = vpop.f32.mrf.mxu1  ;;  %v813_v23 = vpop.f32.mrf.mxu0  ;;  %2166 = vmatmul.mubr.msk.bf16.gmra.mxu1 %vm130_vm2, %v2301_v10  ;;  %2220 = vmatmul.mubr.msk.bf16.gmra.mxu0 %vm130_vm2, %v2302_v11  ;;  %v230_v10 = vadd.f32 %v2790_v48, %v2727_v18 }
 0x108   :  { %v627_v26 = vmax.f32 %v313_v20, %v602_v21  ;;  %v508_v27 = vadd.f32 %v2790_v48, %v507_v22  ;;  %v814_v30 = vadd.f32 %v2790_v48, %v813_v23  ;;  %2223 = vmatprep.mubr.msk.bf16.mxu0 %vm2307_vm1, %v2305_v0 }
 0x109   :  { %v2007_v31 = vpop.f32.mrf.mxu1  ;;  %v2061_v32 = vpop.f32.mrf.mxu0  ;;  %v317_v23 = vmax.f32 %v230_v10, 0.0 }
 0x10a   :  { %v603_v36 = vmax.f32 %v508_v27, 0.0  ;;  %v915_v37 = vmax.f32 %v814_v30, 0.0 }
 0x10b   :  { %v510_v40 = vpop.f32.mrf.mxu1  ;;  %v816_v41 = vpop.f32.mrf.mxu0 }
 0x10c   :  { %v628_v43 = vmax.f32 %v314_v33, %v603_v36  ;;  %v2835_v46 = vmax.f32 %v626_v12, %v915_v37  ;;  %v511_v47 = vadd.f32 %v2790_v48, %v510_v40  ;;  %v817_v0 = vadd.f32 %v2790_v48, %v816_v41 }
 0x10d   :  { %v2008_v50 = vpop.f32.mrf.mxu1  ;;  %v2062_v51 = vpop.f32.mrf.mxu0 }
 0x10e   :  { %v604_v53 = vmax.f32 %v511_v47, 0.0  ;;  %v916_v54 = vmax.f32 %v817_v0, 0.0 }
 0x10f   :  { %v515_v55 = vpop.f32.mrf.mxu1  ;;  %v821_v59 = vpop.f32.mrf.mxu0  ;;  %2224 = vmatmul.mubr.msk.bf16.gmra.mxu0 %vm130_vm2, %v2303_v42  ;;  %v238_v42 = vadd.f32 %v2790_v48, %v2747_v28 }
 0x110   :  { %v629_v60 = vmax.f32 %v315_v52, %v604_v53  ;;  %v2842_v63 = vmax.f32 %v627_v26, %v916_v54  ;;  %v516_v1 = vadd.f32 %v2790_v48, %v515_v55  ;;  %v822_v2 = vadd.f32 %v2790_v48, %v821_v59 }
 0x111   :  { %v2011_v57 = vpop.f32.mrf.mxu1  ;;  %v2065_v3 = vpop.f32.mrf.mxu0  ;;  %v235_v26 = vadd.f32 %v2790_v48, %v2737_v24  ;;  %v319_v55 = vmax.f32 %v238_v42, 0.0  ;;  %v243_v59 = vadd.f32 %v2790_v48, %v2757_v34 }
 0x112   :  { %v605_v14 = vmax.f32 %v516_v1, 0.0  ;;  %v917_v11 = vmax.f32 %v822_v2, 0.0 }
 0x113   :  { %v518_v12 = vpop.f32.mrf.mxu1  ;;  %v824_v13 = vpop.f32.mrf.mxu0  ;;  %v318_v41 = vmax.f32 %v235_v26, 0.0 }
 0x114   :  { %v630_v16 = vmax.f32 %v316_v7, %v605_v14  ;;  %v2848_v17 = vmax.f32 %v628_v43, %v917_v11  ;;  %v519_v20 = vadd.f32 %v2790_v48, %v518_v12  ;;  %v825_v61 = vadd.f32 %v2790_v48, %v824_v13 }
 0x115   :  { %v2012_v21 = vpop.f32.mrf.mxu1  ;;  %v2066_v22 = vpop.f32.mrf.mxu0  ;;  %v320_v12 = vmax.f32 %v243_v59, 0.0  ;;  %v246_v13 = vadd.f32 %v2790_v48, %v2767_v38 }
 0x116   :  { %v606_v27 = vmax.f32 %v519_v20, 0.0  ;;  %v918_v30 = vmax.f32 %v825_v61, 0.0 }
 0x117   :  { %v523_v18 = vpop.f32.mrf.mxu1  ;;  %v829_v31 = vpop.f32.mrf.mxu0 }
 0x118   :  { %v631_v32 = vmax.f32 %v317_v23, %v606_v27  ;;  %v2854_v33 = vmax.f32 %v629_v60, %v918_v30  ;;  %v524_v4 = vadd.f32 %v2790_v48, %v523_v18  ;;  %v830_v36 = vadd.f32 %v2790_v48, %v829_v31 }
 0x119   :  { %v2015_v37 = vpop.f32.mrf.mxu1  ;;  %v2069_v40 = vpop.f32.mrf.mxu0  ;;  %v321_v18 = vmax.f32 %v246_v13, 0.0  ;;  %v251_v31 = vadd.f32 %v2790_v48, %v2777_v44 }
 0x11a   :  { %v607_v43 = vmax.f32 %v524_v4, 0.0  ;;  %v919_v47 = vmax.f32 %v830_v36, 0.0 }
 0x11b   :  { %v526_v24 = vpop.f32.mrf.mxu1  ;;  %v832_v0 = vpop.f32.mrf.mxu0 }
 0x11c   :  { %v632_v50 = vmax.f32 %v318_v41, %v607_v43  ;;  %v2860_v51 = vmax.f32 %v630_v16, %v919_v47  ;;  %v527_v52 = vadd.f32 %v2790_v48, %v526_v24  ;;  %v833_v8 = vadd.f32 %v2790_v48, %v832_v0 }
 0x11d   :  { %v2016_v53 = vpop.f32.mrf.mxu1  ;;  %v2070_v54 = vpop.f32.mrf.mxu0  ;;  %v322_v24 = vmax.f32 %v251_v31, 0.0  ;;  %v254_v0 = vadd.f32 %v2790_v48, %v2792_v49 }
 0x11e   :  { %v608_v60 = vmax.f32 %v527_v52, 0.0  ;;  %v920_v1 = vmax.f32 %v833_v8, 0.0 }
 0x11f   :  { %v531_v28 = vpop.f32.mrf.mxu1  ;;  %v837_v2 = vpop.f32.mrf.mxu0 }
 0x120   :  { %v633_v57 = vmax.f32 %v319_v55, %v608_v60  ;;  %v2866_v3 = vmax.f32 %v631_v32, %v920_v1  ;;  %v532_v7 = vadd.f32 %v2790_v48, %v531_v28  ;;  %v838_v10 = vadd.f32 %v2790_v48, %v837_v2 }
 0x121   :  { %v2019_v14 = vpop.f32.mrf.mxu1  ;;  %v2073_v11 = vpop.f32.mrf.mxu0  ;;  %v323_v28 = vmax.f32 %v254_v0, 0.0  ;;  %v259_v2 = vadd.f32 %v2790_v48, %v2802_v56 }
 0x122   :  { %v609_v16 = vmax.f32 %v532_v7, 0.0  ;;  %v921_v20 = vmax.f32 %v838_v10, 0.0 }
 0x123   :  { %v534_v34 = vpop.f32.mrf.mxu1  ;;  %v840_v61 = vpop.f32.mrf.mxu0 }
 0x124   :  { %v634_v21 = vmax.f32 %v320_v12, %v609_v16  ;;  %v2872_v22 = vmax.f32 %v632_v50, %v921_v20  ;;  %v535_v23 = vadd.f32 %v2790_v48, %v534_v34  ;;  %v841_v26 = vadd.f32 %v2790_v48, %v840_v61 }
 0x125   :  { %v2020_v27 = vpop.f32.mrf.mxu1  ;;  %v2074_v30 = vpop.f32.mrf.mxu0  ;;  %v324_v34 = vmax.f32 %v259_v2, 0.0  ;;  %v262_v61 = vadd.f32 %v2790_v48, %v2813_v6 }
 0x126   :  { %v610_v32 = vmax.f32 %v535_v23, 0.0  ;;  %v922_v4 = vmax.f32 %v841_v26, 0.0 }
 0x127   :  { %v539_v38 = vpop.f32.mrf.mxu1  ;;  %v845_v36 = vpop.f32.mrf.mxu0 }
 0x128   :  { %v635_v37 = vmax.f32 %v321_v18, %v610_v32  ;;  %v2878_v40 = vmax.f32 %v633_v57, %v922_v4  ;;  %v540_v41 = vadd.f32 %v2790_v48, %v539_v38  ;;  %v846_v42 = vadd.f32 %v2790_v48, %v845_v36 }
 0x129   :  { %v2023_v43 = vpop.f32.mrf.mxu1  ;;  %v2077_v47 = vpop.f32.mrf.mxu0  ;;  %v267_v38 = vadd.f32 %v2790_v48, %v2679_v58  ;;  %v325_v36 = vmax.f32 %v262_v61, 0.0 }
 0x12a   :  { %v611_v50 = vmax.f32 %v540_v41, 0.0  ;;  %v923_v52 = vmax.f32 %v846_v42, 0.0 }
 0x12b   :  { %v542_v44 = vpop.f32.mrf.mxu1  ;;  %v848_v8 = vpop.f32.mrf.mxu0 }
 0x12c   :  { %v636_v53 = vmax.f32 %v322_v24, %v611_v50  ;;  %v2884_v54 = vmax.f32 %v634_v21, %v923_v52  ;;  %v543_v55 = vadd.f32 %v2790_v48, %v542_v44  ;;  %v849_v59 = vadd.f32 %v2790_v48, %v848_v8 }
 0x12d   :  { %v2024_v60 = vpop.f32.mrf.mxu1  ;;  %v2078_v1 = vpop.f32.mrf.mxu0  ;;  %v326_v44 = vmax.f32 %v267_v38, 0.0  ;;  %v270_v8 = vadd.f32 %v2790_v48, %v2689_v62 }
 0x12e   :  { %v612_v57 = vmax.f32 %v543_v55, 0.0  ;;  %v924_v7 = vmax.f32 %v849_v59, 0.0 }
 0x12f   :  { %v547_v49 = vpop.f32.mrf.mxu1  ;;  %v853_v10 = vpop.f32.mrf.mxu0 }
 0x130   :  { %v637_v14 = vmax.f32 %v323_v28, %v612_v57  ;;  %v2890_v11 = vmax.f32 %v635_v37, %v924_v7  ;;  %v548_v12 = vadd.f32 %v2790_v48, %v547_v49  ;;  %v854_v13 = vadd.f32 %v2790_v48, %v853_v10 }
 0x131   :  { %v2027_v16 = vpop.f32.mrf.mxu1  ;;  %v2081_v20 = vpop.f32.mrf.mxu0  ;;  %v327_v49 = vmax.f32 %v270_v8, 0.0  ;;  %v275_v10 = vadd.f32 %v2790_v48, %v2699_v5 }
 0x132   :  { %v613_v21 = vmax.f32 %v548_v12, 0.0  ;;  %v925_v23 = vmax.f32 %v854_v13, 0.0 }
 0x133   :  { %v550_v56 = vpop.f32.mrf.mxu1  ;;  %v856_v26 = vpop.f32.mrf.mxu0 }
 0x134   :  { %v638_v27 = vmax.f32 %v324_v34, %v613_v21  ;;  %v2896_v30 = vmax.f32 %v636_v53, %v925_v23  ;;  %v551_v18 = vadd.f32 %v2790_v48, %v550_v56  ;;  %v857_v31 = vadd.f32 %v2790_v48, %v856_v26 }
 0x135   :  { %v2028_v32 = vpop.f32.mrf.mxu1  ;;  %v2082_v4 = vpop.f32.mrf.mxu0  ;;  %v328_v56 = vmax.f32 %v275_v10, 0.0  ;;  %v278_v26 = vadd.f32 %v2790_v48, %v2709_v9 }
 0x136   :  { %v614_v37 = vmax.f32 %v551_v18, 0.0  ;;  %v926_v41 = vmax.f32 %v857_v31, 0.0 }
 0x137   :  { %v555_v6 = vpop.f32.mrf.mxu1  ;;  %v861_v42 = vpop.f32.mrf.mxu0 }
 0x138   :  { %v639_v43 = vmax.f32 %v325_v36, %v614_v37  ;;  %v2902_v47 = vmax.f32 %v637_v14, %v926_v41  ;;  %v556_v24 = vadd.f32 %v2790_v48, %v555_v6  ;;  %v862_v0 = vadd.f32 %v2790_v48, %v861_v42 }
 0x139   :  { %v2031_v50 = vpop.f32.mrf.mxu1  ;;  %v2085_v52 = vpop.f32.mrf.mxu0  ;;  %v329_v6 = vmax.f32 %v278_v26, 0.0  ;;  %v283_v42 = vadd.f32 %v2790_v48, %v2719_v15 }
 0x13a   :  { %v615_v53 = vmax.f32 %v556_v24, 0.0  ;;  %v927_v58 = vmax.f32 %v862_v0, 0.0 }
 0x13b   :  { %v558_v55 = vpop.f32.mrf.mxu1  ;;  %v864_v59 = vpop.f32.mrf.mxu0 }
 0x13c   :  { %v640_v60 = vmax.f32 %v326_v44, %v615_v53  ;;  %v2908_v1 = vmax.f32 %v638_v27, %v927_v58  ;;  %v559_v28 = vadd.f32 %v2790_v48, %v558_v55  ;;  %v865_v2 = vadd.f32 %v2790_v48, %v864_v59 }
 0x13d   :  { %v2032_v57 = vpop.f32.mrf.mxu1  ;;  %v2086_v7 = vpop.f32.mrf.mxu0  ;;  %v330_v55 = vmax.f32 %v283_v42, 0.0  ;;  %v286_v59 = vadd.f32 %v2790_v48, %v2729_v19 }
 0x13e   :  { %v616_v14 = vmax.f32 %v559_v28, 0.0  ;;  %v928_v12 = vmax.f32 %v865_v2, 0.0 }
 0x13f   :  { %v563_v62 = vpop.f32.mrf.mxu1  ;;  %v869_v13 = vpop.f32.mrf.mxu0 }
 0x140   :  { %v641_v16 = vmax.f32 %v327_v49, %v616_v14  ;;  %v2914_v20 = vmax.f32 %v639_v43, %v928_v12  ;;  %v564_v34 = vadd.f32 %v2790_v48, %v563_v62  ;;  %v870_v61 = vadd.f32 %v2790_v48, %v869_v13 }
 0x141   :  { %v2035_v21 = vpop.f32.mrf.mxu1  ;;  %v2089_v23 = vpop.f32.mrf.mxu0  ;;  %v331_v62 = vmax.f32 %v286_v59, 0.0  ;;  %v291_v13 = vadd.f32 %v2790_v48, %v2739_v25 }
 0x142   :  { %v617_v27 = vmax.f32 %v564_v34, 0.0  ;;  %v929_v18 = vmax.f32 %v870_v61, 0.0 }
 0x143   :  { %v566_v5 = vpop.f32.mrf.mxu1  ;;  %v872_v31 = vpop.f32.mrf.mxu0 }
 0x144   :  { %v642_v32 = vmax.f32 %v328_v56, %v617_v27  ;;  %v2920_v4 = vmax.f32 %v640_v60, %v929_v18  ;;  %v567_v38 = vadd.f32 %v2790_v48, %v566_v5  ;;  %v873_v36 = vadd.f32 %v2790_v48, %v872_v31 }
 0x145   :  { %v2036_v37 = vpop.f32.mrf.mxu1  ;;  %v2090_v41 = vpop.f32.mrf.mxu0  ;;  %v332_v5 = vmax.f32 %v291_v13, 0.0  ;;  %v294_v31 = vadd.f32 %v2790_v48, %v2749_v29 }
 0x146   :  { %v618_v43 = vmax.f32 %v567_v38, 0.0  ;;  %v930_v24 = vmax.f32 %v873_v36, 0.0 }
 0x147   :  { %v571_v9 = vpop.f32.mrf.mxu1  ;;  %v877_v0 = vpop.f32.mrf.mxu0 }
 0x148   :  { %v643_v50 = vmax.f32 %v329_v6, %v618_v43  ;;  %v2926_v52 = vmax.f32 %v641_v16, %v930_v24  ;;  %v572_v44 = vadd.f32 %v2790_v48, %v571_v9  ;;  %v878_v8 = vadd.f32 %v2790_v48, %v877_v0 }
 0x149   :  { %v2039_v53 = vpop.f32.mrf.mxu1  ;;  %v2093_v58 = vpop.f32.mrf.mxu0  ;;  %v333_v9 = vmax.f32 %v294_v31, 0.0  ;;  %v299_v0 = vadd.f32 %v2790_v48, %v2759_v35 }
 0x14a   :  { %v619_v60 = vmax.f32 %v572_v44, 0.0  ;;  %v931_v28 = vmax.f32 %v878_v8, 0.0 }
 0x14b   :  { %v574_v15 = vpop.f32.mrf.mxu1  ;;  %v880_v2 = vpop.f32.mrf.mxu0 }
 0x14c   :  { %v644_v57 = vmax.f32 %v330_v55, %v619_v60  ;;  %v2932_v7 = vmax.f32 %v642_v32, %v931_v28  ;;  %v575_v49 = vadd.f32 %v2790_v48, %v574_v15  ;;  %v881_v10 = vadd.f32 %v2790_v48, %v880_v2 }
 0x14d   :  { %v2040_v14 = vpop.f32.mrf.mxu1  ;;  %v2094_v12 = vpop.f32.mrf.mxu0  ;;  %v334_v15 = vmax.f32 %v299_v0, 0.0  ;;  %v302_v2 = vadd.f32 %v2790_v48, %v2769_v39 }
 0x14e   :  { %v620_v16 = vmax.f32 %v575_v49, 0.0  ;;  %v932_v34 = vmax.f32 %v881_v10, 0.0 }
 0x14f   :  { %v579_v19 = vpop.f32.mrf.mxu1  ;;  %v885_v61 = vpop.f32.mrf.mxu0 }
 0x150   :  { %v645_v21 = vmax.f32 %v331_v62, %v620_v16  ;;  %v2938_v23 = vmax.f32 %v643_v50, %v932_v34  ;;  %v580_v56 = vadd.f32 %v2790_v48, %v579_v19  ;;  %v886_v26 = vadd.f32 %v2790_v48, %v885_v61 }
 0x151   :  { %v2043_v27 = vpop.f32.mrf.mxu1  ;;  %v2097_v18 = vpop.f32.mrf.mxu0  ;;  %v335_v19 = vmax.f32 %v302_v2, 0.0  ;;  %v307_v61 = vadd.f32 %v2790_v48, %v2779_v45 }
 0x152   :  { %v621_v32 = vmax.f32 %v580_v56, 0.0  ;;  %v933_v38 = vmax.f32 %v886_v26, 0.0 }
 0x153   :  { %v582_v25 = vpop.f32.mrf.mxu1  ;;  %v888_v36 = vpop.f32.mrf.mxu0 }
 0x154   :  { %v646_v37 = vmax.f32 %v332_v5, %v621_v32  ;;  %v2944_v41 = vmax.f32 %v644_v57, %v933_v38  ;;  %v583_v6 = vadd.f32 %v2790_v48, %v582_v25  ;;  %v889_v42 = vadd.f32 %v2790_v48, %v888_v36 }
 0x155   :  { %v2044_v43 = vpop.f32.mrf.mxu1  ;;  %v2098_v24 = vpop.f32.mrf.mxu0  ;;  %v336_v25 = vmax.f32 %v307_v61, 0.0 }
 0x156   :  { %v622_v50 = vmax.f32 %v583_v6, 0.0  ;;  %v934_v44 = vmax.f32 %v889_v42, 0.0 }
 0x157   :  { %v587_v29 = vpop.f32.mrf.mxu1  ;;  %v893_v8 = vpop.f32.mrf.mxu0 }
 0x158   :  { %v647_v53 = vmax.f32 %v333_v9, %v622_v50  ;;  %v2950_v58 = vmax.f32 %v645_v21, %v934_v44  ;;  %v588_v55 = vadd.f32 %v2790_v48, %v587_v29  ;;  %v894_v59 = vadd.f32 %v2790_v48, %v893_v8 }
 0x159   :  { %v2047_v60 = vpop.f32.mrf.mxu1  ;;  %v2101_v28 = vpop.f32.mrf.mxu0 }
 0x15a   :  { %v623_v57 = vmax.f32 %v588_v55, 0.0  ;;  %v935_v49 = vmax.f32 %v894_v59, 0.0 }
 0x15b   :  { %v590_v35 = vpop.f32.mrf.mxu1  ;;  %v896_v10 = vpop.f32.mrf.mxu0 }
 0x15c   :  { %v648_v14 = vmax.f32 %v334_v15, %v623_v57  ;;  %v2956_v12 = vmax.f32 %v646_v37, %v935_v49  ;;  %v591_v62 = vadd.f32 %v2790_v48, %v590_v35  ;;  %v897_v13 = vadd.f32 %v2790_v48, %v896_v10 }
 0x15d   :  { %v2048_v16 = vpop.f32.mrf.mxu1  ;;  %v2102_v34 = vpop.f32.mrf.mxu0 }
 0x15e   :  { %v624_v21 = vmax.f32 %v591_v62, 0.0  ;;  %v936_v56 = vmax.f32 %v897_v13, 0.0 }
 0x15f   :  { %v595_v39 = vpop.f32.mrf.mxu1  ;;  %v901_v26 = vpop.f32.mrf.mxu0 }
 0x160   :  { %v649_v27 = vmax.f32 %v335_v19, %v624_v21  ;;  %v2962_v18 = vmax.f32 %v647_v53, %v936_v56  ;;  %v596_v5 = vadd.f32 %v2790_v48, %v595_v39  ;;  %v902_v31 = vadd.f32 %v2790_v48, %v901_v26 }
 0x161   :  { %v2051_v32 = vpop.f32.mrf.mxu1  ;;  %v2105_v38 = vpop.f32.mrf.mxu0 }
 0x162   :  { %v625_v36 = vmax.f32 %v596_v5, 0.0  ;;  %v937_v37 = vmax.f32 %v902_v31, 0.0 }
 0x163   :  { %v598_v6 = vpop.f32.mrf.mxu1  ;;  %v904_v42 = vpop.f32.mrf.mxu0 }
 0x164   :  { %v650_v43 = vmax.f32 %v336_v25, %v625_v36  ;;  %v2966_v45 = vmax.f32 %v648_v14, %v937_v37  ;;  %v905_v24 = vadd.f32 %v2790_v48, %v904_v42 }
 0x165   :  { %v2052_v9 = vpop.f32.mrf.mxu1  ;;  %v2106_v0 = vpop.f32.mrf.mxu0 }
 0x166   :  { %v938_v50 = vmax.f32 %v905_v24, 0.0 }
 0x167   :  { %v909_v44 = vpop.f32.mrf.mxu0  ;;  %v1127_v29 = vpop.f32.mrf.mxu1 }
 0x168   :  { %v2969_v8 = vmax.f32 %v649_v27, %v938_v50  ;;  %v910_v53 = vadd.f32 %v2790_v48, %v909_v44  ;;  %v1128_v28 = vadd.f32 %v2790_v48, %v1127_v29 }
 0x169   :  { %v2109_v55 = vpop.f32.mrf.mxu0  ;;  %v2119_v59 = vpop.f32.mrf.mxu1 }
 0x16a   :  { %v939_v60 = vmax.f32 %v910_v53, 0.0  ;;  %v1229_v10 = vmax.f32 %v1128_v28, 0.0 }
 0x16b   :  { %v912_v15 = vpop.f32.mrf.mxu0  ;;  %v1130_v2 = vpop.f32.mrf.mxu1 }
 0x16c   :  { %v2973_v57 = vmax.f32 %v650_v43, %v939_v60  ;;  %v1131_v14 = vadd.f32 %v2790_v48, %v1130_v2  ;;  %v1254_v61 = vmax.f32 %v2835_v46, %v1229_v10 }
 0x16d   :  { %v2110_v49 = vpop.f32.mrf.mxu0  ;;  %v2120_v35 = vpop.f32.mrf.mxu1 }
 0x16e   :  { %v1230_v21 = vmax.f32 %v1131_v14, 0.0 }
 0x16f   :  { %v1135_v62 = vpop.f32.mrf.mxu1  ;;  %v1441_v13 = vpop.f32.mrf.mxu0 }
 0x170   :  { %v1442_v16 = vadd.f32 %v2790_v48, %v1441_v13  ;;  %v1136_v56 = vadd.f32 %v2790_v48, %v1135_v62  ;;  %v1255_v25 = vmax.f32 %v2842_v63, %v1230_v21 }
 0x171   :  { %v2123_v34 = vpop.f32.mrf.mxu1  ;;  %v2177_v19 = vpop.f32.mrf.mxu0 }
 0x172   :  { %v1543_v39 = vmax.f32 %v1442_v16, 0.0  ;;  %v1231_v36 = vmax.f32 %v1136_v56, 0.0 }
 0x173   :  { %v1138_v26 = vpop.f32.mrf.mxu1  ;;  %v1444_v27 = vpop.f32.mrf.mxu0 }
 0x174   :  { %v1568_v5 = vmax.f32 %v1254_v61, %v1543_v39  ;;  %v1445_v31 = vadd.f32 %v2790_v48, %v1444_v27  ;;  %v1139_v46 = vadd.f32 %v2790_v48, %v1138_v26  ;;  %v1256_v50 = vmax.f32 %v2848_v17, %v1231_v36 }
 0x175   :  { %v2124_v32 = vpop.f32.mrf.mxu1  ;;  %v2178_v38 = vpop.f32.mrf.mxu0 }
 0x176   :  { %1594 = vst.msk [vmem:[%s3157_s3] sm:$0xff] %vm1593_vm3, %v1568_v5  ;;  %v1544_v37 = vmax.f32 %v1445_v31, 0.0  ;;  %v1232_v44 = vmax.f32 %v1139_v46, 0.0 }
 0x177   :  { %v1143_v6 = vpop.f32.mrf.mxu1  ;;  %v1449_v42 = vpop.f32.mrf.mxu0 }
 0x178   :  { %v1569_v43 = vmax.f32 %v1255_v25, %v1544_v37  ;;  %v1450_v24 = vadd.f32 %v2790_v48, %v1449_v42  ;;  %v1144_v63 = vadd.f32 %v2790_v48, %v1143_v6  ;;  %v1257_v2 = vmax.f32 %v2854_v33, %v1232_v44 }
 0x179   :  { %v2127_v9 = vpop.f32.mrf.mxu1  ;;  %v2181_v0 = vpop.f32.mrf.mxu0 }
 0x17a   :  { %1595 = vst.msk [vmem:[%s3157_s3 + $0x8] sm:$0xff] %vm1593_vm3, %v1569_v43  ;;  %v1545_v29 = vmax.f32 %v1450_v24, 0.0  ;;  %v1233_v49 = vmax.f32 %v1144_v63, 0.0 }
 0x17b   :  { %v1146_v53 = vpop.f32.mrf.mxu1  ;;  %v1452_v55 = vpop.f32.mrf.mxu0 }
 0x17c   :  { %v1570_v59 = vmax.f32 %v1256_v50, %v1545_v29  ;;  %v1453_v60 = vadd.f32 %v2790_v48, %v1452_v55  ;;  %v1147_v17 = vadd.f32 %v2790_v48, %v1146_v53  ;;  %v1258_v19 = vmax.f32 %v2860_v51, %v1233_v49 }
 0x17d   :  { %v2128_v28 = vpop.f32.mrf.mxu1  ;;  %v2182_v15 = vpop.f32.mrf.mxu0 }
 0x17e   :  { %1596 = vst.msk [vmem:[%s3157_s3 + $0x10] sm:$0xff] %vm1593_vm3, %v1570_v59  ;;  %v1546_v35 = vmax.f32 %v1453_v60, 0.0  ;;  %v1234_v61 = vmax.f32 %v1147_v17, 0.0 }
 0x17f   :  { %v1151_v10 = vpop.f32.mrf.mxu1  ;;  %v1457_v14 = vpop.f32.mrf.mxu0 }
 0x180   :  { %v1571_v62 = vmax.f32 %v1257_v2, %v1546_v35  ;;  %v1458_v13 = vadd.f32 %v2790_v48, %v1457_v14  ;;  %v1152_v33 = vadd.f32 %v2790_v48, %v1151_v10  ;;  %v1259_v32 = vmax.f32 %v2866_v3, %v1234_v61 }
 0x181   :  { %v2131_v16 = vpop.f32.mrf.mxu1  ;;  %v2185_v34 = vpop.f32.mrf.mxu0 }
 0x182   :  { %1597 = vst.msk [vmem:[%s3157_s3 + $0x18] sm:$0xff] %vm1593_vm3, %v1571_v62  ;;  %v1547_v21 = vmax.f32 %v1458_v13, 0.0  ;;  %v1235_v38 = vmax.f32 %v1152_v33, 0.0 }
 0x183   :  { %v1154_v56 = vpop.f32.mrf.mxu1  ;;  %v1460_v39 = vpop.f32.mrf.mxu0 }
 0x184   :  { %v1572_v26 = vmax.f32 %v1258_v19, %v1547_v21  ;;  %v1461_v27 = vadd.f32 %v2790_v48, %v1460_v39  ;;  %v1155_v51 = vadd.f32 %v2790_v48, %v1154_v56  ;;  %v1260_v24 = vmax.f32 %v2872_v22, %v1235_v38 }
 0x185   :  { %v2132_v5 = vpop.f32.mrf.mxu1  ;;  %v2186_v31 = vpop.f32.mrf.mxu0 }
 0x186   :  { %1598 = vst.msk [vmem:[%s3157_s3 + $0x20] sm:$0xff] %vm1593_vm3, %v1572_v26  ;;  %v1548_v25 = vmax.f32 %v1461_v27, 0.0  ;;  %v1236_v9 = vmax.f32 %v1155_v51, 0.0 }
 0x187   :  { %v1159_v36 = vpop.f32.mrf.mxu1  ;;  %v1465_v46 = vpop.f32.mrf.mxu0 }
 0x188   :  { %v1573_v37 = vmax.f32 %v1259_v32, %v1548_v25  ;;  %v1466_v6 = vadd.f32 %v2790_v48, %v1465_v46  ;;  %v1160_v3 = vadd.f32 %v2790_v48, %v1159_v36  ;;  %v1261_v59 = vmax.f32 %v2878_v40, %v1236_v9 }
 0x189   :  { %v2135_v42 = vpop.f32.mrf.mxu1  ;;  %v2189_v43 = vpop.f32.mrf.mxu0 }
 0x18a   :  { %1599 = vst.msk [vmem:[%s3157_s3 + $0x28] sm:$0xff] %vm1593_vm3, %v1573_v37  ;;  %v1549_v0 = vmax.f32 %v1466_v6, 0.0  ;;  %v1237_v60 = vmax.f32 %v1160_v3, 0.0 }
 0x18b   :  { %v1162_v50 = vpop.f32.mrf.mxu1  ;;  %v1468_v44 = vpop.f32.mrf.mxu0 }
 0x18c   :  { %v1574_v63 = vmax.f32 %v1260_v24, %v1549_v0  ;;  %v1469_v29 = vadd.f32 %v2790_v48, %v1468_v44  ;;  %v1163_v22 = vadd.f32 %v2790_v48, %v1162_v50  ;;  %v1262_v14 = vmax.f32 %v2884_v54, %v1237_v60 }
 0x18d   :  { %v2136_v53 = vpop.f32.mrf.mxu1  ;;  %v2190_v55 = vpop.f32.mrf.mxu0 }
 0x18e   :  { %1600 = vst.msk [vmem:[%s3157_s3 + $0x30] sm:$0xff] %vm1593_vm3, %v1574_v63  ;;  %v1550_v28 = vmax.f32 %v1469_v29, 0.0  ;;  %v1238_v62 = vmax.f32 %v1163_v22, 0.0 }
 0x18f   :  { %v1167_v15 = vpop.f32.mrf.mxu1  ;;  %v1473_v2 = vpop.f32.mrf.mxu0 }
 0x190   :  { %v1575_v49 = vmax.f32 %v1261_v59, %v1550_v28  ;;  %v1474_v17 = vadd.f32 %v2790_v48, %v1473_v2  ;;  %v1168_v40 = vadd.f32 %v2790_v48, %v1167_v15  ;;  %v1263_v56 = vmax.f32 %v2890_v11, %v1238_v62 }
 0x191   :  { %v2139_v35 = vpop.f32.mrf.mxu1  ;;  %v2193_v10 = vpop.f32.mrf.mxu0 }
 0x192   :  { %1601 = vst.msk [vmem:[%s3157_s3 + $0x38] sm:$0xff] %vm1593_vm3, %v1575_v49  ;;  %v1551_v13 = vmax.f32 %v1474_v17, 0.0  ;;  %v1239_v39 = vmax.f32 %v1168_v40, 0.0 }
 0x193   :  { %v1170_v16 = vpop.f32.mrf.mxu1  ;;  %v1476_v34 = vpop.f32.mrf.mxu0 }
 0x194   :  { %v1576_v19 = vmax.f32 %v1262_v14, %v1551_v13  ;;  %v1477_v61 = vadd.f32 %v2790_v48, %v1476_v34  ;;  %v1171_v54 = vadd.f32 %v2790_v48, %v1170_v16  ;;  %v1264_v25 = vmax.f32 %v2896_v30, %v1239_v39 }
 0x195   :  { %v2140_v33 = vpop.f32.mrf.mxu1  ;;  %v2194_v21 = vpop.f32.mrf.mxu0 }
 0x196   :  { %1602 = vst.msk [vmem:[%s3157_s3 + $0x40] sm:$0xff] %vm1593_vm3, %v1576_v19  ;;  %v1552_v26 = vmax.f32 %v1477_v61, 0.0  ;;  %v1240_v36 = vmax.f32 %v1171_v54, 0.0 }
 0x197   :  { %v1175_v27 = vpop.f32.mrf.mxu1  ;;  %v1481_v5 = vpop.f32.mrf.mxu0 }
 0x198   :  { %v1577_v31 = vmax.f32 %v1263_v56, %v1552_v26  ;;  %v1482_v32 = vadd.f32 %v2790_v48, %v1481_v5  ;;  %v1176_v11 = vadd.f32 %v2790_v48, %v1175_v27  ;;  %v1265_v3 = vmax.f32 %v2902_v47, %v1240_v36 }
 0x199   :  { %v2143_v38 = vpop.f32.mrf.mxu1  ;;  %v2197_v51 = vpop.f32.mrf.mxu0 }
 0x19a   :  { %1603 = vst.msk [vmem:[%s3157_s3 + $0x48] sm:$0xff] %vm1593_vm3, %v1577_v31  ;;  %v1553_v46 = vmax.f32 %v1482_v32, 0.0  ;;  %v1241_v0 = vmax.f32 %v1176_v11, 0.0 }
 0x19b   :  { %v1178_v37 = vpop.f32.mrf.mxu1  ;;  %v1484_v6 = vpop.f32.mrf.mxu0 }
 0x19c   :  { %v1578_v42 = vmax.f32 %v1264_v25, %v1553_v46  ;;  %v1485_v43 = vadd.f32 %v2790_v48, %v1484_v6  ;;  %v1179_v30 = vadd.f32 %v2790_v48, %v1178_v37  ;;  %v1266_v60 = vmax.f32 %v2908_v1, %v1241_v0  ;;  %v3087_v37 = vld [vmem:[%s3156_s2] ss:$0 sm:$0xff] }
 0x19d   :  { %v2144_v24 = vpop.f32.mrf.mxu1  ;;  %v2198_v9 = vpop.f32.mrf.mxu0 }
 0x19e   :  { %1604 = vst.msk [vmem:[%s3157_s3 + $0x50] sm:$0xff] %vm1593_vm3, %v1578_v42  ;;  %v1554_v50 = vmax.f32 %v1485_v43, 0.0  ;;  %v1242_v22 = vmax.f32 %v1179_v30, 0.0 }
 0x19f   :  { %v1183_v44 = vpop.f32.mrf.mxu1  ;;  %v1489_v63 = vpop.f32.mrf.mxu0 }
 0x1a0   :  { %v1579_v29 = vmax.f32 %v1265_v3, %v1554_v50  ;;  %v1490_v53 = vadd.f32 %v2790_v48, %v1489_v63  ;;  %v1184_v47 = vadd.f32 %v2790_v48, %v1183_v44  ;;  %v1267_v14 = vmax.f32 %v2914_v20, %v1242_v22 }
 0x1a1   :  { %v2147_v55 = vpop.f32.mrf.mxu1  ;;  %v2201_v59 = vpop.f32.mrf.mxu0 }
 0x1a2   :  { %1605 = vst.msk [vmem:[%s3157_s3 + $0x58] sm:$0xff] %vm1593_vm3, %v1579_v29  ;;  %v1555_v28 = vmax.f32 %v1490_v53, 0.0  ;;  %v1243_v62 = vmax.f32 %v1184_v47, 0.0 }
 0x1a3   :  { %v1186_v15 = vpop.f32.mrf.mxu1  ;;  %v1492_v2 = vpop.f32.mrf.mxu0 }
 0x1a4   :  { %v1580_v49 = vmax.f32 %v1266_v60, %v1555_v28  ;;  %v1493_v17 = vadd.f32 %v2790_v48, %v1492_v2  ;;  %v1187_v1 = vadd.f32 %v2790_v48, %v1186_v15  ;;  %v1268_v21 = vmax.f32 %v2920_v4, %v1243_v62 }
 0x1a5   :  { %v2148_v35 = vpop.f32.mrf.mxu1  ;;  %v2202_v10 = vpop.f32.mrf.mxu0 }
 0x1a6   :  { %1606 = vst.msk [vmem:[%s3157_s3 + $0x60] sm:$0xff] %vm1593_vm3, %v1580_v49  ;;  %v1556_v40 = vmax.f32 %v1493_v17, 0.0  ;;  %v1244_v56 = vmax.f32 %v1187_v1, 0.0 }
 0x1a7   :  { %v1191_v13 = vpop.f32.mrf.mxu1  ;;  %v1497_v16 = vpop.f32.mrf.mxu0 }
 0x1a8   :  { %v1581_v34 = vmax.f32 %v1267_v14, %v1556_v40  ;;  %v1498_v19 = vadd.f32 %v2790_v48, %v1497_v16  ;;  %v1192_v20 = vadd.f32 %v2790_v48, %v1191_v13  ;;  %v1269_v38 = vmax.f32 %v2926_v52, %v1244_v56 }
 0x1a9   :  { %v2151_v61 = vpop.f32.mrf.mxu1  ;;  %v2205_v33 = vpop.f32.mrf.mxu0 }
 0x1aa   :  { %1607 = vst.msk [vmem:[%s3157_s3 + $0x68] sm:$0xff] %vm1593_vm3, %v1581_v34  ;;  %v1557_v39 = vmax.f32 %v1498_v19, 0.0  ;;  %v1245_v51 = vmax.f32 %v1192_v20, 0.0 }
 0x1ab   :  { %v1194_v54 = vpop.f32.mrf.mxu1  ;;  %v1500_v26 = vpop.f32.mrf.mxu0 }
 0x1ac   :  { %v1582_v27 = vmax.f32 %v1268_v21, %v1557_v39  ;;  %v1501_v5 = vadd.f32 %v2790_v48, %v1500_v26  ;;  %v1195_v4 = vadd.f32 %v2790_v48, %v1194_v54  ;;  %v1270_v43 = vmax.f32 %v2932_v7, %v1245_v51 }
 0x1ad   :  { %v2152_v31 = vpop.f32.mrf.mxu1  ;;  %v2206_v32 = vpop.f32.mrf.mxu0 }
 0x1ae   :  { %1608 = vst.msk [vmem:[%s3157_s3 + $0x70] sm:$0xff] %vm1593_vm3, %v1582_v27  ;;  %v1558_v25 = vmax.f32 %v1501_v5, 0.0  ;;  %v1246_v24 = vmax.f32 %v1195_v4, 0.0 }
 0x1af   :  { %v1199_v36 = vpop.f32.mrf.mxu1  ;;  %v1505_v11 = vpop.f32.mrf.mxu0 }
 0x1b0   :  { %v1583_v46 = vmax.f32 %v1269_v38, %v1558_v25  ;;  %v1506_v6 = vadd.f32 %v3087_v37, %v1505_v11  ;;  %v1200_v48 = vadd.f32 %v3087_v37, %v1199_v36  ;;  %v1271_v29 = vmax.f32 %v2938_v23, %v1246_v24 }
 0x1b1   :  { %v2155_v52 = vpop.f32.mrf.mxu1  ;;  %v2209_v42 = vpop.f32.mrf.mxu0 }
 0x1b2   :  { %1609 = vst.msk [vmem:[%s3157_s3 + $0x78] sm:$0xff] %vm1593_vm3, %v1583_v46  ;;  %v1559_v9 = vmax.f32 %v1506_v6, 0.0  ;;  %v1247_v53 = vmax.f32 %v1200_v48, 0.0 }
 0x1b3   :  { %v1202_v3 = vpop.f32.mrf.mxu1  ;;  %v1508_v0 = vpop.f32.mrf.mxu0 }
 0x1b4   :  { %v1584_v30 = vmax.f32 %v1270_v43, %v1559_v9  ;;  %v1509_v50 = vadd.f32 %v3087_v37, %v1508_v0  ;;  %v1203_v7 = vadd.f32 %v3087_v37, %v1202_v3  ;;  %v1272_v2 = vmax.f32 %v2944_v41, %v1247_v53 }
 0x1b5   :  { %v2156_v44 = vpop.f32.mrf.mxu1  ;;  %v2210_v63 = vpop.f32.mrf.mxu0 }
 0x1b6   :  { %1610 = vst.msk [vmem:[%s3157_s3 + $0x80] sm:$0xff] %vm1593_vm3, %v1584_v30  ;;  %v1560_v55 = vmax.f32 %v1509_v50, 0.0  ;;  %v1248_v49 = vmax.f32 %v1203_v7, 0.0 }
 0x1b7   :  { %v1207_v59 = vpop.f32.mrf.mxu1  ;;  %v1513_v60 = vpop.f32.mrf.mxu0 }
 0x1b8   :  { %v1585_v22 = vmax.f32 %v1271_v29, %v1560_v55  ;;  %v1514_v47 = vadd.f32 %v3087_v37, %v1513_v60  ;;  %v1208_v23 = vadd.f32 %v3087_v37, %v1207_v59  ;;  %v1273_v13 = vmax.f32 %v2950_v58, %v1248_v49 }
 0x1b9   :  { %v2159_v28 = vpop.f32.mrf.mxu1  ;;  %v2213_v15 = vpop.f32.mrf.mxu0 }
 0x1ba   :  { %1611 = vst.msk [vmem:[%s3157_s3 + $0x88] sm:$0xff] %vm1593_vm3, %v1585_v22  ;;  %v1561_v17 = vmax.f32 %v1514_v47, 0.0  ;;  %v1249_v16 = vmax.f32 %v1208_v23, 0.0 }
 0x1bb   :  { %v1210_v35 = vpop.f32.mrf.mxu1  ;;  %v1516_v10 = vpop.f32.mrf.mxu0 }
 0x1bc   :  { %v1586_v14 = vmax.f32 %v1272_v2, %v1561_v17  ;;  %v1517_v62 = vadd.f32 %v3087_v37, %v1516_v10  ;;  %v1211_v41 = vadd.f32 %v3087_v37, %v1210_v35  ;;  %v1274_v39 = vmax.f32 %v2956_v12, %v1249_v16 }
 0x1bd   :  { %v2160_v1 = vpop.f32.mrf.mxu1  ;;  %v2214_v40 = vpop.f32.mrf.mxu0 }
 0x1be   :  { %1612 = vst.msk [vmem:[%s3157_s3 + $0x90] sm:$0xff] %vm1593_vm3, %v1586_v14  ;;  %v1562_v34 = vmax.f32 %v1517_v62, 0.0  ;;  %v1250_v54 = vmax.f32 %v1211_v41, 0.0 }
 0x1bf   :  { %v1215_v19 = vpop.f32.mrf.mxu1  ;;  %v1521_v61 = vpop.f32.mrf.mxu0 }
 0x1c0   :  { %v1587_v33 = vmax.f32 %v1273_v13, %v1562_v34  ;;  %v1522_v21 = vadd.f32 %v3087_v37, %v1521_v61  ;;  %v1216_v58 = vadd.f32 %v3087_v37, %v1215_v19  ;;  %v1275_v4 = vmax.f32 %v2962_v18, %v1250_v54 }
 0x1c1   :  { %v2163_v56 = vpop.f32.mrf.mxu1  ;;  %v2217_v20 = vpop.f32.mrf.mxu0 }
 0x1c2   :  { %1613 = vst.msk [vmem:[%s3157_s3 + $0x98] sm:$0xff] %vm1593_vm3, %v1587_v33  ;;  %v1563_v26 = vmax.f32 %v1522_v21, 0.0  ;;  %v1251_v25 = vmax.f32 %v1216_v58, 0.0 }
 0x1c3   :  { %v1218_v27 = vpop.f32.mrf.mxu1  ;;  %v1524_v5 = vpop.f32.mrf.mxu0 }
 0x1c4   :  { %v1588_v31 = vmax.f32 %v1274_v39, %v1563_v26  ;;  %v1525_v32 = vadd.f32 %v3087_v37, %v1524_v5  ;;  %v1219_v12 = vadd.f32 %v3087_v37, %v1218_v27  ;;  %v1276_v24 = vmax.f32 %v2966_v45, %v1251_v25 }
 0x1c5   :  { %v2164_v38 = vpop.f32.mrf.mxu1  ;;  %v2218_v51 = vpop.f32.mrf.mxu0 }
 0x1c6   :  { %1614 = vst.msk [vmem:[%s3157_s3 + $0xa0] sm:$0xff] %vm1593_vm3, %v1588_v31  ;;  %v1564_v36 = vmax.f32 %v1525_v32, 0.0  ;;  %v1252_v48 = vmax.f32 %v1219_v12, 0.0 }
 0x1c7   :  { %v1223_v11 = vpop.f32.mrf.mxu1  ;;  %v1529_v46 = vpop.f32.mrf.mxu0 }
 0x1c8   :  { %v1589_v6 = vmax.f32 %v1275_v4, %v1564_v36  ;;  %v1530_v52 = vadd.f32 %v3087_v37, %v1529_v46  ;;  %v1224_v18 = vadd.f32 %v3087_v37, %v1223_v11  ;;  %v1277_v29 = vmax.f32 %v2969_v8, %v1252_v48 }
 0x1c9   :  { %v2221_v42 = vpop.f32.mrf.mxu0  ;;  %v2167_v43 = vpop.f32.mrf.mxu1 }
 0x1ca   :  { %1615 = vst.msk [vmem:[%s3157_s3 + $0xa8] sm:$0xff] %vm1593_vm3, %v1589_v6  ;;  %v1565_v9 = vmax.f32 %v1530_v52, 0.0  ;;  %v1253_v53 = vmax.f32 %v1224_v18, 0.0 }
 0x1cb   :  { %v1532_v3 = vpop.f32.mrf.mxu0  ;;  %v1226_v0 = vpop.f32.mrf.mxu1 }
 0x1cc   :  { %v1590_v30 = vmax.f32 %v1276_v24, %v1565_v9  ;;  %v1533_v50 = vadd.f32 %v3087_v37, %v1532_v3  ;;  %v1278_v22 = vmax.f32 %v2973_v57, %v1253_v53 }
 0x1cd   :  { %v2222_v44 = vpop.f32.mrf.mxu0  ;;  %v2168_v63 = vpop.f32.mrf.mxu1 }
 0x1ce   :  { %1616 = vst.msk [vmem:[%s3157_s3 + $0xb0] sm:$0xff] %vm1593_vm3, %v1590_v30  ;;  %v1566_v45 = vmax.f32 %v1533_v50, 0.0 }
 0x1cf   :  { %v1537_v7 = vpop.f32.mrf.mxu0 }
 0x1d0   :  { %v1591_v55 = vmax.f32 %v1277_v29, %v1566_v45  ;;  %v1538_v59 = vadd.f32 %v3087_v37, %v1537_v7 }
 0x1d1   :  { %v2225_v60 = vpop.f32.mrf.mxu0 }
 0x1d2   :  { %1617 = vst.msk [vmem:[%s3157_s3 + $0xb8] sm:$0xff] %vm1593_vm3, %v1591_v55  ;;  %v1567_v8 = vmax.f32 %v1538_v59, 0.0 }
 0x1d3   :  { %v1540_v47 = vpop.f32.mrf.mxu0 }
 0x1d4   :  { %v1592_v28 = vmax.f32 %v1278_v22, %v1567_v8 }
 0x1d5   :  { %v2226_v15 = vpop.f32.mrf.mxu0 }
 0x1d6   :  { %1618 = vst.msk [vmem:[%s3157_s3 + $0xc0] sm:$0xff] %vm1593_vm3, %v1592_v28 }

// kernel: resnet_forward.14
= control target key start
LH: loop header
LB: loop body
LE: loop exit
PB: predicated region body
PF: predicated region fallthrough
CT: control target
= control target key end

     0   :  { %v578_v0 = vmov 0   ;;  %vm233_vm0 = vcmask 130048   ;;  %s844_s1 = inlined_call_operand.vmem [shape: bf16[144,16], index: 1, kind: input, shape index: {}]   ;;  %s845_s0 = inlined_call_operand.vmem [shape: bf16[200,144], index: 0, kind: input, shape index: {}]   ;;  %s846_s2 = inlined_call_operand.vmem [shape: f32[1,16], index: 2, kind: input, shape index: {}]   ;;  %s847_s3 = inlined_call_operand.vmem [shape: f32[200,16], index: 3, kind: output, shape index: {}]  }
   0x1   :  { %273 = vmatprep.subr.bf16.mxu0 %v578_v0  ;;  %v531_v1 = vld [vmem:[%s844_s1 + $0x38] sm:$0xff]   ;;  %512 = vmatprep.subr.bf16.mxu1 %v578_v0  ;;  %v532_v2 = vld [vmem:[%s844_s1 + $0x30] sm:$0xff]   ;;  %v533_v3 = vld [vmem:[%s844_s1 + $0x28] sm:$0xff]  }
   0x2   :  { %274 = vmatpush1.bf16.msra.mxu0 %v531_v1  ;;  %521 = vmatpush1.bf16.msra.mxu1 %v531_v1  ;;  %v534_v4 = vld [vmem:[%s844_s1 + $0x20] sm:$0xff]   ;;  %v545_v6 = vld [vmem:[%s845_s0 + $0x74] ss:$8 sps:$4 sm:$0xff]   ;;  %v537_v9 = vld [vmem:[%s844_s1 + $0x8] sm:$0xff]  }
   0x3   :  { %275 = vmatprep.subr.bf16.mxu0 %v578_v0  ;;  %513 = vmatprep.subr.bf16.mxu1 %v578_v0  ;;  %v542_v5 = vld [vmem:[%s845_s0 + $0x4] ss:$8 sps:$4 sm:$0xff]   ;;  %v535_v7 = vld [vmem:[%s844_s1 + $0x18] sm:$0xff]   ;;  %v536_v8 = vld [vmem:[%s844_s1 + $0x10] sm:$0xff]  }
   0x4   :  { %499 = vmatprep.mubr.msk.bf16.mxu0 %vm233_vm0, %v542_v5  ;;  %506 = vmatprep.mubr.msk.bf16.mxu1 %vm233_vm0, %v545_v6  ;;  %v538_v10 = vld [vmem:[%s844_s1] sm:$0xff]   ;;  %v543_v13 = vld [vmem:[%s845_s0 + $0x70] ss:$8 sps:$4 sm:$0xff]   ;;  %v546_v14 = vld [vmem:[%s845_s0 + $0x14] ss:$8 sps:$4 sm:$0xff]  }
   0x5   :  { %v539_v11 = vld [vmem:[%s844_s1 + $0x40] sm:$0xff]   ;;  %v548_v16 = vld [vmem:[%s845_s0 + $0x10] ss:$8 sps:$4 sm:$0xff]   ;;  %v555_v19 = vld [vmem:[%s845_s0 + $0x94] ss:$8 sps:$4 sm:$0xff]  }
   0x6   :  { %276 = vmatpush1.bf16.msra.mxu0 %v532_v2  ;;  %522 = vmatpush1.bf16.msra.mxu1 %v532_v2  ;;  %v540_v12 = vld [vmem:[%s845_s0] ss:$8 sps:$4 sm:$0xff]   ;;  %v549_v15 = vld [vmem:[%s845_s0 + $0x84] ss:$8 sps:$4 sm:$0xff]   ;;  %v557_v21 = vld [vmem:[%s845_s0 + $0x90] ss:$8 sps:$4 sm:$0xff]  }
   0x7   :  { %277 = vmatprep.subr.bf16.mxu0 %v578_v0  ;;  %514 = vmatprep.subr.bf16.mxu1 %v578_v0  ;;  %v551_v17 = vld [vmem:[%s845_s0 + $0x80] ss:$8 sps:$4 sm:$0xff]   ;;  %v552_v18 = vld [vmem:[%s845_s0 + $0x24] ss:$8 sps:$4 sm:$0xff]   ;;  %v558_v22 = vld [vmem:[%s845_s0 + $0x34] ss:$8 sps:$4 sm:$0xff]  }
   0x8   :  { %v554_v20 = vld [vmem:[%s845_s0 + $0x20] ss:$8 sps:$4 sm:$0xff]   ;;  %v561_v23 = vld [vmem:[%s845_s0 + $0xa4] ss:$8 sps:$4 sm:$0xff]   ;;  %v560_v24 = vld [vmem:[%s845_s0 + $0x30] ss:$8 sps:$4 sm:$0xff]  }
   0x9   :  { %v563_v25 = vld [vmem:[%s845_s0 + $0xa0] ss:$8 sps:$4 sm:$0xff]   ;;  %v564_v26 = vld [vmem:[%s845_s0 + $0x44] ss:$8 sps:$4 sm:$0xff]   ;;  %v567_v27 = vld [vmem:[%s845_s0 + $0xb4] ss:$8 sps:$4 sm:$0xff]  }
   0xa   :  { %278 = vmatpush1.bf16.msra.mxu0 %v533_v3  ;;  %523 = vmatpush1.bf16.msra.mxu1 %v533_v3  ;;  %v39_v28 = vld [vmem:[%s845_s0 + $0xc0] sm:$0xff]  ;;  %v569_v30 = vld [vmem:[%s845_s0 + $0xb0] ss:$8 sps:$4 sm:$0xff]   ;;  %v570_v31 = vld [vmem:[%s845_s0 + $0x54] ss:$8 sps:$4 sm:$0xff]  }
   0xb   :  { %279 = vmatprep.subr.bf16.mxu0 %v578_v0  ;;  %515 = vmatprep.subr.bf16.mxu1 %v578_v0  ;;  %v566_v29 = vld [vmem:[%s845_s0 + $0x40] ss:$8 sps:$4 sm:$0xff]   ;;  %v489_v32 = vcombine.high %v39_v28, %v39_v28  ;;  %v572_v33 = vld [vmem:[%s845_s0 + $0x50] ss:$8 sps:$4 sm:$0xff]   ;;  %v488_v34 = vcombine.low %v39_v28, %v39_v28  ;;  %v575_v35 = vld [vmem:[%s845_s0 + $0x64] ss:$8 sps:$4 sm:$0xff]  }
   0xc   :  { %v577_v36 = vld [vmem:[%s845_s0 + $0x60] ss:$8 sps:$4 sm:$0xff]  }
   0xd   :  { %v717_v37 = vld [vmem:[%s846_s2] ss:$0 sm:$0xff] }
   0xe   :  { %280 = vmatpush1.bf16.msra.mxu0 %v534_v4  ;;  %524 = vmatpush1.bf16.msra.mxu1 %v534_v4 }
   0xf   :  { %281 = vmatprep.subr.bf16.mxu0 %v578_v0  ;;  %516 = vmatprep.subr.bf16.mxu1 %v578_v0 }
  0x12   :  { %282 = vmatpush1.bf16.msra.mxu0 %v535_v7  ;;  %525 = vmatpush1.bf16.msra.mxu1 %v535_v7 }
  0x13   :  { %283 = vmatprep.subr.bf16.mxu0 %v578_v0  ;;  %517 = vmatprep.subr.bf16.mxu1 %v578_v0 }
  0x16   :  { %284 = vmatpush1.bf16.msra.mxu0 %v536_v8  ;;  %526 = vmatpush1.bf16.msra.mxu1 %v536_v8 }
  0x17   :  { %285 = vmatprep.subr.bf16.mxu0 %v578_v0  ;;  %518 = vmatprep.subr.bf16.mxu1 %v578_v0 }
  0x1a   :  { %286 = vmatpush1.bf16.msra.mxu0 %v537_v9  ;;  %527 = vmatpush1.bf16.msra.mxu1 %v537_v9 }
  0x1b   :  { %287 = vmatprep.subr.bf16.mxu0 %v578_v0  ;;  %519 = vmatprep.subr.bf16.mxu1 %v578_v0 }
  0x1e   :  { %288 = vmatpush1.bf16.msra.mxu0 %v538_v10  ;;  %528 = vmatpush1.bf16.msra.mxu1 %v538_v10 }
  0x1f   :  { %303 = vmatprep.subr.bf16.mxu0 %v578_v0  ;;  %520 = vmatprep.subr.bf16.mxu1 %v578_v0 }
  0x22   :  { %304 = vmatpush2.bf16.msra.mxu0 %v539_v11  ;;  %529 = vmatpush2.bf16.msra.mxu1 %v539_v11 }
  0x25   :  { %306 = vmatmul.mubr.bf16.vlgmr.msra.gmra.mxu0 %v540_v12  ;;  %362 = vmatmul.mubr.bf16.vlgmr.msra.gmra.mxu1 %v543_v13 }
  0x26   :  { %500 = vmatprep.mubr.msk.bf16.mxu0 %vm233_vm0, %v546_v14  ;;  %507 = vmatprep.mubr.msk.bf16.mxu1 %vm233_vm0, %v549_v15 }
  0x2d   :  { %314 = vmatmul.mubr.bf16.gmra.mxu0 %v548_v16  ;;  %370 = vmatmul.mubr.bf16.gmra.mxu1 %v551_v17 }
  0x2e   :  { %501 = vmatprep.mubr.msk.bf16.mxu0 %vm233_vm0, %v552_v18  ;;  %508 = vmatprep.mubr.msk.bf16.mxu1 %vm233_vm0, %v555_v19 }
  0x35   :  { %322 = vmatmul.mubr.bf16.gmra.mxu0 %v554_v20  ;;  %378 = vmatmul.mubr.bf16.gmra.mxu1 %v557_v21 }
  0x36   :  { %502 = vmatprep.mubr.msk.bf16.mxu0 %vm233_vm0, %v558_v22  ;;  %509 = vmatprep.mubr.msk.bf16.mxu1 %vm233_vm0, %v561_v23 }
  0x3d   :  { %330 = vmatmul.mubr.bf16.gmra.mxu0 %v560_v24  ;;  %386 = vmatmul.mubr.bf16.gmra.mxu1 %v563_v25 }
  0x3e   :  { %503 = vmatprep.mubr.msk.bf16.mxu0 %vm233_vm0, %v564_v26  ;;  %510 = vmatprep.mubr.msk.bf16.mxu1 %vm233_vm0, %v567_v27 }
  0x45   :  { %338 = vmatmul.mubr.bf16.gmra.mxu0 %v566_v29  ;;  %394 = vmatmul.mubr.bf16.gmra.mxu1 %v569_v30 }
  0x46   :  { %504 = vmatprep.mubr.msk.bf16.mxu0 %vm233_vm0, %v570_v31  ;;  %511 = vmatprep.mubr.msk.bf16.mxu1 %vm233_vm0, %v489_v32 }
  0x4d   :  { %346 = vmatmul.mubr.bf16.gmra.mxu0 %v572_v33  ;;  %402 = vmatmul.mubr.bf16.gmra.mxu1 %v488_v34 }
  0x4e   :  { %505 = vmatprep.mubr.msk.bf16.mxu0 %vm233_vm0, %v575_v35 }
  0x55   :  { %354 = vmatmul.mubr.bf16.gmra.mxu0 %v577_v36 }
  0xe5   :  { %v307_v38 = vpop.f32.mrf.mxu0  ;;  %v363_v39 = vpop.f32.mrf.mxu1 }
  0xe6   :  { %v308_v40 = vadd.f32 %v717_v37, %v307_v38  ;;  %v364_v41 = vadd.f32 %v717_v37, %v363_v39 }
  0xe7   :  { %v309_v42 = vpop.f32.mrf.mxu0  ;;  %v365_v43 = vpop.f32.mrf.mxu1 }
  0xe8   :  { %v409_v44 = vmax.f32 %v308_v40, 0.0  ;;  %v423_v45 = vmax.f32 %v364_v41, 0.0 }
  0xe9   :  { %v310_v46 = vpop.f32.mrf.mxu0  ;;  %v366_v47 = vpop.f32.mrf.mxu1 }
  0xea   :  { %434 = vst.msk [vmem:[%s847_s3] sm:$0xff] %vm233_vm0, %v409_v44  ;;  %v311_v48 = vadd.f32 %v717_v37, %v310_v46  ;;  %448 = vst.msk [vmem:[%s847_s3 + $0x70] sm:$0xff] %vm233_vm0, %v423_v45  ;;  %v367_v49 = vadd.f32 %v717_v37, %v366_v47 }
  0xeb   :  { %v312_v50 = vpop.f32.mrf.mxu0  ;;  %v368_v51 = vpop.f32.mrf.mxu1 }
  0xec   :  { %v410_v52 = vmax.f32 %v311_v48, 0.0  ;;  %v424_v53 = vmax.f32 %v367_v49, 0.0 }
  0xed   :  { %v315_v54 = vpop.f32.mrf.mxu0  ;;  %v371_v55 = vpop.f32.mrf.mxu1 }
  0xee   :  { %435 = vst.msk [vmem:[%s847_s3 + $0x8] sm:$0xff] %vm233_vm0, %v410_v52  ;;  %v316_v56 = vadd.f32 %v717_v37, %v315_v54  ;;  %449 = vst.msk [vmem:[%s847_s3 + $0x78] sm:$0xff] %vm233_vm0, %v424_v53  ;;  %v372_v57 = vadd.f32 %v717_v37, %v371_v55 }
  0xef   :  { %v317_v58 = vpop.f32.mrf.mxu0  ;;  %v373_v59 = vpop.f32.mrf.mxu1 }
  0xf0   :  { %v411_v60 = vmax.f32 %v316_v56, 0.0  ;;  %v425_v61 = vmax.f32 %v372_v57, 0.0 }
  0xf1   :  { %v318_v62 = vpop.f32.mrf.mxu0  ;;  %v374_v63 = vpop.f32.mrf.mxu1 }
  0xf2   :  { %436 = vst.msk [vmem:[%s847_s3 + $0x10] sm:$0xff] %vm233_vm0, %v411_v60  ;;  %v319_v0 = vadd.f32 %v717_v37, %v318_v62  ;;  %450 = vst.msk [vmem:[%s847_s3 + $0x80] sm:$0xff] %vm233_vm0, %v425_v61  ;;  %v375_v1 = vadd.f32 %v717_v37, %v374_v63 }
  0xf3   :  { %v320_v2 = vpop.f32.mrf.mxu0  ;;  %v376_v3 = vpop.f32.mrf.mxu1 }
  0xf4   :  { %v412_v4 = vmax.f32 %v319_v0, 0.0  ;;  %v426_v5 = vmax.f32 %v375_v1, 0.0 }
  0xf5   :  { %v323_v6 = vpop.f32.mrf.mxu0  ;;  %v379_v7 = vpop.f32.mrf.mxu1 }
  0xf6   :  { %437 = vst.msk [vmem:[%s847_s3 + $0x18] sm:$0xff] %vm233_vm0, %v412_v4  ;;  %v324_v8 = vadd.f32 %v717_v37, %v323_v6  ;;  %451 = vst.msk [vmem:[%s847_s3 + $0x88] sm:$0xff] %vm233_vm0, %v426_v5  ;;  %v380_v9 = vadd.f32 %v717_v37, %v379_v7 }
  0xf7   :  { %v325_v10 = vpop.f32.mrf.mxu0  ;;  %v381_v11 = vpop.f32.mrf.mxu1 }
  0xf8   :  { %v413_v12 = vmax.f32 %v324_v8, 0.0  ;;  %v427_v13 = vmax.f32 %v380_v9, 0.0 }
  0xf9   :  { %v326_v14 = vpop.f32.mrf.mxu0  ;;  %v382_v15 = vpop.f32.mrf.mxu1 }
  0xfa   :  { %438 = vst.msk [vmem:[%s847_s3 + $0x20] sm:$0xff] %vm233_vm0, %v413_v12  ;;  %v327_v16 = vadd.f32 %v717_v37, %v326_v14  ;;  %452 = vst.msk [vmem:[%s847_s3 + $0x90] sm:$0xff] %vm233_vm0, %v427_v13  ;;  %v383_v17 = vadd.f32 %v717_v37, %v382_v15 }
  0xfb   :  { %v328_v18 = vpop.f32.mrf.mxu0  ;;  %v384_v19 = vpop.f32.mrf.mxu1 }
  0xfc   :  { %v414_v20 = vmax.f32 %v327_v16, 0.0  ;;  %v428_v21 = vmax.f32 %v383_v17, 0.0 }
  0xfd   :  { %v331_v22 = vpop.f32.mrf.mxu0  ;;  %v387_v23 = vpop.f32.mrf.mxu1 }
  0xfe   :  { %439 = vst.msk [vmem:[%s847_s3 + $0x28] sm:$0xff] %vm233_vm0, %v414_v20  ;;  %v332_v24 = vadd.f32 %v717_v37, %v331_v22  ;;  %453 = vst.msk [vmem:[%s847_s3 + $0x98] sm:$0xff] %vm233_vm0, %v428_v21  ;;  %v388_v25 = vadd.f32 %v717_v37, %v387_v23 }
  0xff   :  { %v333_v26 = vpop.f32.mrf.mxu0  ;;  %v389_v27 = vpop.f32.mrf.mxu1 }
 0x100   :  { %v415_v28 = vmax.f32 %v332_v24, 0.0  ;;  %v429_v29 = vmax.f32 %v388_v25, 0.0 }
 0x101   :  { %v334_v30 = vpop.f32.mrf.mxu0  ;;  %v390_v31 = vpop.f32.mrf.mxu1 }
 0x102   :  { %440 = vst.msk [vmem:[%s847_s3 + $0x30] sm:$0xff] %vm233_vm0, %v415_v28  ;;  %v335_v32 = vadd.f32 %v717_v37, %v334_v30  ;;  %454 = vst.msk [vmem:[%s847_s3 + $0xa0] sm:$0xff] %vm233_vm0, %v429_v29  ;;  %v391_v33 = vadd.f32 %v717_v37, %v390_v31 }
 0x103   :  { %v336_v34 = vpop.f32.mrf.mxu0  ;;  %v392_v35 = vpop.f32.mrf.mxu1 }
 0x104   :  { %v416_v36 = vmax.f32 %v335_v32, 0.0  ;;  %v430_v38 = vmax.f32 %v391_v33, 0.0 }
 0x105   :  { %v339_v39 = vpop.f32.mrf.mxu0  ;;  %v395_v40 = vpop.f32.mrf.mxu1 }
 0x106   :  { %441 = vst.msk [vmem:[%s847_s3 + $0x38] sm:$0xff] %vm233_vm0, %v416_v36  ;;  %v340_v41 = vadd.f32 %v717_v37, %v339_v39  ;;  %455 = vst.msk [vmem:[%s847_s3 + $0xa8] sm:$0xff] %vm233_vm0, %v430_v38  ;;  %v396_v42 = vadd.f32 %v717_v37, %v395_v40 }
 0x107   :  { %v341_v43 = vpop.f32.mrf.mxu0  ;;  %v397_v44 = vpop.f32.mrf.mxu1 }
 0x108   :  { %v417_v45 = vmax.f32 %v340_v41, 0.0  ;;  %v431_v46 = vmax.f32 %v396_v42, 0.0 }
 0x109   :  { %v342_v47 = vpop.f32.mrf.mxu0  ;;  %v398_v48 = vpop.f32.mrf.mxu1 }
 0x10a   :  { %442 = vst.msk [vmem:[%s847_s3 + $0x40] sm:$0xff] %vm233_vm0, %v417_v45  ;;  %v343_v49 = vadd.f32 %v717_v37, %v342_v47  ;;  %456 = vst.msk [vmem:[%s847_s3 + $0xb0] sm:$0xff] %vm233_vm0, %v431_v46  ;;  %v399_v50 = vadd.f32 %v717_v37, %v398_v48 }
 0x10b   :  { %v344_v51 = vpop.f32.mrf.mxu0  ;;  %v400_v52 = vpop.f32.mrf.mxu1 }
 0x10c   :  { %v418_v53 = vmax.f32 %v343_v49, 0.0  ;;  %v432_v54 = vmax.f32 %v399_v50, 0.0 }
 0x10d   :  { %v347_v55 = vpop.f32.mrf.mxu0  ;;  %v403_v56 = vpop.f32.mrf.mxu1 }
 0x10e   :  { %443 = vst.msk [vmem:[%s847_s3 + $0x48] sm:$0xff] %vm233_vm0, %v418_v53  ;;  %v348_v57 = vadd.f32 %v717_v37, %v347_v55  ;;  %457 = vst.msk [vmem:[%s847_s3 + $0xb8] sm:$0xff] %vm233_vm0, %v432_v54  ;;  %v404_v58 = vadd.f32 %v717_v37, %v403_v56 }
 0x10f   :  { %v349_v59 = vpop.f32.mrf.mxu0  ;;  %v405_v60 = vpop.f32.mrf.mxu1 }
 0x110   :  { %v419_v61 = vmax.f32 %v348_v57, 0.0  ;;  %v433_v62 = vmax.f32 %v404_v58, 0.0 }
 0x111   :  { %v350_v63 = vpop.f32.mrf.mxu0  ;;  %v406_v0 = vpop.f32.mrf.mxu1 }
 0x112   :  { %444 = vst.msk [vmem:[%s847_s3 + $0x50] sm:$0xff] %vm233_vm0, %v419_v61  ;;  %v351_v1 = vadd.f32 %v717_v37, %v350_v63  ;;  %458 = vst.msk [vmem:[%s847_s3 + $0xc0] sm:$0xff] %vm233_vm0, %v433_v62 }
 0x113   :  { %v352_v2 = vpop.f32.mrf.mxu0  ;;  %v407_v3 = vpop.f32.mrf.mxu1 }
 0x114   :  { %v420_v4 = vmax.f32 %v351_v1, 0.0 }
 0x115   :  { %v355_v5 = vpop.f32.mrf.mxu0 }
 0x116   :  { %445 = vst.msk [vmem:[%s847_s3 + $0x58] sm:$0xff] %vm233_vm0, %v420_v4  ;;  %v356_v6 = vadd.f32 %v717_v37, %v355_v5 }
 0x117   :  { %v357_v7 = vpop.f32.mrf.mxu0 }
 0x118   :  { %v421_v8 = vmax.f32 %v356_v6, 0.0 }
 0x119   :  { %v358_v9 = vpop.f32.mrf.mxu0 }
 0x11a   :  { %446 = vst.msk [vmem:[%s847_s3 + $0x60] sm:$0xff] %vm233_vm0, %v421_v8  ;;  %v359_v10 = vadd.f32 %v717_v37, %v358_v9 }
 0x11b   :  { %v360_v11 = vpop.f32.mrf.mxu0 }
 0x11c   :  { %v422_v12 = vmax.f32 %v359_v10, 0.0 }
 0x11e   :  { %447 = vst.msk [vmem:[%s847_s3 + $0x68] sm:$0xff] %vm233_vm0, %v422_v12 }

// kernel: resnet_forward.15
= control target key start
LH: loop header
LB: loop body
LE: loop exit
PB: predicated region body
PF: predicated region fallthrough
CT: control target
= control target key end

     0   :  { %v437_v0 = vmov 0.0   ;;  %vm438_vm0 = vmmov 0   ;;  %vm118_vm1 = vcmask 130048   ;;  %s657_s1 = inlined_call_operand.vmem [shape: bf16[16,16], index: 1, kind: input, shape index: {}]   ;;  %s658_s0 = inlined_call_operand.vmem [shape: bf16[200,16], index: 0, kind: input, shape index: {}]   ;;  %s659_s2 = inlined_call_operand.vmem [shape: f32[1,16], index: 2, kind: input, shape index: {}]   ;;  %s660_s3 = inlined_call_operand.vmem [shape: f32[200,16], index: 3, kind: output, shape index: {}]  }
   0x1   :  { %365 = vmatprep.subr.bf16.mxu0 %v437_v0  ;;  %v423_v1 = vld [vmem:[%s657_s1] sm:$0xff]   ;;  %419 = vmatprep.subr.bf16.mxu1 %v437_v0  ;;  %v425_v3 = vld [vmem:[%s658_s0 + $0x38] sm:$0xff]   ;;  %v426_v4 = vld [vmem:[%s658_s0 + $0x8] sm:$0xff]  }
   0x2   :  { %367 = vmatprep.mubr.msk.bf16.mxu0 %vm438_vm0, %v437_v0  ;;  %v424_v2 = vld [vmem:[%s658_s0] sm:$0xff]   ;;  %395 = vmatprep.mubr.msk.bf16.mxu1 %vm438_vm0, %v437_v0  ;;  %v428_v6 = vld [vmem:[%s658_s0 + $0x10] sm:$0xff]   ;;  %v429_v7 = vld [vmem:[%s658_s0 + $0x48] sm:$0xff]  }
   0x3   :  { %366 = vmatpush3.bf16.msra.mxu0 %v423_v1  ;;  %420 = vmatpush3.bf16.msra.mxu1 %v423_v1  ;;  %v427_v5 = vld [vmem:[%s658_s0 + $0x40] sm:$0xff]   ;;  %v430_v8 = vld [vmem:[%s658_s0 + $0x18] sm:$0xff]   ;;  %v431_v9 = vld [vmem:[%s658_s0 + $0x50] sm:$0xff]  }
   0x4   :  { %v432_v10 = vld [vmem:[%s658_s0 + $0x20] sm:$0xff]   ;;  %v433_v11 = vld [vmem:[%s658_s0 + $0x58] sm:$0xff]   ;;  %v434_v12 = vld [vmem:[%s658_s0 + $0x28] sm:$0xff]  }
   0x5   :  { %v435_v13 = vld [vmem:[%s658_s0 + $0x60] ss:$0 sps:$4 sm:$0xff]   ;;  %v436_v14 = vld [vmem:[%s658_s0 + $0x30] sm:$0xff]  }
   0x6   :  { %368 = vmatmul.mubr.msk.bf16.vlgmr.msra.gmra.mxu0 %vm118_vm1, %v424_v2  ;;  %396 = vmatmul.mubr.msk.bf16.vlgmr.msra.gmra.mxu1 %vm118_vm1, %v425_v3  ;;  %v530_v15 = vld [vmem:[%s659_s2] ss:$0 sm:$0xff] }
   0x7   :  { %371 = vmatprep.mubr.msk.bf16.mxu0 %vm438_vm0, %v437_v0  ;;  %399 = vmatprep.mubr.msk.bf16.mxu1 %vm438_vm0, %v437_v0 }
   0xe   :  { %372 = vmatmul.mubr.msk.bf16.gmra.mxu0 %vm118_vm1, %v426_v4  ;;  %400 = vmatmul.mubr.msk.bf16.gmra.mxu1 %vm118_vm1, %v427_v5 }
   0xf   :  { %375 = vmatprep.mubr.msk.bf16.mxu0 %vm438_vm0, %v437_v0  ;;  %403 = vmatprep.mubr.msk.bf16.mxu1 %vm438_vm0, %v437_v0 }
  0x16   :  { %376 = vmatmul.mubr.msk.bf16.gmra.mxu0 %vm118_vm1, %v428_v6  ;;  %404 = vmatmul.mubr.msk.bf16.gmra.mxu1 %vm118_vm1, %v429_v7 }
  0x17   :  { %379 = vmatprep.mubr.msk.bf16.mxu0 %vm438_vm0, %v437_v0  ;;  %407 = vmatprep.mubr.msk.bf16.mxu1 %vm438_vm0, %v437_v0 }
  0x1e   :  { %380 = vmatmul.mubr.msk.bf16.gmra.mxu0 %vm118_vm1, %v430_v8  ;;  %408 = vmatmul.mubr.msk.bf16.gmra.mxu1 %vm118_vm1, %v431_v9 }
  0x1f   :  { %383 = vmatprep.mubr.msk.bf16.mxu0 %vm438_vm0, %v437_v0  ;;  %411 = vmatprep.mubr.msk.bf16.mxu1 %vm438_vm0, %v437_v0 }
  0x26   :  { %384 = vmatmul.mubr.msk.bf16.gmra.mxu0 %vm118_vm1, %v432_v10  ;;  %412 = vmatmul.mubr.msk.bf16.gmra.mxu1 %vm118_vm1, %v433_v11 }
  0x27   :  { %387 = vmatprep.mubr.msk.bf16.mxu0 %vm438_vm0, %v437_v0  ;;  %415 = vmatprep.mubr.msk.bf16.mxu1 %vm438_vm0, %v437_v0 }
  0x2e   :  { %388 = vmatmul.mubr.msk.bf16.gmra.mxu0 %vm118_vm1, %v434_v12  ;;  %416 = vmatmul.mubr.msk.bf16.gmra.mxu1 %vm118_vm1, %v435_v13 }
  0x2f   :  { %391 = vmatprep.mubr.msk.bf16.mxu0 %vm438_vm0, %v437_v0 }
  0x36   :  { %392 = vmatmul.mubr.msk.bf16.gmra.mxu0 %vm118_vm1, %v436_v14 }
  0xc6   :  { %v192_v16 = vpop.f32.mrf.mxu0  ;;  %v248_v17 = vpop.f32.mrf.mxu1 }
  0xc7   :  { %v193_v18 = vadd.f32 %v530_v15, %v192_v16  ;;  %v249_v19 = vadd.f32 %v530_v15, %v248_v17 }
  0xc8   :  { %v369_v20 = vpop.f32.mrf.mxu0  ;;  %v397_v21 = vpop.f32.mrf.mxu1 }
  0xc9   :  { %294 = vst.msk [vmem:[%s660_s3] sm:$0xff] %vm118_vm1, %v193_v18  ;;  %308 = vst.msk [vmem:[%s660_s3 + $0x70] sm:$0xff] %vm118_vm1, %v249_v19 }
  0xca   :  { %v195_v22 = vpop.f32.mrf.mxu0  ;;  %v251_v23 = vpop.f32.mrf.mxu1 }
  0xcb   :  { %v196_v24 = vadd.f32 %v530_v15, %v195_v22  ;;  %v252_v25 = vadd.f32 %v530_v15, %v251_v23 }
  0xcc   :  { %v370_v26 = vpop.f32.mrf.mxu0  ;;  %v398_v27 = vpop.f32.mrf.mxu1 }
  0xcd   :  { %295 = vst.msk [vmem:[%s660_s3 + $0x8] sm:$0xff] %vm118_vm1, %v196_v24  ;;  %309 = vst.msk [vmem:[%s660_s3 + $0x78] sm:$0xff] %vm118_vm1, %v252_v25 }
  0xce   :  { %v200_v28 = vpop.f32.mrf.mxu0  ;;  %v256_v29 = vpop.f32.mrf.mxu1 }
  0xcf   :  { %v201_v30 = vadd.f32 %v530_v15, %v200_v28  ;;  %v257_v31 = vadd.f32 %v530_v15, %v256_v29 }
  0xd0   :  { %v373_v32 = vpop.f32.mrf.mxu0  ;;  %v401_v33 = vpop.f32.mrf.mxu1 }
  0xd1   :  { %296 = vst.msk [vmem:[%s660_s3 + $0x10] sm:$0xff] %vm118_vm1, %v201_v30  ;;  %310 = vst.msk [vmem:[%s660_s3 + $0x80] sm:$0xff] %vm118_vm1, %v257_v31 }
  0xd2   :  { %v203_v34 = vpop.f32.mrf.mxu0  ;;  %v259_v35 = vpop.f32.mrf.mxu1 }
  0xd3   :  { %v204_v36 = vadd.f32 %v530_v15, %v203_v34  ;;  %v260_v37 = vadd.f32 %v530_v15, %v259_v35 }
  0xd4   :  { %v374_v38 = vpop.f32.mrf.mxu0  ;;  %v402_v39 = vpop.f32.mrf.mxu1 }
  0xd5   :  { %297 = vst.msk [vmem:[%s660_s3 + $0x18] sm:$0xff] %vm118_vm1, %v204_v36  ;;  %311 = vst.msk [vmem:[%s660_s3 + $0x88] sm:$0xff] %vm118_vm1, %v260_v37 }
  0xd6   :  { %v208_v40 = vpop.f32.mrf.mxu0  ;;  %v264_v41 = vpop.f32.mrf.mxu1 }
  0xd7   :  { %v209_v42 = vadd.f32 %v530_v15, %v208_v40  ;;  %v265_v43 = vadd.f32 %v530_v15, %v264_v41 }
  0xd8   :  { %v377_v44 = vpop.f32.mrf.mxu0  ;;  %v405_v45 = vpop.f32.mrf.mxu1 }
  0xd9   :  { %298 = vst.msk [vmem:[%s660_s3 + $0x20] sm:$0xff] %vm118_vm1, %v209_v42  ;;  %312 = vst.msk [vmem:[%s660_s3 + $0x90] sm:$0xff] %vm118_vm1, %v265_v43 }
  0xda   :  { %v211_v46 = vpop.f32.mrf.mxu0  ;;  %v267_v47 = vpop.f32.mrf.mxu1 }
  0xdb   :  { %v212_v48 = vadd.f32 %v530_v15, %v211_v46  ;;  %v268_v49 = vadd.f32 %v530_v15, %v267_v47 }
  0xdc   :  { %v378_v50 = vpop.f32.mrf.mxu0  ;;  %v406_v51 = vpop.f32.mrf.mxu1 }
  0xdd   :  { %299 = vst.msk [vmem:[%s660_s3 + $0x28] sm:$0xff] %vm118_vm1, %v212_v48  ;;  %313 = vst.msk [vmem:[%s660_s3 + $0x98] sm:$0xff] %vm118_vm1, %v268_v49 }
  0xde   :  { %v216_v52 = vpop.f32.mrf.mxu0  ;;  %v272_v53 = vpop.f32.mrf.mxu1 }
  0xdf   :  { %v217_v54 = vadd.f32 %v530_v15, %v216_v52  ;;  %v273_v55 = vadd.f32 %v530_v15, %v272_v53 }
  0xe0   :  { %v381_v56 = vpop.f32.mrf.mxu0  ;;  %v409_v57 = vpop.f32.mrf.mxu1 }
  0xe1   :  { %300 = vst.msk [vmem:[%s660_s3 + $0x30] sm:$0xff] %vm118_vm1, %v217_v54  ;;  %314 = vst.msk [vmem:[%s660_s3 + $0xa0] sm:$0xff] %vm118_vm1, %v273_v55 }
  0xe2   :  { %v219_v58 = vpop.f32.mrf.mxu0  ;;  %v275_v59 = vpop.f32.mrf.mxu1 }
  0xe3   :  { %v220_v60 = vadd.f32 %v530_v15, %v219_v58  ;;  %v276_v61 = vadd.f32 %v530_v15, %v275_v59 }
  0xe4   :  { %v382_v62 = vpop.f32.mrf.mxu0  ;;  %v410_v63 = vpop.f32.mrf.mxu1 }
  0xe5   :  { %301 = vst.msk [vmem:[%s660_s3 + $0x38] sm:$0xff] %vm118_vm1, %v220_v60  ;;  %315 = vst.msk [vmem:[%s660_s3 + $0xa8] sm:$0xff] %vm118_vm1, %v276_v61 }
  0xe6   :  { %v224_v0 = vpop.f32.mrf.mxu0  ;;  %v280_v1 = vpop.f32.mrf.mxu1 }
  0xe7   :  { %v225_v2 = vadd.f32 %v530_v15, %v224_v0  ;;  %v281_v3 = vadd.f32 %v530_v15, %v280_v1 }
  0xe8   :  { %v385_v4 = vpop.f32.mrf.mxu0  ;;  %v413_v5 = vpop.f32.mrf.mxu1 }
  0xe9   :  { %302 = vst.msk [vmem:[%s660_s3 + $0x40] sm:$0xff] %vm118_vm1, %v225_v2  ;;  %316 = vst.msk [vmem:[%s660_s3 + $0xb0] sm:$0xff] %vm118_vm1, %v281_v3 }
  0xea   :  { %v227_v6 = vpop.f32.mrf.mxu0  ;;  %v283_v7 = vpop.f32.mrf.mxu1 }
  0xeb   :  { %v228_v8 = vadd.f32 %v530_v15, %v227_v6  ;;  %v284_v9 = vadd.f32 %v530_v15, %v283_v7 }
  0xec   :  { %v386_v10 = vpop.f32.mrf.mxu0  ;;  %v414_v11 = vpop.f32.mrf.mxu1 }
  0xed   :  { %303 = vst.msk [vmem:[%s660_s3 + $0x48] sm:$0xff] %vm118_vm1, %v228_v8  ;;  %317 = vst.msk [vmem:[%s660_s3 + $0xb8] sm:$0xff] %vm118_vm1, %v284_v9 }
  0xee   :  { %v232_v12 = vpop.f32.mrf.mxu0  ;;  %v288_v13 = vpop.f32.mrf.mxu1 }
  0xef   :  { %v233_v14 = vadd.f32 %v530_v15, %v232_v12  ;;  %v289_v16 = vadd.f32 %v530_v15, %v288_v13 }
  0xf0   :  { %v389_v17 = vpop.f32.mrf.mxu0  ;;  %v417_v18 = vpop.f32.mrf.mxu1 }
  0xf1   :  { %304 = vst.msk [vmem:[%s660_s3 + $0x50] sm:$0xff] %vm118_vm1, %v233_v14  ;;  %318 = vst.msk [vmem:[%s660_s3 + $0xc0] sm:$0xff] %vm118_vm1, %v289_v16 }
  0xf2   :  { %v235_v19 = vpop.f32.mrf.mxu0  ;;  %v291_v20 = vpop.f32.mrf.mxu1 }
  0xf3   :  { %v236_v21 = vadd.f32 %v530_v15, %v235_v19 }
  0xf4   :  { %v390_v22 = vpop.f32.mrf.mxu0  ;;  %v418_v23 = vpop.f32.mrf.mxu1 }
  0xf5   :  { %305 = vst.msk [vmem:[%s660_s3 + $0x58] sm:$0xff] %vm118_vm1, %v236_v21 }
  0xf6   :  { %v240_v24 = vpop.f32.mrf.mxu0 }
  0xf7   :  { %v241_v25 = vadd.f32 %v530_v15, %v240_v24 }
  0xf8   :  { %v393_v26 = vpop.f32.mrf.mxu0 }
  0xf9   :  { %306 = vst.msk [vmem:[%s660_s3 + $0x60] sm:$0xff] %vm118_vm1, %v241_v25 }
  0xfa   :  { %v243_v27 = vpop.f32.mrf.mxu0 }
  0xfb   :  { %v244_v28 = vadd.f32 %v530_v15, %v243_v27 }
  0xfc   :  { %v394_v29 = vpop.f32.mrf.mxu0 }
  0xfd   :  { %307 = vst.msk [vmem:[%s660_s3 + $0x68] sm:$0xff] %vm118_vm1, %v244_v28 }

// kernel: resnet_forward.16
= control target key start
LH: loop header
LB: loop body
LE: loop exit
PB: predicated region body
PF: predicated region fallthrough
CT: control target
= control target key end

     0   :  { %v631_v0 = vmov 0   ;;  %vm236_vm0 = vcmask 130048   ;;  %s977_s1 = inlined_call_operand.vmem [shape: bf16[144,16], index: 1, kind: input, shape index: {}]   ;;  %s978_s0 = inlined_call_operand.vmem [shape: bf16[200,144], index: 0, kind: input, shape index: {}]   ;;  %s979_s2 = inlined_call_operand.vmem [shape: f32[1,16], index: 2, kind: input, shape index: {}]   ;;  %s980_s3 = inlined_call_operand.vmem [shape: f32[200,16], index: 3, kind: input, shape index: {}]   ;;  %s981_s4 = inlined_call_operand.vmem [shape: f32[200,16], index: 4, kind: output, shape index: {}]  }
   0x1   :  { %276 = vmatprep.subr.bf16.mxu0 %v631_v0  ;;  %v584_v1 = vld [vmem:[%s977_s1 + $0x38] sm:$0xff]   ;;  %565 = vmatprep.subr.bf16.mxu1 %v631_v0  ;;  %v585_v2 = vld [vmem:[%s977_s1 + $0x30] sm:$0xff]   ;;  %v586_v3 = vld [vmem:[%s977_s1 + $0x28] sm:$0xff]  }
   0x2   :  { %277 = vmatpush1.bf16.msra.mxu0 %v584_v1  ;;  %574 = vmatpush1.bf16.msra.mxu1 %v584_v1  ;;  %v587_v4 = vld [vmem:[%s977_s1 + $0x20] sm:$0xff]   ;;  %v598_v6 = vld [vmem:[%s978_s0 + $0x74] ss:$8 sps:$4 sm:$0xff]   ;;  %v590_v9 = vld [vmem:[%s977_s1 + $0x8] sm:$0xff]  }
   0x3   :  { %278 = vmatprep.subr.bf16.mxu0 %v631_v0  ;;  %566 = vmatprep.subr.bf16.mxu1 %v631_v0  ;;  %v595_v5 = vld [vmem:[%s978_s0 + $0x4] ss:$8 sps:$4 sm:$0xff]   ;;  %v588_v7 = vld [vmem:[%s977_s1 + $0x18] sm:$0xff]   ;;  %v589_v8 = vld [vmem:[%s977_s1 + $0x10] sm:$0xff]  }
   0x4   :  { %552 = vmatprep.mubr.msk.bf16.mxu0 %vm236_vm0, %v595_v5  ;;  %559 = vmatprep.mubr.msk.bf16.mxu1 %vm236_vm0, %v598_v6  ;;  %v591_v10 = vld [vmem:[%s977_s1] sm:$0xff]   ;;  %v596_v13 = vld [vmem:[%s978_s0 + $0x70] ss:$8 sps:$4 sm:$0xff]   ;;  %v599_v14 = vld [vmem:[%s978_s0 + $0x14] ss:$8 sps:$4 sm:$0xff]  }
   0x5   :  { %v592_v11 = vld [vmem:[%s977_s1 + $0x40] sm:$0xff]   ;;  %v601_v16 = vld [vmem:[%s978_s0 + $0x10] ss:$8 sps:$4 sm:$0xff]   ;;  %v608_v19 = vld [vmem:[%s978_s0 + $0x94] ss:$8 sps:$4 sm:$0xff]  }
   0x6   :  { %279 = vmatpush1.bf16.msra.mxu0 %v585_v2  ;;  %575 = vmatpush1.bf16.msra.mxu1 %v585_v2  ;;  %v593_v12 = vld [vmem:[%s978_s0] ss:$8 sps:$4 sm:$0xff]   ;;  %v602_v15 = vld [vmem:[%s978_s0 + $0x84] ss:$8 sps:$4 sm:$0xff]   ;;  %v610_v21 = vld [vmem:[%s978_s0 + $0x90] ss:$8 sps:$4 sm:$0xff]  }
   0x7   :  { %280 = vmatprep.subr.bf16.mxu0 %v631_v0  ;;  %567 = vmatprep.subr.bf16.mxu1 %v631_v0  ;;  %v604_v17 = vld [vmem:[%s978_s0 + $0x80] ss:$8 sps:$4 sm:$0xff]   ;;  %v605_v18 = vld [vmem:[%s978_s0 + $0x24] ss:$8 sps:$4 sm:$0xff]   ;;  %v611_v22 = vld [vmem:[%s978_s0 + $0x34] ss:$8 sps:$4 sm:$0xff]  }
   0x8   :  { %v607_v20 = vld [vmem:[%s978_s0 + $0x20] ss:$8 sps:$4 sm:$0xff]   ;;  %v614_v23 = vld [vmem:[%s978_s0 + $0xa4] ss:$8 sps:$4 sm:$0xff]   ;;  %v613_v24 = vld [vmem:[%s978_s0 + $0x30] ss:$8 sps:$4 sm:$0xff]  }
   0x9   :  { %v616_v25 = vld [vmem:[%s978_s0 + $0xa0] ss:$8 sps:$4 sm:$0xff]   ;;  %v617_v26 = vld [vmem:[%s978_s0 + $0x44] ss:$8 sps:$4 sm:$0xff]   ;;  %v620_v27 = vld [vmem:[%s978_s0 + $0xb4] ss:$8 sps:$4 sm:$0xff]  }
   0xa   :  { %281 = vmatpush1.bf16.msra.mxu0 %v586_v3  ;;  %576 = vmatpush1.bf16.msra.mxu1 %v586_v3  ;;  %v42_v28 = vld [vmem:[%s978_s0 + $0xc0] sm:$0xff]  ;;  %v622_v30 = vld [vmem:[%s978_s0 + $0xb0] ss:$8 sps:$4 sm:$0xff]   ;;  %v623_v31 = vld [vmem:[%s978_s0 + $0x54] ss:$8 sps:$4 sm:$0xff]  }
   0xb   :  { %282 = vmatprep.subr.bf16.mxu0 %v631_v0  ;;  %568 = vmatprep.subr.bf16.mxu1 %v631_v0  ;;  %v619_v29 = vld [vmem:[%s978_s0 + $0x40] ss:$8 sps:$4 sm:$0xff]   ;;  %v542_v32 = vcombine.high %v42_v28, %v42_v28  ;;  %v625_v33 = vld [vmem:[%s978_s0 + $0x50] ss:$8 sps:$4 sm:$0xff]   ;;  %v541_v34 = vcombine.low %v42_v28, %v42_v28  ;;  %v628_v35 = vld [vmem:[%s978_s0 + $0x64] ss:$8 sps:$4 sm:$0xff]  }
   0xc   :  { %v630_v36 = vld [vmem:[%s978_s0 + $0x60] ss:$8 sps:$4 sm:$0xff]   ;;  %v426_v41 = vld [vmem:[%s980_s3 + $0x70] sm:$0xff]  ;;  %v427_v51 = vld [vmem:[%s980_s3 + $0x78] sm:$0xff] }
   0xd   :  { %v775_v37 = vld [vmem:[%s979_s2] ss:$0 sm:$0xff]  ;;  %v413_v49 = vld [vmem:[%s980_s3 + $0x8] sm:$0xff]  ;;  %v414_v61 = vld [vmem:[%s980_s3 + $0x10] sm:$0xff] }
   0xe   :  { %283 = vmatpush1.bf16.msra.mxu0 %v587_v4  ;;  %577 = vmatpush1.bf16.msra.mxu1 %v587_v4  ;;  %v412_v39 = vld [vmem:[%s980_s3] sm:$0xff] }
   0xf   :  { %284 = vmatprep.subr.bf16.mxu0 %v631_v0  ;;  %569 = vmatprep.subr.bf16.mxu1 %v631_v0  ;;  %v428_v63 = vld [vmem:[%s980_s3 + $0x80] sm:$0xff] }
  0x12   :  { %285 = vmatpush1.bf16.msra.mxu0 %v588_v7  ;;  %578 = vmatpush1.bf16.msra.mxu1 %v588_v7 }
  0x13   :  { %286 = vmatprep.subr.bf16.mxu0 %v631_v0  ;;  %570 = vmatprep.subr.bf16.mxu1 %v631_v0 }
  0x16   :  { %287 = vmatpush1.bf16.msra.mxu0 %v589_v8  ;;  %579 = vmatpush1.bf16.msra.mxu1 %v589_v8 }
  0x17   :  { %288 = vmatprep.subr.bf16.mxu0 %v631_v0  ;;  %571 = vmatprep.subr.bf16.mxu1 %v631_v0 }
  0x1a   :  { %289 = vmatpush1.bf16.msra.mxu0 %v590_v9  ;;  %580 = vmatpush1.bf16.msra.mxu1 %v590_v9  ;;  %v415_v9 = vld [vmem:[%s980_s3 + $0x18] sm:$0xff] }
  0x1b   :  { %290 = vmatprep.subr.bf16.mxu0 %v631_v0  ;;  %572 = vmatprep.subr.bf16.mxu1 %v631_v0 }
  0x1e   :  { %291 = vmatpush1.bf16.msra.mxu0 %v591_v10  ;;  %581 = vmatpush1.bf16.msra.mxu1 %v591_v10 }
  0x1f   :  { %306 = vmatprep.subr.bf16.mxu0 %v631_v0  ;;  %573 = vmatprep.subr.bf16.mxu1 %v631_v0 }
  0x22   :  { %307 = vmatpush2.bf16.msra.mxu0 %v592_v11  ;;  %582 = vmatpush2.bf16.msra.mxu1 %v592_v11  ;;  %v429_v11 = vld [vmem:[%s980_s3 + $0x88] sm:$0xff] }
  0x25   :  { %309 = vmatmul.mubr.bf16.vlgmr.msra.gmra.mxu0 %v593_v12  ;;  %365 = vmatmul.mubr.bf16.vlgmr.msra.gmra.mxu1 %v596_v13 }
  0x26   :  { %553 = vmatprep.mubr.msk.bf16.mxu0 %vm236_vm0, %v599_v14  ;;  %560 = vmatprep.mubr.msk.bf16.mxu1 %vm236_vm0, %v602_v15 }
  0x2d   :  { %317 = vmatmul.mubr.bf16.gmra.mxu0 %v601_v16  ;;  %373 = vmatmul.mubr.bf16.gmra.mxu1 %v604_v17 }
  0x2e   :  { %554 = vmatprep.mubr.msk.bf16.mxu0 %vm236_vm0, %v605_v18  ;;  %561 = vmatprep.mubr.msk.bf16.mxu1 %vm236_vm0, %v608_v19 }
  0x35   :  { %325 = vmatmul.mubr.bf16.gmra.mxu0 %v607_v20  ;;  %381 = vmatmul.mubr.bf16.gmra.mxu1 %v610_v21  ;;  %v416_v21 = vld [vmem:[%s980_s3 + $0x20] sm:$0xff] }
  0x36   :  { %555 = vmatprep.mubr.msk.bf16.mxu0 %vm236_vm0, %v611_v22  ;;  %562 = vmatprep.mubr.msk.bf16.mxu1 %vm236_vm0, %v614_v23  ;;  %v430_v23 = vld [vmem:[%s980_s3 + $0x90] sm:$0xff] }
  0x3d   :  { %333 = vmatmul.mubr.bf16.gmra.mxu0 %v613_v24  ;;  %389 = vmatmul.mubr.bf16.gmra.mxu1 %v616_v25 }
  0x3e   :  { %556 = vmatprep.mubr.msk.bf16.mxu0 %vm236_vm0, %v617_v26  ;;  %563 = vmatprep.mubr.msk.bf16.mxu1 %vm236_vm0, %v620_v27 }
  0x45   :  { %341 = vmatmul.mubr.bf16.gmra.mxu0 %v619_v29  ;;  %397 = vmatmul.mubr.bf16.gmra.mxu1 %v622_v30 }
  0x46   :  { %557 = vmatprep.mubr.msk.bf16.mxu0 %vm236_vm0, %v623_v31  ;;  %564 = vmatprep.mubr.msk.bf16.mxu1 %vm236_vm0, %v542_v32 }
  0x4d   :  { %349 = vmatmul.mubr.bf16.gmra.mxu0 %v625_v33  ;;  %405 = vmatmul.mubr.bf16.gmra.mxu1 %v541_v34  ;;  %v417_v33 = vld [vmem:[%s980_s3 + $0x28] sm:$0xff] }
  0x4e   :  { %558 = vmatprep.mubr.msk.bf16.mxu0 %vm236_vm0, %v628_v35  ;;  %v431_v35 = vld [vmem:[%s980_s3 + $0x98] sm:$0xff] }
  0x55   :  { %357 = vmatmul.mubr.bf16.gmra.mxu0 %v630_v36 }
  0xe5   :  { %v310_v38 = vpop.f32.mrf.mxu0  ;;  %v366_v40 = vpop.f32.mrf.mxu1 }
  0xe6   :  { %v311_v42 = vadd.f32 %v775_v37, %v310_v38  ;;  %v367_v43 = vadd.f32 %v775_v37, %v366_v40 }
  0xe7   :  { %v312_v44 = vpop.f32.mrf.mxu0  ;;  %v368_v45 = vpop.f32.mrf.mxu1 }
  0xe8   :  { %v437_v46 = vadd.f32 %v412_v39, %v311_v42  ;;  %v451_v47 = vadd.f32 %v426_v41, %v367_v43 }
  0xe9   :  { %v313_v48 = vpop.f32.mrf.mxu0  ;;  %v369_v50 = vpop.f32.mrf.mxu1 }
  0xea   :  { %v462_v52 = vmax.f32 %v437_v46, 0.0  ;;  %v314_v53 = vadd.f32 %v775_v37, %v313_v48  ;;  %v476_v54 = vmax.f32 %v451_v47, 0.0  ;;  %v370_v55 = vadd.f32 %v775_v37, %v369_v50  ;;  %v418_v46 = vld [vmem:[%s980_s3 + $0x30] sm:$0xff]  ;;  %v432_v48 = vld [vmem:[%s980_s3 + $0xa0] sm:$0xff] }
  0xeb   :  { %v315_v56 = vpop.f32.mrf.mxu0  ;;  %v371_v57 = vpop.f32.mrf.mxu1 }
  0xec   :  { %487 = vst.msk [vmem:[%s981_s4] sm:$0xff] %vm236_vm0, %v462_v52  ;;  %v438_v58 = vadd.f32 %v413_v49, %v314_v53  ;;  %501 = vst.msk [vmem:[%s981_s4 + $0x70] sm:$0xff] %vm236_vm0, %v476_v54  ;;  %v452_v59 = vadd.f32 %v427_v51, %v370_v55 }
  0xed   :  { %v318_v60 = vpop.f32.mrf.mxu0  ;;  %v374_v62 = vpop.f32.mrf.mxu1 }
  0xee   :  { %v463_v0 = vmax.f32 %v438_v58, 0.0  ;;  %v319_v1 = vadd.f32 %v775_v37, %v318_v60  ;;  %v477_v2 = vmax.f32 %v452_v59, 0.0  ;;  %v375_v3 = vadd.f32 %v775_v37, %v374_v62  ;;  %v419_v58 = vld [vmem:[%s980_s3 + $0x38] sm:$0xff]  ;;  %v433_v60 = vld [vmem:[%s980_s3 + $0xa8] sm:$0xff] }
  0xef   :  { %v320_v4 = vpop.f32.mrf.mxu0  ;;  %v376_v5 = vpop.f32.mrf.mxu1 }
  0xf0   :  { %488 = vst.msk [vmem:[%s981_s4 + $0x8] sm:$0xff] %vm236_vm0, %v463_v0  ;;  %v439_v6 = vadd.f32 %v414_v61, %v319_v1  ;;  %502 = vst.msk [vmem:[%s981_s4 + $0x78] sm:$0xff] %vm236_vm0, %v477_v2  ;;  %v453_v7 = vadd.f32 %v428_v63, %v375_v3 }
  0xf1   :  { %v321_v8 = vpop.f32.mrf.mxu0  ;;  %v377_v10 = vpop.f32.mrf.mxu1 }
  0xf2   :  { %v464_v12 = vmax.f32 %v439_v6, 0.0  ;;  %v322_v13 = vadd.f32 %v775_v37, %v321_v8  ;;  %v478_v14 = vmax.f32 %v453_v7, 0.0  ;;  %v378_v15 = vadd.f32 %v775_v37, %v377_v10  ;;  %v420_v6 = vld [vmem:[%s980_s3 + $0x40] sm:$0xff]  ;;  %v434_v8 = vld [vmem:[%s980_s3 + $0xb0] sm:$0xff] }
  0xf3   :  { %v323_v16 = vpop.f32.mrf.mxu0  ;;  %v379_v17 = vpop.f32.mrf.mxu1 }
  0xf4   :  { %489 = vst.msk [vmem:[%s981_s4 + $0x10] sm:$0xff] %vm236_vm0, %v464_v12  ;;  %v440_v18 = vadd.f32 %v415_v9, %v322_v13  ;;  %503 = vst.msk [vmem:[%s981_s4 + $0x80] sm:$0xff] %vm236_vm0, %v478_v14  ;;  %v454_v19 = vadd.f32 %v429_v11, %v378_v15 }
  0xf5   :  { %v326_v20 = vpop.f32.mrf.mxu0  ;;  %v382_v22 = vpop.f32.mrf.mxu1 }
  0xf6   :  { %v465_v24 = vmax.f32 %v440_v18, 0.0  ;;  %v327_v25 = vadd.f32 %v775_v37, %v326_v20  ;;  %v479_v26 = vmax.f32 %v454_v19, 0.0  ;;  %v383_v27 = vadd.f32 %v775_v37, %v382_v22  ;;  %v421_v18 = vld [vmem:[%s980_s3 + $0x48] sm:$0xff]  ;;  %v435_v20 = vld [vmem:[%s980_s3 + $0xb8] sm:$0xff] }
  0xf7   :  { %v328_v28 = vpop.f32.mrf.mxu0  ;;  %v384_v29 = vpop.f32.mrf.mxu1 }
  0xf8   :  { %490 = vst.msk [vmem:[%s981_s4 + $0x18] sm:$0xff] %vm236_vm0, %v465_v24  ;;  %v441_v30 = vadd.f32 %v416_v21, %v327_v25  ;;  %504 = vst.msk [vmem:[%s981_s4 + $0x88] sm:$0xff] %vm236_vm0, %v479_v26  ;;  %v455_v31 = vadd.f32 %v430_v23, %v383_v27 }
  0xf9   :  { %v329_v32 = vpop.f32.mrf.mxu0  ;;  %v385_v34 = vpop.f32.mrf.mxu1 }
  0xfa   :  { %v466_v36 = vmax.f32 %v441_v30, 0.0  ;;  %v330_v38 = vadd.f32 %v775_v37, %v329_v32  ;;  %v480_v39 = vmax.f32 %v455_v31, 0.0  ;;  %v386_v40 = vadd.f32 %v775_v37, %v385_v34  ;;  %v422_v30 = vld [vmem:[%s980_s3 + $0x50] sm:$0xff]  ;;  %v436_v32 = vld [vmem:[%s980_s3 + $0xc0] sm:$0xff] }
  0xfb   :  { %v331_v41 = vpop.f32.mrf.mxu0  ;;  %v387_v42 = vpop.f32.mrf.mxu1 }
  0xfc   :  { %491 = vst.msk [vmem:[%s981_s4 + $0x20] sm:$0xff] %vm236_vm0, %v466_v36  ;;  %v442_v43 = vadd.f32 %v417_v33, %v330_v38  ;;  %505 = vst.msk [vmem:[%s981_s4 + $0x90] sm:$0xff] %vm236_vm0, %v480_v39  ;;  %v456_v44 = vadd.f32 %v431_v35, %v386_v40 }
  0xfd   :  { %v334_v45 = vpop.f32.mrf.mxu0  ;;  %v390_v47 = vpop.f32.mrf.mxu1 }
  0xfe   :  { %v467_v49 = vmax.f32 %v442_v43, 0.0  ;;  %v335_v50 = vadd.f32 %v775_v37, %v334_v45  ;;  %v481_v51 = vmax.f32 %v456_v44, 0.0  ;;  %v391_v52 = vadd.f32 %v775_v37, %v390_v47  ;;  %v423_v43 = vld [vmem:[%s980_s3 + $0x58] sm:$0xff] }
  0xff   :  { %v336_v53 = vpop.f32.mrf.mxu0  ;;  %v392_v54 = vpop.f32.mrf.mxu1 }
 0x100   :  { %492 = vst.msk [vmem:[%s981_s4 + $0x28] sm:$0xff] %vm236_vm0, %v467_v49  ;;  %v443_v55 = vadd.f32 %v418_v46, %v335_v50  ;;  %506 = vst.msk [vmem:[%s981_s4 + $0x98] sm:$0xff] %vm236_vm0, %v481_v51  ;;  %v457_v56 = vadd.f32 %v432_v48, %v391_v52  ;;  %v424_v52 = vld [vmem:[%s980_s3 + $0x60] sm:$0xff] }
 0x101   :  { %v337_v57 = vpop.f32.mrf.mxu0  ;;  %v393_v59 = vpop.f32.mrf.mxu1 }
 0x102   :  { %v468_v61 = vmax.f32 %v443_v55, 0.0  ;;  %v338_v62 = vadd.f32 %v775_v37, %v337_v57  ;;  %v482_v63 = vmax.f32 %v457_v56, 0.0  ;;  %v394_v0 = vadd.f32 %v775_v37, %v393_v59 }
 0x103   :  { %v339_v1 = vpop.f32.mrf.mxu0  ;;  %v395_v2 = vpop.f32.mrf.mxu1 }
 0x104   :  { %493 = vst.msk [vmem:[%s981_s4 + $0x30] sm:$0xff] %vm236_vm0, %v468_v61  ;;  %v444_v3 = vadd.f32 %v419_v58, %v338_v62  ;;  %507 = vst.msk [vmem:[%s981_s4 + $0xa0] sm:$0xff] %vm236_vm0, %v482_v63  ;;  %v458_v4 = vadd.f32 %v433_v60, %v394_v0  ;;  %v425_v58 = vld [vmem:[%s980_s3 + $0x68] sm:$0xff] }
 0x105   :  { %v342_v5 = vpop.f32.mrf.mxu0  ;;  %v398_v7 = vpop.f32.mrf.mxu1 }
 0x106   :  { %v469_v9 = vmax.f32 %v444_v3, 0.0  ;;  %v343_v10 = vadd.f32 %v775_v37, %v342_v5  ;;  %v483_v11 = vmax.f32 %v458_v4, 0.0  ;;  %v399_v12 = vadd.f32 %v775_v37, %v398_v7 }
 0x107   :  { %v344_v13 = vpop.f32.mrf.mxu0  ;;  %v400_v14 = vpop.f32.mrf.mxu1 }
 0x108   :  { %494 = vst.msk [vmem:[%s981_s4 + $0x38] sm:$0xff] %vm236_vm0, %v469_v9  ;;  %v445_v15 = vadd.f32 %v420_v6, %v343_v10  ;;  %508 = vst.msk [vmem:[%s981_s4 + $0xa8] sm:$0xff] %vm236_vm0, %v483_v11  ;;  %v459_v16 = vadd.f32 %v434_v8, %v399_v12 }
 0x109   :  { %v345_v17 = vpop.f32.mrf.mxu0  ;;  %v401_v19 = vpop.f32.mrf.mxu1 }
 0x10a   :  { %v470_v21 = vmax.f32 %v445_v15, 0.0  ;;  %v346_v22 = vadd.f32 %v775_v37, %v345_v17  ;;  %v484_v23 = vmax.f32 %v459_v16, 0.0  ;;  %v402_v24 = vadd.f32 %v775_v37, %v401_v19 }
 0x10b   :  { %v347_v25 = vpop.f32.mrf.mxu0  ;;  %v403_v26 = vpop.f32.mrf.mxu1 }
 0x10c   :  { %495 = vst.msk [vmem:[%s981_s4 + $0x40] sm:$0xff] %vm236_vm0, %v470_v21  ;;  %v446_v27 = vadd.f32 %v421_v18, %v346_v22  ;;  %509 = vst.msk [vmem:[%s981_s4 + $0xb0] sm:$0xff] %vm236_vm0, %v484_v23  ;;  %v460_v28 = vadd.f32 %v435_v20, %v402_v24 }
 0x10d   :  { %v350_v29 = vpop.f32.mrf.mxu0  ;;  %v406_v31 = vpop.f32.mrf.mxu1 }
 0x10e   :  { %v471_v33 = vmax.f32 %v446_v27, 0.0  ;;  %v351_v34 = vadd.f32 %v775_v37, %v350_v29  ;;  %v485_v35 = vmax.f32 %v460_v28, 0.0  ;;  %v407_v36 = vadd.f32 %v775_v37, %v406_v31 }
 0x10f   :  { %v352_v38 = vpop.f32.mrf.mxu0  ;;  %v408_v39 = vpop.f32.mrf.mxu1 }
 0x110   :  { %496 = vst.msk [vmem:[%s981_s4 + $0x48] sm:$0xff] %vm236_vm0, %v471_v33  ;;  %v447_v40 = vadd.f32 %v422_v30, %v351_v34  ;;  %510 = vst.msk [vmem:[%s981_s4 + $0xb8] sm:$0xff] %vm236_vm0, %v485_v35  ;;  %v461_v41 = vadd.f32 %v436_v32, %v407_v36 }
 0x111   :  { %v353_v42 = vpop.f32.mrf.mxu0  ;;  %v409_v44 = vpop.f32.mrf.mxu1 }
 0x112   :  { %v472_v45 = vmax.f32 %v447_v40, 0.0  ;;  %v354_v46 = vadd.f32 %v775_v37, %v353_v42  ;;  %v486_v47 = vmax.f32 %v461_v41, 0.0 }
 0x113   :  { %v355_v48 = vpop.f32.mrf.mxu0  ;;  %v410_v49 = vpop.f32.mrf.mxu1 }
 0x114   :  { %497 = vst.msk [vmem:[%s981_s4 + $0x50] sm:$0xff] %vm236_vm0, %v472_v45  ;;  %v448_v50 = vadd.f32 %v423_v43, %v354_v46  ;;  %511 = vst.msk [vmem:[%s981_s4 + $0xc0] sm:$0xff] %vm236_vm0, %v486_v47 }
 0x115   :  { %v358_v51 = vpop.f32.mrf.mxu0 }
 0x116   :  { %v473_v53 = vmax.f32 %v448_v50, 0.0  ;;  %v359_v54 = vadd.f32 %v775_v37, %v358_v51 }
 0x117   :  { %v360_v55 = vpop.f32.mrf.mxu0 }
 0x118   :  { %498 = vst.msk [vmem:[%s981_s4 + $0x58] sm:$0xff] %vm236_vm0, %v473_v53  ;;  %v449_v56 = vadd.f32 %v424_v52, %v359_v54 }
 0x119   :  { %v361_v57 = vpop.f32.mrf.mxu0 }
 0x11a   :  { %v474_v59 = vmax.f32 %v449_v56, 0.0  ;;  %v362_v60 = vadd.f32 %v775_v37, %v361_v57 }
 0x11b   :  { %v363_v61 = vpop.f32.mrf.mxu0 }
 0x11c   :  { %499 = vst.msk [vmem:[%s981_s4 + $0x60] sm:$0xff] %vm236_vm0, %v474_v59  ;;  %v450_v62 = vadd.f32 %v425_v58, %v362_v60 }
 0x11e   :  { %v475_v63 = vmax.f32 %v450_v62, 0.0 }
 0x120   :  { %500 = vst.msk [vmem:[%s981_s4 + $0x68] sm:$0xff] %vm236_vm0, %v475_v63 }

// kernel: resnet_forward.17
= control target key start
LH: loop header
LB: loop body
LE: loop exit
PB: predicated region body
PF: predicated region fallthrough
CT: control target
= control target key end

     0   :  { %v292_v0 = vmov 0   ;;  %vm134_vm0 = vcmask 130048   ;;  %vm218_vm1 = vcmask 261120   ;;  %vm225_vm2 = vcmask 254976   ;;  %s395_s1 = inlined_call_operand.vmem [shape: bf16[144,32], index: 1, kind: input, shape index: {}]   ;;  %s396_s0 = inlined_call_operand.vmem [shape: bf16[50,144], index: 0, kind: input, shape index: {}]   ;;  %s397_s2 = inlined_call_operand.vmem [shape: f32[1,32], index: 2, kind: input, shape index: {}]   ;;  %s398_s3 = inlined_call_operand.vmem [shape: f32[50,32], index: 3, kind: output, shape index: {}]  }
   0x1   :  { %147 = vmatprep.subr.bf16.mxu0 %v292_v0  ;;  %253 = vmatprep.subr.bf16.mxu1 %v292_v0  ;;  %v272_v1 = vld [vmem:[%s395_s1 + $0x38] sm:$0xff]   ;;  %v273_v2 = vld [vmem:[%s395_s1 + $0x30] sm:$0xff]   ;;  %v274_v3 = vld [vmem:[%s395_s1 + $0x28] sm:$0xff]  }
   0x2   :  { %148 = vmatpush1.bf16.msra.mxu0 %v272_v1  ;;  %262 = vmatpush1.bf16.msra.mxu1 %v272_v1  ;;  %v275_v4 = vld [vmem:[%s395_s1 + $0x20] sm:$0xff]   ;;  %v276_v7 = vld [vmem:[%s395_s1 + $0x18] sm:$0xff]   ;;  %v277_v8 = vld [vmem:[%s395_s1 + $0x10] sm:$0xff]  }
   0x3   :  { %149 = vmatprep.subr.bf16.mxu0 %v292_v0  ;;  %254 = vmatprep.subr.bf16.mxu1 %v292_v0  ;;  %v283_v5 = vld [vmem:[%s396_s0 + $0x4] ss:$8 sps:$4 sm:$0xff]   ;;  %v21_v12 = vld [vmem:[%s396_s0 + $0x30] sm:$0x11]  ;;  %v281_v13 = vld [vmem:[%s396_s0] ss:$8 sps:$4 sm:$0xff]  }
   0x4   :  { %v286_v6 = vld [vmem:[%s396_s0 + $0x24] ss:$8 sps:$4 sm:$0xff]   ;;  %249 = vmatprep.mubr.msk.bf16.mxu0 %vm134_vm0, %v283_v5  ;;  %v284_v14 = vld [vmem:[%s396_s0 + $0x20] ss:$8 sps:$4 sm:$0xff]   ;;  %v287_v15 = vld [vmem:[%s396_s0 + $0x14] ss:$8 sps:$4 sm:$0xff]   ;;  %v239_v16 = vcombine.high %v21_v12, %v21_v12  ;;  %v238_v18 = vcombine.low %v21_v12, %v21_v12 }
   0x5   :  { %251 = vmatprep.mubr.msk.bf16.mxu1 %vm134_vm0, %v286_v6  ;;  %v278_v9 = vld [vmem:[%s395_s1 + $0x8] sm:$0xff]   ;;  %v279_v10 = vld [vmem:[%s395_s1] sm:$0xff]   ;;  %v290_v17 = vld [vmem:[%s396_s0 + $0x10] ss:$8 sps:$4 sm:$0xff]  }
   0x6   :  { %150 = vmatpush1.bf16.msra.mxu0 %v273_v2  ;;  %263 = vmatpush1.bf16.msra.mxu1 %v273_v2  ;;  %v280_v11 = vld [vmem:[%s395_s1 + $0x40] sm:$0xff]  }
   0x7   :  { %151 = vmatprep.subr.bf16.mxu0 %v292_v0  ;;  %255 = vmatprep.subr.bf16.mxu1 %v292_v0  ;;  %v231_v19 = vld [vmem:[%s397_s2] ss:$0 sm:$0xff] }
   0xa   :  { %152 = vmatpush1.bf16.msra.mxu0 %v274_v3  ;;  %264 = vmatpush1.bf16.msra.mxu1 %v274_v3 }
   0xb   :  { %153 = vmatprep.subr.bf16.mxu0 %v292_v0  ;;  %256 = vmatprep.subr.bf16.mxu1 %v292_v0 }
   0xe   :  { %154 = vmatpush1.bf16.msra.mxu0 %v275_v4  ;;  %265 = vmatpush1.bf16.msra.mxu1 %v275_v4 }
   0xf   :  { %155 = vmatprep.subr.bf16.mxu0 %v292_v0  ;;  %257 = vmatprep.subr.bf16.mxu1 %v292_v0 }
  0x12   :  { %156 = vmatpush1.bf16.msra.mxu0 %v276_v7  ;;  %266 = vmatpush1.bf16.msra.mxu1 %v276_v7 }
  0x13   :  { %157 = vmatprep.subr.bf16.mxu0 %v292_v0  ;;  %258 = vmatprep.subr.bf16.mxu1 %v292_v0 }
  0x16   :  { %158 = vmatpush1.bf16.msra.mxu0 %v277_v8  ;;  %267 = vmatpush1.bf16.msra.mxu1 %v277_v8 }
  0x17   :  { %159 = vmatprep.subr.bf16.mxu0 %v292_v0  ;;  %259 = vmatprep.subr.bf16.mxu1 %v292_v0 }
  0x1a   :  { %160 = vmatpush1.bf16.msra.mxu0 %v278_v9  ;;  %268 = vmatpush1.bf16.msra.mxu1 %v278_v9 }
  0x1b   :  { %161 = vmatprep.subr.bf16.mxu0 %v292_v0  ;;  %260 = vmatprep.subr.bf16.mxu1 %v292_v0 }
  0x1e   :  { %162 = vmatpush1.bf16.msra.mxu0 %v279_v10  ;;  %269 = vmatpush1.bf16.msra.mxu1 %v279_v10 }
  0x1f   :  { %177 = vmatprep.subr.bf16.mxu0 %v292_v0  ;;  %261 = vmatprep.subr.bf16.mxu1 %v292_v0 }
  0x22   :  { %178 = vmatpush2.bf16.msra.mxu0 %v280_v11  ;;  %270 = vmatpush2.bf16.msra.mxu1 %v280_v11 }
  0x25   :  { %180 = vmatmul.mubr.bf16.vlgmr.msra.gmra.mxu0 %v281_v13  ;;  %196 = vmatmul.mubr.bf16.vlgmr.msra.gmra.mxu1 %v284_v14 }
  0x26   :  { %250 = vmatprep.mubr.msk.bf16.mxu0 %vm134_vm0, %v287_v15  ;;  %252 = vmatprep.mubr.msk.bf16.mxu1 %vm134_vm0, %v239_v16 }
  0x2d   :  { %188 = vmatmul.mubr.bf16.gmra.mxu0 %v290_v17  ;;  %204 = vmatmul.mubr.bf16.gmra.mxu1 %v238_v18 }
  0xe5   :  { %v181_v20 = vpop.f32.mrf.mxu0  ;;  %v197_v21 = vpop.f32.mrf.mxu1 }
  0xe6   :  { %v182_v22 = vadd.f32 %v231_v19, %v181_v20  ;;  %v198_v23 = vadd.f32 %v231_v19, %v197_v21 }
  0xe7   :  { %v183_v24 = vpop.f32.mrf.mxu0  ;;  %v199_v25 = vpop.f32.mrf.mxu1 }
  0xe8   :  { %v211_v26 = vmax.f32 %v182_v22, 0.0  ;;  %v215_v27 = vmax.f32 %v198_v23, 0.0 }
  0xe9   :  { %v184_v28 = vpop.f32.mrf.mxu0  ;;  %v200_v29 = vpop.f32.mrf.mxu1 }
  0xea   :  { %219 = vst.msk [vmem:[%s398_s3] sm:$0xff] %vm218_vm1, %v211_v26  ;;  %223 = vst.msk [vmem:[%s398_s3 + $0x20] sm:$0xff] %vm218_vm1, %v215_v27  ;;  %v185_v30 = vadd.f32 %v231_v19, %v184_v28  ;;  %v201_v31 = vadd.f32 %v231_v19, %v200_v29 }
  0xeb   :  { %v186_v32 = vpop.f32.mrf.mxu0  ;;  %v202_v33 = vpop.f32.mrf.mxu1 }
  0xec   :  { %v212_v34 = vmax.f32 %v185_v30, 0.0  ;;  %v216_v35 = vmax.f32 %v201_v31, 0.0 }
  0xed   :  { %v189_v36 = vpop.f32.mrf.mxu0  ;;  %v205_v37 = vpop.f32.mrf.mxu1 }
  0xee   :  { %220 = vst.msk [vmem:[%s398_s3 + $0x8] sm:$0xff] %vm218_vm1, %v212_v34  ;;  %224 = vst.msk [vmem:[%s398_s3 + $0x28] sm:$0xff] %vm218_vm1, %v216_v35  ;;  %v190_v38 = vadd.f32 %v231_v19, %v189_v36  ;;  %v206_v39 = vadd.f32 %v231_v19, %v205_v37 }
  0xef   :  { %v191_v40 = vpop.f32.mrf.mxu0  ;;  %v207_v41 = vpop.f32.mrf.mxu1 }
  0xf0   :  { %v213_v42 = vmax.f32 %v190_v38, 0.0  ;;  %v217_v43 = vmax.f32 %v206_v39, 0.0 }
  0xf1   :  { %v192_v44 = vpop.f32.mrf.mxu0  ;;  %v208_v45 = vpop.f32.mrf.mxu1 }
  0xf2   :  { %221 = vst.msk [vmem:[%s398_s3 + $0x10] sm:$0xff] %vm218_vm1, %v213_v42  ;;  %v193_v46 = vadd.f32 %v231_v19, %v192_v44 }
  0xf3   :  { %226 = vst.msk [vmem:[%s398_s3 + $0x30] sm:$0x3] %vm225_vm2, %v217_v43  ;;  %v194_v47 = vpop.f32.mrf.mxu0  ;;  %v209_v48 = vpop.f32.mrf.mxu1 }
  0xf4   :  { %v214_v49 = vmax.f32 %v193_v46, 0.0 }
  0xf6   :  { %222 = vst.msk [vmem:[%s398_s3 + $0x18] sm:$0xff] %vm218_vm1, %v214_v49 }

// kernel: resnet_forward.18
= control target key start
LH: loop header
LB: loop body
LE: loop exit
PB: predicated region body
PF: predicated region fallthrough
CT: control target
= control target key end

     0   :  { %vm55_vm0 = vcmask 130048   ;;  %vm132_vm1 = vcmask 261120   ;;  %vm139_vm2 = vcmask 254976   ;;  %s242_s1 = inlined_call_operand.vmem [shape: bf16[16,32], index: 1, kind: input, shape index: {}]   ;;  %s243_s0 = inlined_call_operand.vmem [shape: bf16[50,16], index: 0, kind: input, shape index: {}]   ;;  %s244_s2 = inlined_call_operand.vmem [shape: f32[1,32], index: 2, kind: input, shape index: {}]   ;;  %s245_s3 = inlined_call_operand.vmem [shape: f32[50,32], index: 3, kind: output, shape index: {}]  }
   0x1   :  { %v172_v0 = vld [vmem:[%s242_s1] sm:$0xff]   ;;  %v174_v2 = vld [vmem:[%s243_s0 + $0x10] sm:$0xff]   ;;  %v175_v3 = vld [vmem:[%s243_s0 + $0x8] sm:$0xff]  }
   0x2   :  { %v173_v1 = vld [vmem:[%s243_s0] sm:$0xff]   ;;  %160 = vmatprep.subr.bf16.mxu0 %v172_v0  ;;  %170 = vmatprep.subr.bf16.mxu1 %v172_v0  ;;  %v176_v4 = vld [vmem:[%s243_s0 + $0x18] ss:$0 sps:$4 sm:$0x11]  }
   0x3   :  { %161 = vmatpush3.bf16.msra.mxu0 %v172_v0  ;;  %171 = vmatpush3.bf16.msra.mxu1 %v172_v0  ;;  %v145_v5 = vld [vmem:[%s244_s2] ss:$0 sm:$0xff] }
   0x4   :  { %162 = vmatprep.mubr.msk.bf16.mxu0 %vm55_vm0, %v173_v1  ;;  %166 = vmatprep.mubr.msk.bf16.mxu1 %vm55_vm0, %v174_v2 }
   0x6   :  { %163 = vmatmul.mubr.msk.bf16.vlgmr.msra.gmra.mxu0 %vm55_vm0, %v175_v3  ;;  %167 = vmatmul.mubr.msk.bf16.vlgmr.msra.gmra.mxu1 %vm55_vm0, %v176_v4 }
  0xc6   :  { %v164_v6 = vpop.f32.mrf.mxu0  ;;  %v168_v7 = vpop.f32.mrf.mxu1 }
  0xc7   :  { %v111_v8 = vadd.f32 %v164_v6, %v145_v5  ;;  %v127_v9 = vadd.f32 %v168_v7, %v145_v5 }
  0xc8   :  { %v102_v10 = vpop.f32.mrf.mxu0  ;;  %v118_v11 = vpop.f32.mrf.mxu1 }
  0xc9   :  { %135 = vst.msk [vmem:[%s245_s3 + $0x10] sm:$0xff] %vm132_vm1, %v111_v8  ;;  %v103_v12 = vadd.f32 %v145_v5, %v102_v10  ;;  %v119_v13 = vadd.f32 %v145_v5, %v118_v11 }
  0xca   :  { %140 = vst.msk [vmem:[%s245_s3 + $0x30] sm:$0x3] %vm139_vm2, %v127_v9  ;;  %v165_v14 = vpop.f32.mrf.mxu0  ;;  %v169_v15 = vpop.f32.mrf.mxu1 }
  0xcb   :  { %133 = vst.msk [vmem:[%s245_s3] sm:$0xff] %vm132_vm1, %v103_v12  ;;  %137 = vst.msk [vmem:[%s245_s3 + $0x20] sm:$0xff] %vm132_vm1, %v119_v13  ;;  %v114_v16 = vadd.f32 %v165_v14, %v145_v5 }
  0xcc   :  { %v105_v17 = vpop.f32.mrf.mxu0  ;;  %v121_v18 = vpop.f32.mrf.mxu1 }
  0xcd   :  { %136 = vst.msk [vmem:[%s245_s3 + $0x18] sm:$0xff] %vm132_vm1, %v114_v16  ;;  %v106_v19 = vadd.f32 %v145_v5, %v105_v17  ;;  %v122_v20 = vadd.f32 %v145_v5, %v121_v18 }
  0xcf   :  { %134 = vst.msk [vmem:[%s245_s3 + $0x8] sm:$0xff] %vm132_vm1, %v106_v19  ;;  %138 = vst.msk [vmem:[%s245_s3 + $0x28] sm:$0xff] %vm132_vm1, %v122_v20 }

// kernel: resnet_forward.19
= control target key start
LH: loop header
LB: loop body
LE: loop exit
PB: predicated region body
PF: predicated region fallthrough
CT: control target
= control target key end

     0   :  { %vm238_vm0 = vcmask 261120   ;;  %vm406_vm1 = vcmask 254976   ;;  %s721_s1 = inlined_call_operand.vmem [shape: bf16[288,32], index: 1, kind: input, shape index: {}]   ;;  %s722_s0 = inlined_call_operand.vmem [shape: bf16[50,288], index: 0, kind: input, shape index: {}]   ;;  %s723_s2 = inlined_call_operand.vmem [shape: f32[1,32], index: 2, kind: input, shape index: {}]   ;;  %s724_s3 = inlined_call_operand.vmem [shape: f32[50,32], index: 3, kind: input, shape index: {}]   ;;  %s725_s4 = inlined_call_operand.vmem [shape: f32[50,32], index: 4, kind: output, shape index: {}]  }
   0x1   :  { %v521_v0 = vld [vmem:[%s721_s1 + $0x78] sm:$0xff]   ;;  %v523_v2 = vld [vmem:[%s721_s1 + $0x70] sm:$0xff]   ;;  %v525_v4 = vld [vmem:[%s721_s1 + $0x68] sm:$0xff]  }
   0x2   :  { %v522_v1 = vld [vmem:[%s721_s1 + $0x38] sm:$0xff]   ;;  %447 = vmatprep.subr.bf16.mxu0 %v521_v0  ;;  %505 = vmatprep.subr.bf16.mxu1 %v521_v0  ;;  %v524_v3 = vld [vmem:[%s721_s1 + $0x30] sm:$0xff]   ;;  %v526_v5 = vld [vmem:[%s721_s1 + $0x28] sm:$0xff]  }
   0x3   :  { %448 = vmatpush3.bf16.msra.mxu0 %v522_v1  ;;  %513 = vmatpush3.bf16.msra.mxu1 %v522_v1  ;;  %v527_v6 = vld [vmem:[%s721_s1 + $0x60] sm:$0xff]   ;;  %v529_v8 = vld [vmem:[%s721_s1 + $0x58] sm:$0xff]   ;;  %v531_v10 = vld [vmem:[%s721_s1 + $0x50] sm:$0xff]  }
   0x4   :  { %449 = vmatprep.subr.bf16.mxu0 %v523_v2  ;;  %506 = vmatprep.subr.bf16.mxu1 %v523_v2  ;;  %v528_v7 = vld [vmem:[%s721_s1 + $0x20] sm:$0xff]   ;;  %v530_v9 = vld [vmem:[%s721_s1 + $0x18] sm:$0xff]   ;;  %v30_v12 = vld [vmem:[%s722_s0 + $0x48] sm:$0x11] }
   0x5   :  { %v539_v11 = vld [vmem:[%s722_s0 + $0x4] ss:$12 sps:$4 sm:$0xff]   ;;  %v423_v13 = vcombine.high %v30_v12, %v30_v12  ;;  %v533_v15 = vld [vmem:[%s721_s1 + $0x48] sm:$0xff]   ;;  %v422_v21 = vcombine.low %v30_v12, %v30_v12  ;;  %v549_v27 = vld [vmem:[%s722_s0 + $0x34] ss:$12 sps:$4 sm:$0xff]  }
   0x6   :  { %v532_v14 = vld [vmem:[%s721_s1 + $0x10] sm:$0xff]   ;;  %283 = vmatprep.mubr.bf16.mxu0 %v539_v11  ;;  %v534_v16 = vld [vmem:[%s721_s1 + $0x8] sm:$0xff]   ;;  %v535_v17 = vld [vmem:[%s721_s1 + $0x40] sm:$0xff]  }
   0x7   :  { %450 = vmatpush3.bf16.msra.mxu0 %v524_v3  ;;  %514 = vmatpush3.bf16.msra.mxu1 %v524_v3  ;;  %v536_v18 = vld [vmem:[%s721_s1] sm:$0xff]   ;;  %v542_v19 = vld [vmem:[%s721_s1 + $0x88] sm:$0xff]   ;;  %v552_v29 = vld [vmem:[%s722_s0 + $0x30] ss:$12 sps:$4 sm:$0xff]  }
   0x8   :  { %451 = vmatprep.subr.bf16.mxu0 %v525_v4  ;;  %507 = vmatprep.subr.bf16.mxu1 %v525_v4  ;;  %v537_v20 = vld [vmem:[%s722_s0] ss:$12 sps:$4 sm:$0xff]   ;;  %v544_v22 = vld [vmem:[%s722_s0 + $0x1c] ss:$12 sps:$4 sm:$0xff]   ;;  %v547_v25 = vld [vmem:[%s722_s0 + $0x18] ss:$12 sps:$4 sm:$0xff]  }
   0x9   :  { %307 = vmatprep.mubr.bf16.mxu1 %v423_v13  ;;  %v543_v23 = vld [vmem:[%s721_s1 + $0x80] sm:$0xff]   ;;  %v546_v24 = vld [vmem:[%s722_s0 + $0x8] ss:$12 sps:$4 sm:$0xff]   ;;  %v553_v30 = vld [vmem:[%s722_s0 + $0x50] ss:$0 sps:$4 sm:$0x11]  }
   0xa   :  { %v548_v26 = vld [vmem:[%s722_s0 + $0x20] ss:$12 sps:$4 sm:$0xff]   ;;  %v551_v28 = vld [vmem:[%s722_s0 + $0x38] ss:$12 sps:$4 sm:$0xff]   ;;  %v381_v56 = vld [vmem:[%s724_s3 + $0x10] sm:$0xff] }
   0xb   :  { %452 = vmatpush3.bf16.msra.mxu0 %v526_v5  ;;  %515 = vmatpush3.bf16.msra.mxu1 %v526_v5  ;;  %v412_v40 = vld [vmem:[%s723_s2] ss:$0 sm:$0xff]  ;;  %v380_v59 = vld [vmem:[%s724_s3 + $0x8] sm:$0xff]  ;;  %v385_v3 = vld [vmem:[%s724_s3 + $0x30] sm:$0x3] }
   0xc   :  { %453 = vmatprep.subr.bf16.mxu0 %v527_v6  ;;  %508 = vmatprep.subr.bf16.mxu1 %v527_v6  ;;  %v379_v48 = vld [vmem:[%s724_s3] sm:$0xff] }
   0xf   :  { %454 = vmatpush3.bf16.msra.mxu0 %v528_v7  ;;  %516 = vmatpush3.bf16.msra.mxu1 %v528_v7 }
  0x10   :  { %455 = vmatprep.subr.bf16.mxu0 %v529_v8  ;;  %509 = vmatprep.subr.bf16.mxu1 %v529_v8  ;;  %v382_v8 = vld [vmem:[%s724_s3 + $0x18] sm:$0xff] }
  0x13   :  { %456 = vmatpush3.bf16.msra.mxu0 %v530_v9  ;;  %517 = vmatpush3.bf16.msra.mxu1 %v530_v9 }
  0x14   :  { %457 = vmatprep.subr.bf16.mxu0 %v531_v10  ;;  %510 = vmatprep.subr.bf16.mxu1 %v531_v10 }
  0x17   :  { %458 = vmatpush3.bf16.msra.mxu0 %v532_v14  ;;  %518 = vmatpush3.bf16.msra.mxu1 %v532_v14 }
  0x18   :  { %459 = vmatprep.subr.bf16.mxu0 %v533_v15  ;;  %511 = vmatprep.subr.bf16.mxu1 %v533_v15 }
  0x1b   :  { %460 = vmatpush3.bf16.msra.mxu0 %v534_v16  ;;  %519 = vmatpush3.bf16.msra.mxu1 %v534_v16 }
  0x1c   :  { %461 = vmatprep.subr.bf16.mxu0 %v535_v17  ;;  %512 = vmatprep.subr.bf16.mxu1 %v535_v17 }
  0x1f   :  { %462 = vmatpush3.bf16.msra.mxu0 %v536_v18  ;;  %520 = vmatpush3.bf16.msra.mxu1 %v536_v18 }
  0x20   :  { %493 = vmatprep.subr.bf16.mxu1 %v542_v19 }
  0x22   :  { %284 = vmatmul.mubr.bf16.vlgmr.msra.gmra.mxu0 %v537_v20  ;;  %308 = vmatmul.mubr.bf16.vlgmr.msra.gmra.mxu1 %v422_v21 }
  0x23   :  { %494 = vmatpush3.bf16.msra.mxu1 %v542_v19  ;;  %291 = vmatprep.mubr.bf16.mxu0 %v544_v22 }
  0x24   :  { %495 = vmatprep.subr.bf16.mxu1 %v543_v23  ;;  %497 = vmatprep.mubr.msk.bf16.mxu1 %vm238_vm0, %v546_v24 }
  0x27   :  { %496 = vmatpush3.bf16.msra.mxu1 %v543_v23  ;;  %v383_v23 = vld [vmem:[%s724_s3 + $0x20] sm:$0xff] }
  0x2a   :  { %292 = vmatmul.mubr.bf16.gmra.mxu0 %v547_v25  ;;  %498 = vmatmul.mubr.msk.bf16.vlgmr.msra.gmra.mxu1 %vm238_vm0, %v548_v26 }
  0x2b   :  { %299 = vmatprep.mubr.bf16.mxu0 %v549_v27  ;;  %501 = vmatprep.mubr.msk.bf16.mxu1 %vm238_vm0, %v551_v28 }
  0x32   :  { %300 = vmatmul.mubr.bf16.gmra.mxu0 %v552_v29  ;;  %502 = vmatmul.mubr.msk.bf16.gmra.mxu1 %vm238_vm0, %v553_v30  ;;  %v384_v29 = vld [vmem:[%s724_s3 + $0x28] sm:$0xff] }
  0xe2   :  { %v463_v31 = vpop.f32.mrf.mxu0  ;;  %v481_v32 = vpop.f32.mrf.mxu1 }
  0xe4   :  { %v464_v33 = vpop.f32.mrf.mxu0  ;;  %v482_v34 = vpop.f32.mrf.mxu1 }
  0xe5   :  { %v465_v37 = vadd.f32 %v464_v33, %v463_v31  ;;  %v483_v45 = vadd.f32 %v482_v34, %v481_v32 }
  0xe6   :  { %v466_v35 = vpop.f32.mrf.mxu0  ;;  %v484_v36 = vpop.f32.mrf.mxu1 }
  0xe7   :  { %v286_v44 = vadd.f32 %v465_v37, %v412_v40  ;;  %v310_v60 = vadd.f32 %v483_v45, %v412_v40 }
  0xe8   :  { %v467_v38 = vpop.f32.mrf.mxu0  ;;  %v485_v39 = vpop.f32.mrf.mxu1 }
  0xe9   :  { %v468_v43 = vadd.f32 %v467_v38, %v466_v35 }
  0xea   :  { %v469_v41 = vpop.f32.mrf.mxu0  ;;  %v499_v42 = vpop.f32.mrf.mxu1 }
  0xeb   :  { %v289_v55 = vadd.f32 %v468_v43, %v412_v40 }
  0xec   :  { %v470_v46 = vpop.f32.mrf.mxu0  ;;  %v349_v47 = vpop.f32.mrf.mxu1 }
  0xed   :  { %v471_v49 = vadd.f32 %v470_v46, %v469_v41  ;;  %v350_v50 = vadd.f32 %v349_v47, %v286_v44 }
  0xee   :  { %v472_v51 = vpop.f32.mrf.mxu0  ;;  %v500_v52 = vpop.f32.mrf.mxu1 }
  0xef   :  { %v294_v53 = vadd.f32 %v471_v49, %v412_v40  ;;  %v386_v54 = vadd.f32 %v379_v48, %v350_v50 }
  0xf0   :  { %v473_v57 = vpop.f32.mrf.mxu0  ;;  %v352_v58 = vpop.f32.mrf.mxu1 }
  0xf1   :  { %v358_v61 = vadd.f32 %v499_v42, %v294_v53  ;;  %v393_v62 = vmax.f32 %v386_v54, 0.0  ;;  %v474_v63 = vadd.f32 %v473_v57, %v472_v51  ;;  %v353_v0 = vadd.f32 %v352_v58, %v289_v55 }
  0xf2   :  { %v475_v1 = vpop.f32.mrf.mxu0  ;;  %v503_v2 = vpop.f32.mrf.mxu1 }
  0xf3   :  { %v388_v4 = vadd.f32 %v381_v56, %v358_v61  ;;  %400 = vst.msk [vmem:[%s725_s4] sm:$0xff] %vm238_vm0, %v393_v62  ;;  %v297_v5 = vadd.f32 %v474_v63, %v412_v40  ;;  %v387_v6 = vadd.f32 %v380_v59, %v353_v0  ;;  %v374_v7 = vadd.f32 %v503_v2, %v310_v60 }
  0xf4   :  { %v476_v9 = vpop.f32.mrf.mxu0  ;;  %v365_v10 = vpop.f32.mrf.mxu1 }
  0xf5   :  { %v395_v11 = vmax.f32 %v388_v4, 0.0  ;;  %v361_v12 = vadd.f32 %v500_v52, %v297_v5  ;;  %v394_v13 = vmax.f32 %v387_v6, 0.0  ;;  %v392_v14 = vadd.f32 %v385_v3, %v374_v7 }
  0xf6   :  { %v477_v15 = vadd.f32 %v476_v9, %v475_v1  ;;  %v478_v16 = vpop.f32.mrf.mxu0  ;;  %v504_v17 = vpop.f32.mrf.mxu1 }
  0xf7   :  { %402 = vst.msk [vmem:[%s725_s4 + $0x10] sm:$0xff] %vm238_vm0, %v395_v11  ;;  %v389_v18 = vadd.f32 %v382_v8, %v361_v12  ;;  %401 = vst.msk [vmem:[%s725_s4 + $0x8] sm:$0xff] %vm238_vm0, %v394_v13  ;;  %v399_v19 = vmax.f32 %v392_v14, 0.0 }
  0xf8   :  { %v302_v20 = vadd.f32 %v477_v15, %v412_v40  ;;  %v479_v21 = vpop.f32.mrf.mxu0  ;;  %v368_v28 = vpop.f32.mrf.mxu1 }
  0xf9   :  { %v396_v22 = vmax.f32 %v389_v18, 0.0  ;;  %407 = vst.msk [vmem:[%s725_s4 + $0x30] sm:$0x3] %vm406_vm1, %v399_v19  ;;  %v480_v24 = vadd.f32 %v479_v21, %v478_v16 }
  0xfa   :  { %v366_v25 = vadd.f32 %v365_v10, %v302_v20 }
  0xfb   :  { %403 = vst.msk [vmem:[%s725_s4 + $0x18] sm:$0xff] %vm238_vm0, %v396_v22  ;;  %v305_v26 = vadd.f32 %v480_v24, %v412_v40 }
  0xfc   :  { %v390_v27 = vadd.f32 %v383_v23, %v366_v25 }
  0xfd   :  { %v369_v30 = vadd.f32 %v368_v28, %v305_v26 }
  0xfe   :  { %v397_v31 = vmax.f32 %v390_v27, 0.0 }
  0xff   :  { %v391_v32 = vadd.f32 %v384_v29, %v369_v30 }
 0x100   :  { %404 = vst.msk [vmem:[%s725_s4 + $0x20] sm:$0xff] %vm238_vm0, %v397_v31 }
 0x101   :  { %v398_v33 = vmax.f32 %v391_v32, 0.0 }
 0x103   :  { %405 = vst.msk [vmem:[%s725_s4 + $0x28] sm:$0xff] %vm238_vm0, %v398_v33 }

// kernel: resnet_forward.20
= control target key start
LH: loop header
LB: loop body
LE: loop exit
PB: predicated region body
PF: predicated region fallthrough
CT: control target
= control target key end

     0   :  { %vm197_vm0 = vcmask 261120   ;;  %vm303_vm1 = vcmask 523264   ;;  %vm306_vm2 = vcmask 517120   ;;  %s505_s1 = inlined_call_operand.vmem [shape: bf16[288,64], index: 1, kind: input, shape index: {}]   ;;  %s506_s0 = inlined_call_operand.vmem [shape: bf16[18,288], index: 0, kind: input, shape index: {}]   ;;  %s507_s2 = inlined_call_operand.vmem [shape: f32[1,64], index: 2, kind: input, shape index: {}]   ;;  %s508_s3 = inlined_call_operand.vmem [shape: f32[18,64], index: 3, kind: output, shape index: {}]  }
   0x1   :  { %v379_v0 = vld [vmem:[%s505_s1 + $0x78] sm:$0xff]   ;;  %v381_v2 = vld [vmem:[%s505_s1 + $0x70] sm:$0xff]   ;;  %v383_v4 = vld [vmem:[%s505_s1 + $0x68] sm:$0xff]  }
   0x2   :  { %v380_v1 = vld [vmem:[%s505_s1 + $0x38] sm:$0xff]   ;;  %339 = vmatprep.subr.bf16.mxu0 %v379_v0  ;;  %v382_v3 = vld [vmem:[%s505_s1 + $0x30] sm:$0xff]   ;;  %v384_v5 = vld [vmem:[%s505_s1 + $0x28] sm:$0xff]  }
   0x3   :  { %340 = vmatpush3.bf16.msra.mxu0 %v380_v1  ;;  %v385_v6 = vld [vmem:[%s505_s1 + $0x60] sm:$0xff]   ;;  %v387_v8 = vld [vmem:[%s505_s1 + $0x58] sm:$0xff]   ;;  %v393_v9 = vld [vmem:[%s505_s1 + $0x88] sm:$0xff]  }
   0x4   :  { %341 = vmatprep.subr.bf16.mxu0 %v381_v2  ;;  %v386_v7 = vld [vmem:[%s505_s1 + $0x20] sm:$0xff]   ;;  %v388_v10 = vld [vmem:[%s505_s1 + $0x18] sm:$0xff]   ;;  %v389_v11 = vld [vmem:[%s505_s1 + $0x50] sm:$0xff]   ;;  %371 = vmatprep.subr.bf16.mxu1 %v393_v9 }
   0x5   :  { %372 = vmatpush3.bf16.msra.mxu1 %v393_v9  ;;  %v396_v12 = vld [vmem:[%s505_s1 + $0x80] sm:$0xff]   ;;  %v390_v13 = vld [vmem:[%s505_s1 + $0x10] sm:$0xff]   ;;  %v391_v15 = vld [vmem:[%s505_s1 + $0x48] sm:$0xff]  }
   0x6   :  { %373 = vmatprep.subr.bf16.mxu1 %v396_v12  ;;  %v399_v14 = vld [vmem:[%s506_s0 + $0x4] ss:$12 sps:$4 sm:$0xff]   ;;  %v400_v16 = vld [vmem:[%s506_s0 + $0x8] ss:$12 sps:$4 sm:$0xff]   ;;  %v19_v21 = vld [vmem:[%s506_s0 + $0x18] sm:$0x11] }
   0x7   :  { %342 = vmatpush3.bf16.msra.mxu0 %v382_v3  ;;  %236 = vmatprep.mubr.bf16.mxu0 %v399_v14  ;;  %v401_v17 = vld [vmem:[%s506_s0 + $0x20] ss:$0 sps:$4 sm:$0x11]   ;;  %v392_v18 = vld [vmem:[%s505_s1 + $0x8] sm:$0xff]   ;;  %v317_v23 = vcombine.high %v19_v21, %v19_v21  ;;  %v316_v24 = vcombine.low %v19_v21, %v19_v21 }
   0x8   :  { %343 = vmatprep.subr.bf16.mxu0 %v383_v4  ;;  %375 = vmatprep.mubr.msk.bf16.mxu1 %vm197_vm0, %v400_v16  ;;  %v394_v19 = vld [vmem:[%s505_s1 + $0x40] sm:$0xff]  }
   0x9   :  { %374 = vmatpush3.bf16.msra.mxu1 %v396_v12  ;;  %v395_v20 = vld [vmem:[%s505_s1] sm:$0xff]  }
   0xa   :  { %v397_v22 = vld [vmem:[%s506_s0] ss:$12 sps:$4 sm:$0xff]  }
   0xb   :  { %344 = vmatpush3.bf16.msra.mxu0 %v384_v5  ;;  %v312_v30 = vld [vmem:[%s507_s2] ss:$0 sm:$0xff] }
   0xc   :  { %345 = vmatprep.subr.bf16.mxu0 %v385_v6  ;;  %376 = vmatmul.mubr.msk.bf16.vlgmr.msra.gmra.mxu1 %vm197_vm0, %v401_v17 }
   0xf   :  { %346 = vmatpush3.bf16.msra.mxu0 %v386_v7 }
  0x10   :  { %347 = vmatprep.subr.bf16.mxu0 %v387_v8 }
  0x13   :  { %348 = vmatpush3.bf16.msra.mxu0 %v388_v10 }
  0x14   :  { %349 = vmatprep.subr.bf16.mxu0 %v389_v11 }
  0x17   :  { %350 = vmatpush3.bf16.msra.mxu0 %v390_v13 }
  0x18   :  { %351 = vmatprep.subr.bf16.mxu0 %v391_v15 }
  0x1b   :  { %352 = vmatpush3.bf16.msra.mxu0 %v392_v18 }
  0x1c   :  { %353 = vmatprep.subr.bf16.mxu0 %v394_v19 }
  0x1f   :  { %354 = vmatpush3.bf16.msra.mxu0 %v395_v20 }
  0x22   :  { %237 = vmatmul.mubr.bf16.vlgmr.msra.gmra.mxu0 %v397_v22 }
  0x23   :  { %244 = vmatprep.mubr.bf16.mxu0 %v317_v23 }
  0x2a   :  { %245 = vmatmul.mubr.bf16.gmra.mxu0 %v316_v24 }
  0xcc   :  { %v377_v25 = vpop.f32.mrf.mxu1 }
  0xce   :  { %v286_v26 = vpop.f32.mrf.mxu1 }
  0xd0   :  { %v378_v27 = vpop.f32.mrf.mxu1 }
  0xd2   :  { %v289_v40 = vpop.f32.mrf.mxu1 }
  0xe2   :  { %v355_v28 = vpop.f32.mrf.mxu0 }
  0xe4   :  { %v356_v29 = vpop.f32.mrf.mxu0 }
  0xe5   :  { %v357_v31 = vadd.f32 %v356_v29, %v355_v28 }
  0xe6   :  { %v358_v32 = vpop.f32.mrf.mxu0 }
  0xe7   :  { %v239_v33 = vadd.f32 %v357_v31, %v312_v30 }
  0xe8   :  { %v359_v34 = vpop.f32.mrf.mxu0 }
  0xe9   :  { %v287_v35 = vadd.f32 %v286_v26, %v239_v33  ;;  %v360_v36 = vadd.f32 %v359_v34, %v358_v32 }
  0xea   :  { %v361_v37 = vpop.f32.mrf.mxu0 }
  0xeb   :  { %v300_v38 = vmax.f32 %v287_v35, 0.0  ;;  %v242_v39 = vadd.f32 %v360_v36, %v312_v30 }
  0xec   :  { %v362_v41 = vpop.f32.mrf.mxu0 }
  0xed   :  { %304 = vst.msk [vmem:[%s508_s3] sm:$0xff] %vm303_vm1, %v300_v38  ;;  %v290_v42 = vadd.f32 %v289_v40, %v242_v39  ;;  %v363_v43 = vadd.f32 %v362_v41, %v361_v37 }
  0xee   :  { %v364_v44 = vpop.f32.mrf.mxu0 }
  0xef   :  { %v301_v45 = vmax.f32 %v290_v42, 0.0  ;;  %v247_v46 = vadd.f32 %v363_v43, %v312_v30 }
  0xf0   :  { %v365_v47 = vpop.f32.mrf.mxu0 }
  0xf1   :  { %305 = vst.msk [vmem:[%s508_s3 + $0x8] sm:$0xff] %vm303_vm1, %v301_v45  ;;  %v295_v48 = vadd.f32 %v377_v25, %v247_v46 }
  0xf3   :  { %v302_v49 = vmax.f32 %v295_v48, 0.0 }
  0xf5   :  { %307 = vst.msk [vmem:[%s508_s3 + $0x10] sm:$0x3] %vm306_vm2, %v302_v49 }

// kernel: resnet_forward.23
= control target key start
LH: loop header
LB: loop body
LE: loop exit
PB: predicated region body
PF: predicated region fallthrough
CT: control target
= control target key end

     0   :  { %vm19_vm0 = vcmask 523264   ;;  %v204_v1 = vmov 0.0   ;;  %vm205_vm1 = vmmov 0   ;;  %vm21_vm2 = vcmask 516096   ;;  %s272_s0 = inlined_call_operand.vmem [shape: f32[2,9,64], index: 0, kind: input, shape index: {}]   ;;  %s273_s1 = inlined_call_operand.vmem [shape: f32[64,6], index: 1, kind: input, shape index: {}]   ;;  %s274_s2 = inlined_call_operand.vmem [shape: f32[1,6], index: 2, kind: input, shape index: {}]   ;;  %s275_s3 = inlined_call_operand.hbm [shape: f32[2,6], index: 3, kind: output, shape index: {}]  }
   0x1   :  { %v49_v0 = vld [vmem:[%s273_s1 + $0x38] sm:$0xff]  ;;  %160 = vmatprep.subr.mxu0 %v204_v1  ;;  %v48_v2 = vld [vmem:[%s273_s1 + $0x30] sm:$0xff]  ;;  %176 = vmatprep.mubr.msk.f32.mxu0 %vm205_vm1, %v204_v1  ;;  %v47_v3 = vld [vmem:[%s273_s1 + $0x28] sm:$0xff] }
   0x2   :  { %161 = vmatpush3.msra.mxu0 %v49_v0  ;;  %v15_v4 = vld [vmem:[%s272_s0] sm:$0xff]  ;;  %v16_v5 = vld [vmem:[%s272_s0 + $0x8] sm:$0x1]  ;;  %v17_v6 = vld [vmem:[%s272_s0 + $0x10] sm:$0xff] }
   0x3   :  { %162 = vmatprep.subr.mxu0 %v204_v1  ;;  %v18_v7 = vld [vmem:[%s272_s0 + $0x18] sm:$0x1]  ;;  %v20_v8 = vsel %vm19_vm0, %v15_v4, 0.0  ;;  %v22_v9 = vsel %vm21_vm2, %v16_v5, 0.0  ;;  %v30_v10 = vsel %vm19_vm0, %v17_v6, 0.0  ;;  %v46_v12 = vld [vmem:[%s273_s1 + $0x20] sm:$0xff] }
   0x4   :  { %163 = vmatpush3.msra.mxu0 %v48_v2  ;;  %v31_v11 = vsel %vm21_vm2, %v18_v7, 0.0  ;;  %v23_v13 = vadd.f32 %v22_v9, %v20_v8 }
   0x5   :  { %164 = vmatprep.subr.mxu0 %v204_v1  ;;  %v32_v14 = vadd.f32 %v31_v11, %v30_v10 }
   0x6   :  { %8 = vsyncpa [#allocation3], 0  ;;  %165 = vmatpush3.msra.mxu0 %v47_v3  ;;  %v45_v15 = vld [vmem:[%s273_s1 + $0x18] sm:$0xff]  ;;  %v24_v16 = vrot.slane %v23_v13, 4  ;;  %v44_v18 = vld [vmem:[%s273_s1 + $0x10] sm:$0xff]  ;;  %vm59_vm3 = vcmask 1041409  }
   0x7   :  { %166 = vmatprep.subr.mxu0 %v204_v1  ;;  %v33_v17 = vrot.slane %v32_v14, 4  ;;  %v43_v21 = vld [vmem:[%s273_s1 + $0x8] sm:$0xff]  ;;  %v42_v24 = vld [vmem:[%s273_s1] sm:$0xff]  ;;  %s206_s1 = smov [#allocation2]   ;;  %vm133_vm4 = vcmask 41984  }
   0x8   :  { %167 = vmatpush3.msra.mxu0 %v46_v12  ;;  %v25_v19 = vadd.f32 %v24_v16, %v23_v13  ;;  %v149_v34 = vld [vmem:[%s274_s2] ss:$0 sm:$0xff]  ;;  %s141_s10 = sshll.u32 %s206_s1, 4  ;;  %s142_s10 = int_to_ptr.vmem [resolvable:$true] %s141_s10 }
   0x9   :  { %168 = vmatprep.subr.mxu0 %v204_v1  ;;  %v34_v20 = vadd.f32 %v33_v17, %v32_v14  ;;  %s182_s11 = scalar_lea.vmem %s142_s10, 32  ;;  %p187_p1 = scmp.lt.s32.totalorder %s142_s10, %s142_s10 }
   0xa   :  { %169 = vmatpush3.msra.mxu0 %v45_v15  ;;  %v26_v22 = vrot.slane %v25_v19, 2  ;;  %p183_p0 = scmp.ne.s32.totalorder %s142_s10, %s182_s11  ;;  %p188_p2 = scmp.lt.s32.totalorder %s182_s11, %s182_s11 }
   0xb   :  { %170 = vmatprep.subr.mxu0 %v204_v1  ;;  %v35_v23 = vrot.slane %v34_v20, 2 }
   0xc   :  { %171 = vmatpush3.msra.mxu0 %v44_v18  ;;  %v27_v25 = vadd.f32 %v26_v22, %v25_v19  ;;  %p189_p3 = por %p188_p2, %p187_p1 }
   0xd   :  { %172 = vmatprep.subr.mxu0 %v204_v1  ;;  %v36_v26 = vadd.f32 %v35_v23, %v34_v20 }
   0xe   :  { %173 = vmatpush3.msra.mxu0 %v43_v21  ;;  %v28_v27 = vrot.slane %v27_v25, 1  ;;  %p190_p4 = pnand %p189_p3, %p183_p0 }
   0xf   :  { %174 = vmatprep.subr.mxu0 %v204_v1  ;;  %v37_v28 = vrot.slane %v36_v26, 1 }
  0x10   :  { %175 = vmatpush3.msra.mxu0 %v42_v24  ;;  %v29_v29 = vadd.f32 %v28_v27, %v27_v25 }
  0x11   :  { %v38_v30 = vadd.f32 %v37_v28, %v36_v26 }
  0x12   :  { %v40_v31 = vmul.f32 0.11111111, %v29_v29 }
  0x13   :  { %v41_v32 = vmul.f32 0.11111111, %v38_v30 }
  0x15   :  { %v60_v33 = vsel %vm59_vm3, %v41_v32, %v40_v31 }
  0x16   :  { %177 = vmatmul.mubr.msk.f32.vlgmr.msra.gmra.mxu0 %vm19_vm0, %v60_v33 }
  0xd6   :  { %v129_v35 = vpop.f32.mrf.mxu0 }
  0xd7   :  { %v130_v36 = vadd.f32 %v149_v34, %v129_v35 }
  0xd8   :  { %v178_v37 = vpop.f32.mrf.mxu0 }
  0xd9   :  { %134 = vst.msk [vmem:[#allocation2] sm:$0x3] %vm133_vm4, %v130_v36 }
  0xda   :  { %193 = shalt.err (!%p190_p4)
}
  0xdb   :  { %144 = dma.vmem_to_hbm [thread:$0]  %s142_s10, 32, %s275_s3, [#allocation3]  }
  0xdc   :  { %202 = dma.done.wait [#allocation3], 32  }
  0xdd   :  { %203 = vsyncadd [#allocation3], 4294967264 }
  0xde   :  { %148 = vsyncpa [#allocation3], 1 }

// kernel: resnet_forward.21
= control target key start
LH: loop header
LB: loop body
LE: loop exit
PB: predicated region body
PF: predicated region fallthrough
CT: control target
= control target key end

     0   :  { %vm49_vm0 = vcmask 261120   ;;  %vm107_vm1 = vcmask 517120   ;;  %vm104_vm2 = vcmask 523264   ;;  %s180_s1 = inlined_call_operand.vmem [shape: bf16[32,64], index: 1, kind: input, shape index: {}]   ;;  %s181_s0 = inlined_call_operand.vmem [shape: bf16[18,32], index: 0, kind: input, shape index: {}]   ;;  %s182_s2 = inlined_call_operand.vmem [shape: f32[1,64], index: 2, kind: input, shape index: {}]   ;;  %s183_s3 = inlined_call_operand.vmem [shape: f32[18,64], index: 3, kind: output, shape index: {}]  }
   0x1   :  { %v132_v0 = vld [vmem:[%s180_s1 + $0x8] sm:$0xff]   ;;  %v133_v1 = vld [vmem:[%s180_s1] sm:$0xff]  }
   0x2   :  { %124 = vmatprep.subr.bf16.mxu0 %v132_v0  ;;  %v134_v2 = vld [vmem:[%s181_s0] sm:$0xff]   ;;  %v135_v3 = vld [vmem:[%s181_s0 + $0x8] ss:$0 sps:$4 sm:$0x11]  }
   0x3   :  { %125 = vmatpush3.bf16.msra.mxu0 %v132_v0  ;;  %128 = vmatprep.mubr.msk.bf16.mxu0 %vm49_vm0, %v134_v2  ;;  %v113_v4 = vld [vmem:[%s182_s2] ss:$0 sm:$0xff] }
   0x4   :  { %126 = vmatprep.subr.bf16.mxu0 %v133_v1 }
   0x7   :  { %127 = vmatpush3.bf16.msra.mxu0 %v133_v1 }
   0xa   :  { %129 = vmatmul.mubr.msk.bf16.vlgmr.msra.gmra.mxu0 %vm49_vm0, %v135_v3 }
  0xca   :  { %v130_v5 = vpop.f32.mrf.mxu0 }
  0xcb   :  { %v99_v6 = vadd.f32 %v130_v5, %v113_v4 }
  0xcc   :  { %v90_v7 = vpop.f32.mrf.mxu0 }
  0xcd   :  { %108 = vst.msk [vmem:[%s183_s3 + $0x10] sm:$0x3] %vm107_vm1, %v99_v6  ;;  %v91_v8 = vadd.f32 %v113_v4, %v90_v7 }
  0xce   :  { %v131_v9 = vpop.f32.mrf.mxu0 }
  0xcf   :  { %105 = vst.msk [vmem:[%s183_s3] sm:$0xff] %vm104_vm2, %v91_v8 }
  0xd0   :  { %v93_v10 = vpop.f32.mrf.mxu0 }
  0xd1   :  { %v94_v11 = vadd.f32 %v113_v4, %v93_v10 }
  0xd3   :  { %106 = vst.msk [vmem:[%s183_s3 + $0x8] sm:$0xff] %vm104_vm2, %v94_v11 }

// kernel: resnet_forward.22
= control target key start
LH: loop header
LB: loop body
LE: loop exit
PB: predicated region body
PF: predicated region fallthrough
CT: control target
= control target key end

     0   :  { %vm364_vm0 = vcmask 523264   ;;  %vm526_vm1 = vcmask 517120   ;;  %s885_s1 = inlined_call_operand.vmem [shape: bf16[576,64], index: 1, kind: input, shape index: {}]   ;;  %s886_s0 = inlined_call_operand.vmem [shape: bf16[18,576], index: 0, kind: input, shape index: {}]   ;;  %s887_s2 = inlined_call_operand.vmem [shape: f32[1,64], index: 2, kind: input, shape index: {}]   ;;  %s888_s3 = inlined_call_operand.vmem [shape: f32[18,64], index: 3, kind: input, shape index: {}]   ;;  %s889_s4 = inlined_call_operand.vmem [shape: f32[18,64], index: 4, kind: output, shape index: {}]  }
   0x1   :  { %v655_v0 = vld [vmem:[%s885_s1 + $0x78] sm:$0xff]   ;;  %v659_v4 = vld [vmem:[%s885_s1 + $0x70] sm:$0xff]   ;;  %v663_v8 = vld [vmem:[%s885_s1 + $0x68] sm:$0xff]  }
   0x2   :  { %v656_v1 = vld [vmem:[%s885_s1 + $0x38] sm:$0xff]   ;;  %581 = vmatprep.subr.bf16.mxu0 %v655_v0  ;;  %v660_v5 = vld [vmem:[%s885_s1 + $0x30] sm:$0xff]   ;;  %v664_v9 = vld [vmem:[%s885_s1 + $0x28] sm:$0xff]  }
   0x3   :  { %v657_v2 = vld [vmem:[%s885_s1 + $0xf8] sm:$0xff]   ;;  %582 = vmatpush3.bf16.msra.mxu0 %v656_v1  ;;  %v661_v6 = vld [vmem:[%s885_s1 + $0xf0] sm:$0xff]   ;;  %v665_v10 = vld [vmem:[%s885_s1 + $0xe8] sm:$0xff]  }
   0x4   :  { %v658_v3 = vld [vmem:[%s885_s1 + $0xb8] sm:$0xff]   ;;  %609 = vmatprep.subr.bf16.mxu1 %v657_v2  ;;  %583 = vmatprep.subr.bf16.mxu0 %v659_v4  ;;  %v662_v7 = vld [vmem:[%s885_s1 + $0xb0] sm:$0xff]   ;;  %v666_v11 = vld [vmem:[%s885_s1 + $0xa8] sm:$0xff]  }
   0x5   :  { %610 = vmatpush3.bf16.msra.mxu1 %v658_v3  ;;  %v667_v12 = vld [vmem:[%s885_s1 + $0x60] sm:$0xff]   ;;  %v671_v16 = vld [vmem:[%s885_s1 + $0x58] sm:$0xff]   ;;  %v675_v20 = vld [vmem:[%s885_s1 + $0x50] sm:$0xff]  }
   0x6   :  { %611 = vmatprep.subr.bf16.mxu1 %v661_v6  ;;  %v668_v13 = vld [vmem:[%s885_s1 + $0x20] sm:$0xff]   ;;  %v672_v17 = vld [vmem:[%s885_s1 + $0x18] sm:$0xff]   ;;  %v676_v21 = vld [vmem:[%s885_s1 + $0x10] sm:$0xff]  }
   0x7   :  { %584 = vmatpush3.bf16.msra.mxu0 %v660_v5  ;;  %v669_v14 = vld [vmem:[%s885_s1 + $0xe0] sm:$0xff]   ;;  %v673_v18 = vld [vmem:[%s885_s1 + $0xd8] sm:$0xff]   ;;  %v677_v22 = vld [vmem:[%s885_s1 + $0xd0] sm:$0xff]  }
   0x8   :  { %585 = vmatprep.subr.bf16.mxu0 %v663_v8  ;;  %v670_v15 = vld [vmem:[%s885_s1 + $0xa0] sm:$0xff]   ;;  %v674_v19 = vld [vmem:[%s885_s1 + $0x98] sm:$0xff]   ;;  %v678_v23 = vld [vmem:[%s885_s1 + $0x90] sm:$0xff]  }
   0x9   :  { %612 = vmatpush3.bf16.msra.mxu1 %v662_v7  ;;  %v679_v24 = vld [vmem:[%s885_s1 + $0x48] sm:$0xff]   ;;  %v683_v28 = vld [vmem:[%s885_s1 + $0x40] sm:$0xff]   ;;  %v690_v34 = vld [vmem:[%s885_s1 + $0x118] sm:$0xff]  }
   0xa   :  { %613 = vmatprep.subr.bf16.mxu1 %v665_v10  ;;  %v680_v25 = vld [vmem:[%s885_s1 + $0x8] sm:$0xff]   ;;  %v684_v29 = vld [vmem:[%s885_s1] sm:$0xff]   ;;  %v694_v37 = vld [vmem:[%s885_s1 + $0x110] sm:$0xff]  }
   0xb   :  { %586 = vmatpush3.bf16.msra.mxu0 %v664_v9  ;;  %v681_v26 = vld [vmem:[%s885_s1 + $0xc8] sm:$0xff]   ;;  %v685_v30 = vld [vmem:[%s885_s1 + $0xc0] sm:$0xff]   ;;  %v25_v41 = vld [vmem:[%s886_s0 + $0x30] sm:$0x11] }
   0xc   :  { %587 = vmatprep.subr.bf16.mxu0 %v667_v12  ;;  %v682_v27 = vld [vmem:[%s885_s1 + $0x88] sm:$0xff]   ;;  %v686_v31 = vld [vmem:[%s886_s0] ss:$20 sps:$4 sm:$0xff]   ;;  %v688_v32 = vld [vmem:[%s886_s0 + $0x4] ss:$20 sps:$4 sm:$0xff]   ;;  %v541_v43 = vcombine.high %v25_v41, %v25_v41  ;;  %v540_v45 = vcombine.low %v25_v41, %v25_v41 }
   0xd   :  { %614 = vmatpush3.bf16.msra.mxu1 %v666_v11  ;;  %v689_v33 = vld [vmem:[%s885_s1 + $0x80] sm:$0xff]   ;;  %403 = vmatprep.mubr.bf16.mxu0 %v688_v32  ;;  %v691_v35 = vld [vmem:[%s886_s0 + $0x8] ss:$20 sps:$4 sm:$0xff]   ;;  %v702_v47 = vld [vmem:[%s886_s0 + $0x38] ss:$0 sps:$4 sm:$0x11]  }
   0xe   :  { %615 = vmatprep.subr.bf16.mxu1 %v669_v14  ;;  %v693_v36 = vld [vmem:[%s886_s0 + $0xc] ss:$20 sps:$4 sm:$0xff]   ;;  %v701_v44 = vld [vmem:[%s886_s0 + $0x10] ss:$20 sps:$4 sm:$0xff]  }
   0xf   :  { %588 = vmatpush3.bf16.msra.mxu0 %v668_v13  ;;  %v24_v38 = vld [vmem:[%s886_s0 + $0x28] sm:$0x11]  ;;  %451 = vmatprep.mubr.bf16.mxu1 %v693_v36  ;;  %v700_v46 = vld [vmem:[%s885_s1 + $0x100] sm:$0xff]   ;;  %v517_v9 = vld [vmem:[%s888_s3 + $0x10] sm:$0x3] }
  0x10   :  { %589 = vmatprep.subr.bf16.mxu0 %v671_v16  ;;  %v539_v39 = vcombine.high %v24_v38, %v24_v38  ;;  %v697_v40 = vld [vmem:[%s885_s1 + $0x108] sm:$0xff]   ;;  %v538_v42 = vcombine.low %v24_v38, %v24_v38  ;;  %v532_v59 = vld [vmem:[%s887_s2] ss:$0 sm:$0xff] }
  0x11   :  { %616 = vmatpush3.bf16.msra.mxu1 %v670_v15  ;;  %v515_v16 = vld [vmem:[%s888_s3] sm:$0xff] }
  0x12   :  { %617 = vmatprep.subr.bf16.mxu1 %v673_v18 }
  0x13   :  { %590 = vmatpush3.bf16.msra.mxu0 %v672_v17 }
  0x14   :  { %591 = vmatprep.subr.bf16.mxu0 %v675_v20 }
  0x15   :  { %618 = vmatpush3.bf16.msra.mxu1 %v674_v19 }
  0x16   :  { %619 = vmatprep.subr.bf16.mxu1 %v677_v22 }
  0x17   :  { %592 = vmatpush3.bf16.msra.mxu0 %v676_v21 }
  0x18   :  { %593 = vmatprep.subr.bf16.mxu0 %v679_v24  ;;  %v516_v24 = vld [vmem:[%s888_s3 + $0x8] sm:$0xff] }
  0x19   :  { %620 = vmatpush3.bf16.msra.mxu1 %v678_v23 }
  0x1a   :  { %621 = vmatprep.subr.bf16.mxu1 %v681_v26 }
  0x1b   :  { %594 = vmatpush3.bf16.msra.mxu0 %v680_v25 }
  0x1c   :  { %595 = vmatprep.subr.bf16.mxu0 %v683_v28 }
  0x1d   :  { %622 = vmatpush3.bf16.msra.mxu1 %v682_v27 }
  0x1e   :  { %623 = vmatprep.subr.bf16.mxu1 %v685_v30 }
  0x1f   :  { %596 = vmatpush3.bf16.msra.mxu0 %v684_v29 }
  0x20   :  { %643 = vmatprep.subr.bf16.mxu0 %v690_v34 }
  0x21   :  { %624 = vmatpush3.bf16.msra.mxu1 %v689_v33 }
  0x22   :  { %404 = vmatmul.mubr.bf16.vlgmr.msra.gmra.mxu0 %v686_v31 }
  0x23   :  { %644 = vmatpush3.bf16.msra.mxu0 %v690_v34  ;;  %411 = vmatprep.mubr.bf16.mxu0 %v539_v39 }
  0x24   :  { %452 = vmatmul.mubr.bf16.vlgmr.msra.gmra.mxu1 %v691_v35  ;;  %645 = vmatprep.subr.bf16.mxu0 %v694_v37 }
  0x25   :  { %459 = vmatprep.mubr.bf16.mxu1 %v541_v43 }
  0x27   :  { %646 = vmatpush3.bf16.msra.mxu0 %v694_v37 }
  0x28   :  { %647 = vmatprep.subr.bf16.mxu0 %v697_v40 }
  0x2a   :  { %412 = vmatmul.mubr.bf16.gmra.mxu0 %v538_v42 }
  0x2b   :  { %651 = vmatprep.mubr.msk.bf16.mxu0 %vm364_vm0, %v701_v44  ;;  %648 = vmatpush3.bf16.msra.mxu0 %v697_v40 }
  0x2c   :  { %460 = vmatmul.mubr.bf16.gmra.mxu1 %v540_v45  ;;  %649 = vmatprep.subr.bf16.mxu0 %v700_v46 }
  0x2f   :  { %650 = vmatpush3.bf16.msra.mxu0 %v700_v46 }
  0x32   :  { %652 = vmatmul.mubr.msk.bf16.vlgmr.msra.gmra.mxu0 %vm364_vm0, %v702_v47 }
  0xe2   :  { %v597_v48 = vpop.f32.mrf.mxu0 }
  0xe4   :  { %v598_v49 = vpop.f32.mrf.mxu0  ;;  %v625_v50 = vpop.f32.mrf.mxu1 }
  0xe5   :  { %v599_v57 = vadd.f32 %v598_v49, %v597_v48 }
  0xe6   :  { %v600_v51 = vpop.f32.mrf.mxu0  ;;  %v626_v52 = vpop.f32.mrf.mxu1 }
  0xe7   :  { %v406_v1 = vadd.f32 %v599_v57, %v532_v59  ;;  %v627_v2 = vadd.f32 %v626_v52, %v625_v50 }
  0xe8   :  { %v601_v53 = vpop.f32.mrf.mxu0  ;;  %v628_v54 = vpop.f32.mrf.mxu1 }
  0xe9   :  { %v602_v3 = vadd.f32 %v601_v53, %v600_v51  ;;  %v454_v14 = vadd.f32 %v627_v2, %v406_v1 }
  0xea   :  { %v603_v55 = vpop.f32.mrf.mxu0  ;;  %v629_v56 = vpop.f32.mrf.mxu1 }
  0xeb   :  { %v409_v11 = vadd.f32 %v602_v3, %v532_v59  ;;  %v630_v12 = vadd.f32 %v629_v56, %v628_v54 }
  0xec   :  { %v604_v58 = vpop.f32.mrf.mxu0  ;;  %v631_v61 = vpop.f32.mrf.mxu1 }
  0xed   :  { %v605_v60 = vadd.f32 %v604_v58, %v603_v55  ;;  %v457_v22 = vadd.f32 %v630_v12, %v409_v11 }
  0xee   :  { %v606_v62 = vpop.f32.mrf.mxu0  ;;  %v632_v0 = vpop.f32.mrf.mxu1 }
  0xef   :  { %v414_v63 = vadd.f32 %v605_v60, %v532_v59  ;;  %v633_v4 = vadd.f32 %v632_v0, %v631_v61 }
  0xf0   :  { %v607_v5 = vpop.f32.mrf.mxu0  ;;  %v634_v6 = vpop.f32.mrf.mxu1 }
  0xf1   :  { %v462_v7 = vadd.f32 %v633_v4, %v414_v63 }
  0xf2   :  { %v653_v8 = vpop.f32.mrf.mxu0  ;;  %v635_v10 = vpop.f32.mrf.mxu1 }
  0xf3   :  { %v510_v13 = vadd.f32 %v653_v8, %v462_v7 }
  0xf4   :  { %v501_v15 = vpop.f32.mrf.mxu0 }
  0xf5   :  { %v520_v17 = vadd.f32 %v517_v9, %v510_v13  ;;  %v502_v18 = vadd.f32 %v501_v15, %v454_v14 }
  0xf6   :  { %v654_v19 = vpop.f32.mrf.mxu0 }
  0xf7   :  { %v523_v20 = vmax.f32 %v520_v17, 0.0  ;;  %v518_v21 = vadd.f32 %v515_v16, %v502_v18 }
  0xf8   :  { %v504_v23 = vpop.f32.mrf.mxu0 }
  0xf9   :  { %527 = vst.msk [vmem:[%s889_s4 + $0x10] sm:$0x3] %vm526_vm1, %v523_v20  ;;  %v521_v25 = vmax.f32 %v518_v21, 0.0  ;;  %v505_v26 = vadd.f32 %v504_v23, %v457_v22 }
  0xfb   :  { %524 = vst.msk [vmem:[%s889_s4] sm:$0xff] %vm364_vm0, %v521_v25  ;;  %v519_v27 = vadd.f32 %v516_v24, %v505_v26 }
  0xfd   :  { %v522_v28 = vmax.f32 %v519_v27, 0.0 }
  0xff   :  { %525 = vst.msk [vmem:[%s889_s4 + $0x8] sm:$0xff] %vm364_vm0, %v522_v28 }

</bundles_post_ra>
